<compile_context>
chip_gen: v6e
topology: v6e:2x2x1
jax: 0.10.0
libtpu: 0.0.40
codegen_flags: <defaults>
</compile_context>

<pallas_src>
import numpy as np
import jax
import jax.numpy as jnp
from jax.experimental import pallas as pl
from jax.experimental.pallas import tpu as pltpu

NUM_SAMPLES = 43   # fixed by the module (tile factor of 43)
COORDS = 3         # xyz
GROUP = 8          # mesh vertices packed per sublane-row (one f32 sublane group)


def _round_up(x, m):
    return ((x + m - 1) // m) * m


def _make_selection_matrix(num_samples, num_coords, group):
    """One-hot matrix W with W[k, j] = 1 iff k == (j // (S*C))*C + (j % C).

    Packed mesh row mesh_rs[g, r*C + c] == mesh[g*GROUP + r, c]; multiplying by W
    replicates each vertex's (x, y, z) `num_samples` times directly into the
    row-major layout of the final [M*S, C] output.
    """
    width = group * num_samples * num_coords
    j = np.arange(width)
    k = (j // (num_samples * num_coords)) * num_coords + (j % num_coords)
    sel = np.zeros((group * num_coords, width), dtype=np.float32)
    sel[k, j] = 1.0
    return sel


def _sample_kernel(mag_ref, mesh_ref, sel_ref, delta_ref, out_ref):
    """out[g, r*129 + s*3 + c] = mesh[8g+r, c] + mag * delta[s, c]

    mag_ref   : SMEM (1,)        scalar magnitude
    mesh_ref  : VMEM (TG, 24)    8 packed vertices per row, f32
    sel_ref   : VMEM (24, 1032)  constant one-hot replication matrix, bf16
    delta_ref : VMEM (1, 1032)   sample deltas tiled 8x (unscaled), f32
    out_ref   : VMEM (TG, 1032)  lane-dense output block, f32
    """
    mesh = mesh_ref[...]
    sel = sel_ref[...]

    # Exact 3-term bf16 decomposition of the f32 mesh coordinates.  Each dot
    # against the one-hot bf16 `sel` is a pure gather (single nonzero per
    # output column, f32 accumulation), so summing the three passes
    # reconstructs the original f32 values to <= 1 ulp with only 3 single-pass
    # bf16 MXU matmuls (vs. 6 emulated passes under Precision.HIGHEST).
    b0 = mesh.astype(jnp.bfloat16)
    r1 = mesh - b0.astype(jnp.float32)
    b1 = r1.astype(jnp.bfloat16)
    b2 = (r1 - b1.astype(jnp.float32)).astype(jnp.bfloat16)

    # Accumulate into out_ref so at most one (TG, 1032) f32 temporary is live.
    out_ref[...] = jnp.dot(b0, sel, preferred_element_type=jnp.float32)
    out_ref[...] += jnp.dot(b1, sel, preferred_element_type=jnp.float32)
    out_ref[...] += jnp.dot(b2, sel, preferred_element_type=jnp.float32)
    out_ref[...] += delta_ref[...] * mag_ref[0]


def _sample_hypothesis_pallas(mesh_coords, mag, sample_delta, *, tile_cap=1024):
    """mesh_coords: [M, 3] f32, mag: scalar, sample_delta: [S, 3] f32 -> [M*S, 3]."""
    M = mesh_coords.shape[0]
    S, C = sample_delta.shape
    assert C == COORDS, "sample_delta must have 3 coordinates"
    width = GROUP * S * C                      # 8 * 43 * 3 = 1032

    mesh = mesh_coords.astype(jnp.float32)
    pad = (-M) % GROUP
    if pad:
        # NOTE: feeding M as a multiple of 8 upstream skips both this pad and
        # the final slice (which materializes a full copy of the output).
        mesh = jnp.pad(mesh, ((0, pad), (0, 0)))
    Mg = (M + pad) // GROUP
    mesh_packed = mesh.reshape(Mg, GROUP * C)                 # [Mg, 24]

    # Tile over group-rows.  Large tiles amortize the ~0.35us per-step
    # overhead; clamp so the grid has >= 4 steps (2 per v7x TensorCore).
    tile_g = min(_round_up(tile_cap, GROUP), _round_up(pl.cdiv(Mg, 4), GROUP))
    tile_g = max(GROUP, tile_g)
    grid = (pl.cdiv(Mg, tile_g),)   # clipped final block; no tile-multiple padding

    sel = jnp.asarray(_make_selection_matrix(S, C, GROUP), dtype=jnp.bfloat16)
    delta_tiled = jnp.tile(                                   # [1, 1032], unscaled
        sample_delta.astype(jnp.float32).reshape(1, S * C), (1, GROUP))
    mag_arr = jnp.asarray(mag, jnp.float32).reshape((1,))

    cost = pl.CostEstimate(
        flops=int(3 * 2 * Mg * (GROUP * C) * width + 2 * Mg * width),
        transcendentals=0,
        bytes_accessed=int(4 * (Mg * GROUP * C + Mg * width)),
    )

    out = pl.pallas_call(
        _sample_kernel,
        out_shape=jax.ShapeDtypeStruct((Mg, width), jnp.float32),
        grid=grid,
        in_specs=[
            pl.BlockSpec(memory_space=pltpu.SMEM),                 # mag scalar
            pl.BlockSpec((tile_g, GROUP * C), lambda i: (i, 0)),   # packed mesh tile
            pl.BlockSpec((GROUP * C, width), lambda i: (0, 0)),    # one-hot sel (grid-invariant)
            pl.BlockSpec((1, width), lambda i: (0, 0)),            # tiled deltas (grid-invariant)
        ],
        out_specs=pl.BlockSpec((tile_g, width), lambda i: (i, 0)),
        compiler_params=pltpu.CompilerParams(
            dimension_semantics=("parallel",),
            vmem_limit_bytes=32 * 1024 * 1024,   # v5e default is 16 MiB; safe on all gens
        ),
        cost_estimate=cost,
    )(mag_arr, mesh_packed, sel, delta_tiled)

    # [Mg, 1032] is already the row-major layout of [(M+pad)*S, 3]; pure reshape.
    out = out.reshape(-1, COORDS)
    if pad:
        out = out[: M * S]   # full-output copy -- only paid when M % 8 != 0
    return out


def sample_hypothesis(mesh_coords, mag, sample_delta, *, tile_cap=1024,
                      min_vertices_for_pallas=2048):
    """Forward pass of SampleHypothesis. Returns [M * S, 3]."""
    M = mesh_coords.shape[0]
    if M < min_vertices_for_pallas:
        # Tiny problem: a pallas_call's fixed launch cost exceeds the HBM traffic;
        # let XLA fuse the broadcast-add instead.
        mesh = mesh_coords.astype(jnp.float32)
        d = sample_delta.astype(jnp.float32) * jnp.asarray(mag, jnp.float32)
        return (mesh[:, None, :] + d[None, :, :]).reshape(-1, COORDS)
    return _sample_hypothesis_pallas(mesh_coords, mag, sample_delta, tile_cap=tile_cap)


def reference(mesh_coords, mag, sample_delta):
    center = jnp.tile(mesh_coords[:, None, :], (1, sample_delta.shape[0], 1))
    delta = sample_delta[None, :, :] * mag
    return (center + delta).reshape(-1, 3)


if __name__ == "__main__":
    key = jax.random.PRNGKey(0)
    k1, k2, k3, k4 = jax.random.split(key, 4)

    # Deterministic "options.sample_coord": 43 offsets in a fixed pattern.
    sample_delta = jnp.asarray(
        np.stack(
            [
                np.linspace(-1.0, 1.0, NUM_SAMPLES),
                np.linspace(1.0, -1.0, NUM_SAMPLES),
                np.sin(np.arange(NUM_SAMPLES, dtype=np.float32) * 0.25),
            ],
            axis=1,
        ),
        dtype=jnp.float32,
    )  # [43, 3]
    mag = jnp.float32(0.05)

    # 1) Pallas path: 4096 vertices -> 4 grid steps (2 per v7x TensorCore).
    M1 = 4096
    mesh1 = jax.random.normal(k1, (M1, 3), dtype=jnp.float32)
    out1 = jax.block_until_ready(sample_hypothesis(mesh1, mag, sample_delta))
    ref1 = reference(mesh1, mag, sample_delta)
    assert out1.shape == (M1 * NUM_SAMPLES, 3), out1.shape
    np.testing.assert_allclose(np.asarray(out1), np.asarray(ref1), rtol=1e-6, atol=1e-6)

    # 2) Ragged grid, M % 8 == 0: no padding, no output slice, clipped last block.
    M2 = 1000
    mesh2 = jax.random.normal(k2, (M2, 3), dtype=jnp.float32)
    out2 = jax.block_until_ready(_sample_hypothesis_pallas(mesh2, mag, sample_delta))
    ref2 = reference(mesh2, mag, sample_delta)
    assert out2.shape == (M2 * NUM_SAMPLES, 3), out2.shape
    np.testing.assert_allclose(np.asarray(out2), np.asarray(ref2), rtol=1e-6, atol=1e-6)

    # 3) M % 8 != 0: pad-to-8 + final slice path.
    M3 = 1001
    mesh3 = jax.random.normal(k3, (M3, 3), dtype=jnp.float32)
    out3 = jax.block_until_ready(_sample_hypothesis_pallas(mesh3, mag, sample_delta))
    ref3 = reference(mesh3, mag, sample_delta)
    assert out3.shape == (M3 * NUM_SAMPLES, 3), out3.shape
    np.testing.assert_allclose(np.asarray(out3), np.asarray(ref3), rtol=1e-6, atol=1e-6)

    # 4) Small-M dispatcher falls back to fused XLA.
    M4 = 16
    mesh4 = jax.random.normal(k4, (M4, 3), dtype=jnp.float32)
    out4 = jax.block_until_ready(sample_hypothesis(mesh4, mag, sample_delta))
    ref4 = reference(mesh4, mag, sample_delta)
    np.testing.assert_allclose(np.asarray(out4), np.asarray(ref4), rtol=1e-6, atol=1e-6)

    print("KERNEL_OK")
</pallas_src>

<mosaic_0001>
module attributes {stable_mosaic.version = 11 : i64} {
  func.func @_sample_kernel(%arg0: i32, %arg1: memref<1xf32, #tpu.memory_space<smem>>, %arg2: memref<128x24xf32, #tpu.memory_space<vmem>>, %arg3: memref<24x1032xbf16, #tpu.memory_space<vmem>>, %arg4: memref<1x1032xf32, #tpu.memory_space<vmem>>, %arg5: memref<128x1032xf32, #tpu.memory_space<vmem>>) attributes {dimension_semantics = [#tpu.dimension_semantics<parallel>], iteration_bounds = array<i64: 4>, scalar_prefetch = 0 : i64, scratch_operands = 0 : i64, tpu.core_type = #tpu.core_type<tc>, window_params = [{transform_indices = @transform_0, window_bounds = array<i64: 1>}, {transform_indices = @transform_1, window_bounds = array<i64: 128, 24>}, {pipeline_mode = #tpu.pipeline_mode<synchronous>, transform_indices = @transform_2, window_bounds = array<i64: 24, 1032>}, {pipeline_mode = #tpu.pipeline_mode<synchronous>, transform_indices = @transform_3, window_bounds = array<i64: 1, 1032>}, {transform_indices = @transform_4, window_bounds = array<i64: 128, 1032>}]} {
    %c0 = arith.constant 0 : index
    %c0_0 = arith.constant 0 : index
    %0 = vector.load %arg2[%c0, %c0_0] : memref<128x24xf32, #tpu.memory_space<vmem>>, vector<128x24xf32>
    %c0_1 = arith.constant 0 : index
    %c0_2 = arith.constant 0 : index
    %1 = vector.load %arg3[%c0_1, %c0_2] : memref<24x1032xbf16, #tpu.memory_space<vmem>>, vector<24x1032xbf16>
    %2 = arith.truncf %0 : vector<128x24xf32> to vector<128x24xbf16>
    %3 = arith.extf %2 : vector<128x24xbf16> to vector<128x24xf32>
    %4 = arith.subf %0, %3 : vector<128x24xf32>
    %5 = arith.truncf %4 : vector<128x24xf32> to vector<128x24xbf16>
    %6 = arith.extf %5 : vector<128x24xbf16> to vector<128x24xf32>
    %7 = arith.subf %4, %6 : vector<128x24xf32>
    %8 = arith.truncf %7 : vector<128x24xf32> to vector<128x24xbf16>
    %cst = arith.constant dense<0.000000e+00> : vector<128x1032xf32>
    %9 = tpu.matmul %2, %1, %cst {dimension_numbers = #tpu.dot_dimension_numbers<[1], [0], [0], [1], [0, 0, 1, 1], [], []>} : vector<128x24xbf16>, vector<24x1032xbf16>, vector<128x1032xf32> -> vector<128x1032xf32>
    %c0_3 = arith.constant 0 : index
    %c0_4 = arith.constant 0 : index
    %10 = vector.load %arg5[%c0_3, %c0_4] : memref<128x1032xf32, #tpu.memory_space<vmem>>, vector<128x1032xf32>
    tpu.vector_store %arg5[%c0_3, %c0_4], %9 {strides = array<i32>} : memref<128x1032xf32, #tpu.memory_space<vmem>>, vector<128x1032xf32>,
    %c0_5 = arith.constant 0 : index
    %c0_6 = arith.constant 0 : index
    %11 = vector.load %arg5[%c0_5, %c0_6] : memref<128x1032xf32, #tpu.memory_space<vmem>>, vector<128x1032xf32>
    %cst_7 = arith.constant dense<0.000000e+00> : vector<128x1032xf32>
    %12 = tpu.matmul %5, %1, %cst_7 {dimension_numbers = #tpu.dot_dimension_numbers<[1], [0], [0], [1], [0, 0, 1, 1], [], []>} : vector<128x24xbf16>, vector<24x1032xbf16>, vector<128x1032xf32> -> vector<128x1032xf32>
    %13 = arith.addf %11, %12 : vector<128x1032xf32>
    %c0_8 = arith.constant 0 : index
    %c0_9 = arith.constant 0 : index
    %14 = vector.load %arg5[%c0_8, %c0_9] : memref<128x1032xf32, #tpu.memory_space<vmem>>, vector<128x1032xf32>
    tpu.vector_store %arg5[%c0_8, %c0_9], %13 {strides = array<i32>} : memref<128x1032xf32, #tpu.memory_space<vmem>>, vector<128x1032xf32>,
    %c0_10 = arith.constant 0 : index
    %c0_11 = arith.constant 0 : index
    %15 = vector.load %arg5[%c0_10, %c0_11] : memref<128x1032xf32, #tpu.memory_space<vmem>>, vector<128x1032xf32>
    %cst_12 = arith.constant dense<0.000000e+00> : vector<128x1032xf32>
    %16 = tpu.matmul %8, %1, %cst_12 {dimension_numbers = #tpu.dot_dimension_numbers<[1], [0], [0], [1], [0, 0, 1, 1], [], []>} : vector<128x24xbf16>, vector<24x1032xbf16>, vector<128x1032xf32> -> vector<128x1032xf32>
    %17 = arith.addf %15, %16 : vector<128x1032xf32>
    %c0_13 = arith.constant 0 : index
    %c0_14 = arith.constant 0 : index
    %18 = vector.load %arg5[%c0_13, %c0_14] : memref<128x1032xf32, #tpu.memory_space<vmem>>, vector<128x1032xf32>
    tpu.vector_store %arg5[%c0_13, %c0_14], %17 {strides = array<i32>} : memref<128x1032xf32, #tpu.memory_space<vmem>>, vector<128x1032xf32>,
    %c0_15 = arith.constant 0 : index
    %c0_16 = arith.constant 0 : index
    %19 = vector.load %arg5[%c0_15, %c0_16] : memref<128x1032xf32, #tpu.memory_space<vmem>>, vector<128x1032xf32>
    %c0_17 = arith.constant 0 : index
    %c0_18 = arith.constant 0 : index
    %20 = vector.load %arg4[%c0_17, %c0_18] : memref<1x1032xf32, #tpu.memory_space<vmem>>, vector<1x1032xf32>
    %c0_19 = arith.constant 0 : index
    %21 = memref.load %arg1[%c0_19] : memref<1xf32, #tpu.memory_space<smem>>
    %22 = vector.broadcast %21 : f32 to vector<1x1032xf32>
    %23 = arith.mulf %20, %22 : vector<1x1032xf32>
    %24 = vector.broadcast %23 : vector<1x1032xf32> to vector<128x1032xf32>
    %25 = arith.addf %19, %24 : vector<128x1032xf32>
    %c0_20 = arith.constant 0 : index
    %c0_21 = arith.constant 0 : index
    %26 = vector.load %arg5[%c0_20, %c0_21] : memref<128x1032xf32, #tpu.memory_space<vmem>>, vector<128x1032xf32>
    tpu.vector_store %arg5[%c0_20, %c0_21], %25 {strides = array<i32>} : memref<128x1032xf32, #tpu.memory_space<vmem>>, vector<128x1032xf32>,
    return
  }
  func.func @transform_0(%arg0: i32) -> i32 {
    %c0_i32 = arith.constant 0 : i32
    %c0_i32_0 = arith.constant 0 : i32
    return %c0_i32 : i32
  }
  func.func @transform_1(%arg0: i32) -> (i32, i32) {
    %c0_i32 = arith.constant 0 : i32
    %c0_i32_0 = arith.constant 0 : i32
    return %arg0, %c0_i32 : i32, i32
  }
  func.func @transform_2(%arg0: i32) -> (i32, i32) {
    %c0_i32 = arith.constant 0 : i32
    %c0_i32_0 = arith.constant 0 : i32
    %c0_i32_1 = arith.constant 0 : i32
    return %c0_i32, %c0_i32_0 : i32, i32
  }
  func.func @transform_3(%arg0: i32) -> (i32, i32) {
    %c0_i32 = arith.constant 0 : i32
    %c0_i32_0 = arith.constant 0 : i32
    %c0_i32_1 = arith.constant 0 : i32
    return %c0_i32, %c0_i32_0 : i32, i32
  }
  func.func @transform_4(%arg0: i32) -> (i32, i32) {
    %c0_i32 = arith.constant 0 : i32
    %c0_i32_0 = arith.constant 0 : i32
    return %arg0, %c0_i32 : i32, i32
  }
}

</mosaic_0001>

<bundles_post_ra>
// kernel: tpu_custom_call.1
= control target key start
LH: loop header
LB: loop body
LE: loop exit
PB: predicated region body
PF: predicated region fallthrough
CT: control target
= control target key end

     0   :  { %s5988_s0 = inlined_call_operand.<no memory space> [shape: f32[1], index: 0, kind: input, shape index: {}]   ;;  %s5989_s1 = inlined_call_operand.vmem [shape: f32[512,24], index: 1, kind: input, shape index: {}]   ;;  %s5990_s2 = inlined_call_operand.hbm [shape: bf16[24,1032], index: 2, kind: input, shape index: {}]   ;;  %s5991_s3 = inlined_call_operand.hbm [shape: f32[1,1032], index: 3, kind: input, shape index: {}]   ;;  %s5992_s4 = inlined_call_operand.vmem [shape: f32[512,1032], index: 4, kind: output, shape index: {}]  }
   0x1   :  { %9 = sst [smem:[#allocation2]] %s5988_s0 }
   0x2   :  { %10 = vsyncpa [#allocation4], 0 }
   0x3   :  { %11 = vsyncpa [#allocation6], 0  ;;  %s4162_s17 = smov 0  }
   0x4 LB: > { %s3743_s18 = sadd.s32 4294967295, %s4127_s17   ;;  %p3745_p0 = scmp.ge.s32.totalorder %s4127_s17, 1  ;;  %s4127_s17 = sphi %s4162_s17, %s17_s17  }
   0x5   : > { %p137_p1 = scmp.lt.s32.totalorder %s4127_s17, 5  ;;  %s4129_s19 = smov [#allocation3]  }
   0x6   : > { %s152_s20 = sshll.u32 %s4129_s19, 4  ;;  %p4176_p3 = scmp.eq.s32.totalorder %s3743_s18, 0  ;;  %s153_s20 = int_to_ptr.vmem [resolvable:$true] %s152_s20 }
   0x7   : > { %p4170_p2 = pnand %p3745_p0, %p137_p1  ;;  %s4130_s22 = smov [#allocation5]  }
   0x8   : > { %s166_s23 = sshll.u32 %s4130_s22, 4  ;;  %s4072_s25 = scalar_lea.vmem %s153_s20, 1728  ;;  %s167_s23 = int_to_ptr.vmem [resolvable:$true] %s166_s23 }
   0x9   : > { %p4014_p4 = pneg %p4170_p2  ;;  %p4073_p7 = scmp.ne.s32.totalorder %s153_s20, %s4072_s25 }
   0xa   : > { %p4080_p10 = scmp.lt.s32.totalorder %s153_s20, %s153_s20  ;;  %p4081_p11 = scmp.lt.s32.totalorder %s4072_s25, %s4072_s25 }
   0xb   : > { %p4184_p5 = pnand %p4176_p3, %p4014_p4 }
   0xc   : > { %p4082_p12 = por %p4081_p11, %p4080_p10 }
   0xd   : > { %p4063_p6 = pneg %p4184_p5 }
   0xf   : > { %p4075_p8 = pnand %p4073_p7, %p4063_p6 }
  0x11   : > { %p4076_p9 = pneg %p4075_p8 }
  0x13   : > { %p4083_p13 = pnand %p4082_p12, %p4076_p9 }
  0x15   : > { %4086 = shalt.err (!%p4083_p13)
}
  0x16   : > { %s4131_s26 = smov 576   ;;  %s4132_s27 = smov 36  }
  0x17   : > { %4017 = dma.hbm_to_vmem [thread:$0]  (!%p4184_p5), %s5990_s2, 1728, %s153_s20, [#allocation4], %s4131_s26, %s4131_s26, %s4132_s27  }
  0x18   : > { %s4098_s30 = scalar_lea.vmem %s167_s23, 144  ;;  %s4105_s5 = scalar_lea.vmem %s167_s23, 160 }
  0x19   : > { %p4099_p0 = scmp.ne.s32.totalorder %s167_s23, %s4098_s30  ;;  %p4106_p7 = scmp.lt.s32.totalorder %s167_s23, %s167_s23 }
  0x1a   : > { %p4107_p8 = scmp.lt.s32.totalorder %s4105_s5, %s4098_s30 }
  0x1b   : > { %p4101_p1 = pnand %p4099_p0, %p4063_p6 }
  0x1c   : > { %p4108_p9 = por %p4107_p8, %p4106_p7 }
  0x1d   : > { %p4102_p4 = pneg %p4101_p1 }
  0x1f   : > { %p4109_p10 = pnand %p4108_p9, %p4102_p4 }
  0x21   : > { %4112 = shalt.err (!%p4109_p10)
}
  0x22   : > { %4020 = dma.hbm_to_vmem [thread:$0]  (!%p4184_p5), %s5991_s3, 144, %s167_s23, [#allocation6]  }
  0x23   : > { %188 = sbr.rel (%p4170_p2) target bundleno = 691 (0x2b3), region = 36 }
  0x28   : > { %4118 = dma.done.wait (%p4176_p3), [#allocation4], 1728  }
  0x29   : > { %4120 = vsyncadd (%p4176_p3), [#allocation4], 4294965568 }
  0x2a   : > { %4122 = dma.done.wait (%p4176_p3), [#allocation6], 144  }
  0x2b   : > { %4124 = vsyncadd (%p4176_p3), [#allocation6], 4294967152  ;;  %s3752_s8 = sshll.u32 %s3743_s18, 4  ;;  %v5993_v0 = vmov 0   ;;  %v259_v1 = vld [vmem:[#allocation3 + $0x48] sm:$0xff]  ;;  %vm446_vm0 = vcmask 1043456  }
  0x2c   : > { %506 = vmatprep.mubr.bf16.mxu0 %v5993_v0  ;;  %566 = vmatprep.mubr.bf16.mxu1 %v5993_v0  ;;  %p220_p2 = scmp.lt.s32.totalorder %s3752_s8, 63  ;;  %v4228_v2 = vcombine.high %v259_v1, %v259_v1  ;;  %v3765_v3 = vcombine.low %v259_v1, %v259_v1  ;;  %v4230_v4 = vld [vmem:[#allocation3 + $0x4] ss:$36 sps:$4 sm:$0xff]   ;;  %v260_v8 = vld [vmem:[#allocation3 + $0x50] sm:$0xff]  ;;  %v261_v9 = vld [vmem:[#allocation3 + $0x58] sm:$0xff]  ;;  %vm421_vm1 = vcmask 195584  }
  0x2d   : > { %v4232_v5 = vld [vmem:[#allocation3] ss:$36 sps:$4 sm:$0xff]   ;;  %v4255_v13 = vcombine.high %v260_v8, %v260_v8  ;;  %v4259_v14 = vcombine.high %v261_v9, %v261_v9  ;;  %v3767_v15 = vcombine.low %v260_v8, %v260_v8  ;;  %v3769_v16 = vcombine.low %v261_v9, %v261_v9  ;;  %v4281_v21 = vld [vmem:[#allocation3 + $0xc] ss:$36 sps:$4 sm:$0xff]   ;;  %v4292_v26 = vld [vmem:[#allocation3 + $0x14] ss:$36 sps:$4 sm:$0xff]  }
  0x2e   : > { %s6074_s8 = smov (!%p220_p2, %s3752_s8), 63  ;;  %3774 = vmatprep.subr.msk.bf16.mxu0 %vm446_vm0, %v4228_v2  ;;  %3998 = vmatprep.subr.msk.bf16.mxu1 %vm446_vm0, %v4228_v2  ;;  %v4239_v6 = vsel %vm446_vm0, %v3765_v3, 0  ;;  %v262_v25 = vld [vmem:[#allocation3 + $0x60] sm:$0xff]  ;;  %v4301_v28 = vld [vmem:[#allocation3 + $0x8] ss:$36 sps:$4 sm:$0xff]   ;;  %vm1031_vm2 = vcmask 64512  }
  0x2f   : > { %s3753_s9 = sshll.u32 %s6074_s8, 3  ;;  %487 = vmatpush1.bf16.msra.mxu0 %v4239_v6  ;;  %4000 = vmatpush1.bf16.msra.mxu1 %v4239_v6  ;;  %v4276_v19 = vsel %vm446_vm0, %v3767_v15, 0  ;;  %v4279_v20 = vsel %vm446_vm0, %v3769_v16, 0  ;;  %v4305_v29 = vld [vmem:[#allocation3 + $0x10] ss:$36 sps:$4 sm:$0xff]   ;;  %v4309_v30 = vcombine.high %v262_v25, %v262_v25  ;;  %v3771_v36 = vcombine.low %v262_v25, %v262_v25  ;;  %s4005_s13 = smul.u32 72, %s6074_s8 }
  0x30   : > { %s4226_s12 = scalar_lea.vmem %s5989_s1, %s3753_s9  ;;  %488 = vmatprep.subr.bf16.mxu0 %v4230_v4  ;;  %3999 = vmatprep.subr.bf16.mxu1 %v4230_v4  ;;  %v4311_v31 = vld [vmem:[#allocation3 + $0x68] ss:$0 sps:$4 sm:$0xff]   ;;  %v4348_v39 = vld [vmem:[#allocation3 + $0x1c] ss:$36 sps:$4 sm:$0xff]   ;;  %s5360_s18 = sld [smem:[#allocation2]] }
  0x31   : > { %v4242_v7 = vld [vmem:[%s4226_s12] sm:$0xff]  ;;  %v4247_v10 = vld [vmem:[%s4226_s12 + $0x8] sm:$0xff]  ;;  %v4284_v22 = vld [vmem:[%s4226_s12 + $0x10] sm:$0xff]  ;;  %v4346_v38 = vsel %vm446_vm0, %v3771_v36, 0  ;;  %v4413_v50 = vsel %vm446_vm0, %v4311_v31, 0  ;;  %s4644_s16 = scalar_lea.vmem %s5992_s4, %s4005_s13 }
  0x32   : > { %v4250_v11 = vld [vmem:[%s4226_s12 + $0x60] sm:$0xff]  ;;  %v4253_v12 = vld [vmem:[%s4226_s12 + $0x68] sm:$0xff]  ;;  %v4263_v17 = vpack.c.bf16 %v4247_v10, %v4242_v7  ;;  %v4287_v23 = vld [vmem:[%s4226_s12 + $0x18] sm:$0xff] }
  0x33   : > { %v4267_v18 = vpack.c.bf16 %v4253_v12, %v4250_v11  ;;  %489 = vmatpush1.bf16.msra.mxu0 %v4232_v5  ;;  %4001 = vmatpush1.bf16.msra.mxu1 %v4232_v5  ;;  %v4290_v24 = vld [vmem:[%s4226_s12 + $0x70] sm:$0xff]  ;;  %v4299_v27 = vld [vmem:[%s4226_s12 + $0x78] sm:$0xff]  ;;  %v4317_v32 = vpack.c.bf16 %v4287_v23, %v4284_v22  ;;  %v4336_v34 = vld [vmem:[%s4226_s12 + $0x20] sm:$0xff] }
  0x34   : > { %3783 = vmatprep.subr.msk.bf16.mxu1 %vm446_vm0, %v4255_v13  ;;  %3792 = vmatprep.subr.msk.bf16.mxu0 %vm446_vm0, %v4259_v14  ;;  %v4321_v33 = vpack.c.bf16 %v4299_v27, %v4290_v24  ;;  %v4339_v35 = vld [vmem:[%s4226_s12 + $0x28] sm:$0xff]  ;;  %v4357_v40 = vld [vmem:[%s4226_s12 + $0x30] sm:$0xff]  ;;  %v4360_v41 = vld [vmem:[%s4226_s12 + $0x38] sm:$0xff]  ;;  %v272_v52 = vunpack.c.l.bf16 %v4263_v17  ;;  %v273_v53 = vunpack.c.h.bf16 %v4263_v17 }
  0x35   : > { %v4343_v37 = vpack.c.bf16 %v4339_v35, %v4336_v34  ;;  %v4362_v42 = vld [vmem:[#allocation3 + $0x18] ss:$36 sps:$4 sm:$0xff]   ;;  %v4368_v43 = vpack.c.bf16 %v4360_v41, %v4357_v40  ;;  %v4380_v44 = vld [vmem:[%s4226_s12 + $0x40] sm:$0xff]  ;;  %v4383_v45 = vld [vmem:[%s4226_s12 + $0x48] sm:$0xff]  ;;  %v274_v57 = vunpack.c.l.bf16 %v4317_v32  ;;  %v275_v58 = vunpack.c.h.bf16 %v4317_v32 }
  0x36   : > { %3775 = vmatmul.mubr.msk.bf16.vlgmr.msra.gmra.mxu0 %vm421_vm1, %v4263_v17  ;;  %3781 = vmatmul.mubr.msk.bf16.vlgmr.msra.gmra.mxu1 %vm421_vm1, %v4267_v18  ;;  %v4387_v46 = vpack.c.bf16 %v4383_v45, %v4380_v44  ;;  %v4396_v47 = vld [vmem:[%s4226_s12 + $0x50] sm:$0xff]  ;;  %v4399_v48 = vld [vmem:[%s4226_s12 + $0x58] sm:$0xff]  ;;  %v4415_v51 = vld [vmem:[#allocation3 + $0x20] ss:$36 sps:$4 sm:$0xff]   ;;  %v4509_v54 = vsub.f32 %v4242_v7, %v272_v52  ;;  %v4512_v55 = vsub.f32 %v4247_v10, %v273_v53 }
  0x37   : > { %600 = vmatpush1.bf16.msra.mxu1 %v4276_v19  ;;  %713 = vmatpush1.bf16.msra.mxu0 %v4279_v20  ;;  %v4403_v49 = vpack.c.bf16 %v4399_v48, %v4396_v47  ;;  %v4527_v59 = vsub.f32 %v4284_v22, %v274_v57  ;;  %v4530_v60 = vsub.f32 %v4287_v23, %v275_v58  ;;  %v276_v62 = vunpack.c.l.bf16 %v4343_v37 }
  0x38   : > { %516 = vmatprep.mubr.bf16.mxu0 %v5993_v0  ;;  %576 = vmatprep.mubr.bf16.mxu1 %v5993_v0  ;;  %v4518_v56 = vpack.c.bf16 %v4512_v55, %v4509_v54  ;;  %v277_v63 = vunpack.c.h.bf16 %v4343_v37  ;;  %v279_v8 = vunpack.c.h.bf16 %v4368_v43  ;;  %v280_v16 = vunpack.c.l.bf16 %v4387_v46 }
  0x39   : > { %601 = vmatprep.subr.bf16.mxu1 %v4281_v21  ;;  %714 = vmatprep.subr.bf16.mxu0 %v4292_v26  ;;  %v4540_v61 = vpack.c.bf16 %v4530_v60, %v4527_v59  ;;  %v4555_v1 = vsub.f32 %v4336_v34, %v276_v62  ;;  %v283_v34 = vunpack.c.h.bf16 %v4403_v49 }
  0x3a   : > { %v4558_v3 = vsub.f32 %v4339_v35, %v277_v63  ;;  %v4576_v10 = vsub.f32 %v4360_v41, %v279_v8  ;;  %v4591_v22 = vsub.f32 %v4380_v44, %v280_v16  ;;  %v285_v41 = vunpack.c.h.bf16 %v4267_v18 }
  0x3b   : > { %602 = vmatpush1.bf16.msra.mxu1 %v4301_v28  ;;  %715 = vmatpush1.bf16.msra.mxu0 %v4305_v29  ;;  %v4612_v36 = vsub.f32 %v4399_v48, %v283_v34 }
  0x3c   : > { %3801 = vmatprep.subr.msk.bf16.mxu1 %vm446_vm0, %v4309_v30  ;;  %4002 = vmatprep.subr.msk.bf16.mxu0 %vm446_vm0, %v4311_v31  ;;  %v4564_v7 = vpack.c.bf16 %v4558_v3, %v4555_v1  ;;  %v4630_v44 = vsub.f32 %v4253_v12, %v285_v41 }
  0x3e   : > { %3776 = vmatmul.mubr.msk.bf16.gmra.mxu0 %vm421_vm1, %v4317_v32  ;;  %3782 = vmatmul.mubr.msk.bf16.gmra.mxu1 %vm421_vm1, %v4321_v33 }
  0x3f   : > { %526 = vmatprep.mubr.bf16.mxu0 %v5993_v0  ;;  %619 = vmatprep.mubr.bf16.mxu1 %v5993_v0 }
  0x46   : > { %3777 = vmatmul.mubr.msk.bf16.gmra.mxu0 %vm421_vm1, %v4343_v37  ;;  %3784 = vmatmul.mubr.msk.bf16.vlgmr.msra.gmra.mxu1 %vm421_vm1, %v4263_v17 }
  0x47   : > { %826 = vmatpush1.bf16.msra.mxu1 %v4346_v38  ;;  %536 = vmatprep.mubr.bf16.mxu0 %v5993_v0 }
  0x48   : > { %629 = vmatprep.mubr.bf16.mxu1 %v5993_v0  ;;  %827 = vmatprep.subr.bf16.mxu1 %v4348_v39 }
  0x4b   : > { %828 = vmatpush1.bf16.msra.mxu1 %v4362_v42 }
  0x4c   : > { %3818 = vmatprep.subr.msk.bf16.mxu1 %vm446_vm0, %v4228_v2 }
  0x4e   : > { %3778 = vmatmul.mubr.msk.bf16.gmra.mxu0 %vm421_vm1, %v4368_v43  ;;  %3785 = vmatmul.mubr.msk.bf16.gmra.mxu1 %vm421_vm1, %v4317_v32 }
  0x4f   : > { %546 = vmatprep.mubr.bf16.mxu0 %v5993_v0  ;;  %639 = vmatprep.mubr.bf16.mxu1 %v5993_v0 }
  0x56   : > { %3779 = vmatmul.mubr.msk.bf16.gmra.mxu0 %vm421_vm1, %v4387_v46  ;;  %3786 = vmatmul.mubr.msk.bf16.gmra.mxu1 %vm421_vm1, %v4343_v37 }
  0x57   : > { %556 = vmatprep.mubr.bf16.mxu0 %v5993_v0  ;;  %649 = vmatprep.mubr.bf16.mxu1 %v5993_v0 }
  0x5e   : > { %3780 = vmatmul.mubr.msk.bf16.gmra.mxu0 %vm421_vm1, %v4403_v49  ;;  %3787 = vmatmul.mubr.msk.bf16.gmra.mxu1 %vm421_vm1, %v4368_v43 }
  0x5f   : > { %659 = vmatprep.mubr.bf16.mxu1 %v5993_v0  ;;  %732 = vmatprep.mubr.bf16.mxu0 %v5993_v0 }
  0x66   : > { %3788 = vmatmul.mubr.msk.bf16.gmra.mxu1 %vm421_vm1, %v4387_v46  ;;  %3793 = vmatmul.mubr.msk.bf16.vlgmr.msra.gmra.mxu0 %vm421_vm1, %v4263_v17 }
  0x67   : > { %3939 = vmatpush3.bf16.msra.mxu0 %v4413_v50  ;;  %669 = vmatprep.mubr.bf16.mxu1 %v5993_v0 }
  0x68   : > { %742 = vmatprep.mubr.bf16.mxu0 %v5993_v0  ;;  %3940 = vmatprep.subr.bf16.mxu0 %v4415_v51 }
  0x6b   : > { %3941 = vmatpush3.bf16.msra.mxu0 %v4415_v51 }
  0x6c   : > { %3827 = vmatprep.subr.msk.bf16.mxu0 %vm446_vm0, %v4255_v13 }
  0x6e   : > { %3789 = vmatmul.mubr.msk.bf16.gmra.mxu1 %vm421_vm1, %v4403_v49  ;;  %3794 = vmatmul.mubr.msk.bf16.gmra.mxu0 %vm421_vm1, %v4317_v32 }
  0x6f   : > { %679 = vmatprep.mubr.bf16.mxu1 %v5993_v0  ;;  %752 = vmatprep.mubr.bf16.mxu0 %v5993_v0 }
  0x76   : > { %3790 = vmatmul.mubr.msk.bf16.gmra.mxu1 %vm421_vm1, %v4267_v18  ;;  %3795 = vmatmul.mubr.msk.bf16.gmra.mxu0 %vm421_vm1, %v4343_v37 }
  0x77   : > { %689 = vmatprep.mubr.bf16.mxu1 %v5993_v0  ;;  %762 = vmatprep.mubr.bf16.mxu0 %v5993_v0 }
  0x7e   : > { %3791 = vmatmul.mubr.msk.bf16.gmra.mxu1 %vm421_vm1, %v4321_v33  ;;  %3796 = vmatmul.mubr.msk.bf16.gmra.mxu0 %vm421_vm1, %v4368_v43 }
  0x7f   : > { %772 = vmatprep.mubr.bf16.mxu0 %v5993_v0  ;;  %845 = vmatprep.mubr.bf16.mxu1 %v5993_v0 }
  0x86   : > { %3797 = vmatmul.mubr.msk.bf16.gmra.mxu0 %vm421_vm1, %v4387_v46  ;;  %3802 = vmatmul.mubr.msk.bf16.vlgmr.msra.gmra.mxu1 %vm421_vm1, %v4263_v17 }
  0x87   : > { %1349 = vmatpush1.bf16.msra.mxu1 %v4239_v6  ;;  %782 = vmatprep.mubr.bf16.mxu0 %v5993_v0 }
  0x88   : > { %855 = vmatprep.mubr.bf16.mxu1 %v5993_v0  ;;  %1350 = vmatprep.subr.bf16.mxu1 %v4230_v4 }
  0x8b   : > { %1351 = vmatpush1.bf16.msra.mxu1 %v4232_v5 }
  0x8c   : > { %3836 = vmatprep.subr.msk.bf16.mxu1 %vm446_vm0, %v4259_v14 }
  0x8e   : > { %3798 = vmatmul.mubr.msk.bf16.gmra.mxu0 %vm421_vm1, %v4403_v49  ;;  %3803 = vmatmul.mubr.msk.bf16.gmra.mxu1 %vm421_vm1, %v4317_v32 }
  0x8f   : > { %792 = vmatprep.mubr.bf16.mxu0 %v5993_v0  ;;  %865 = vmatprep.mubr.bf16.mxu1 %v5993_v0 }
  0x96   : > { %3799 = vmatmul.mubr.msk.bf16.gmra.mxu0 %vm421_vm1, %v4267_v18  ;;  %3804 = vmatmul.mubr.msk.bf16.gmra.mxu1 %vm421_vm1, %v4343_v37 }
  0x97   : > { %802 = vmatprep.mubr.bf16.mxu0 %v5993_v0  ;;  %875 = vmatprep.mubr.bf16.mxu1 %v5993_v0 }
  0x9e   : > { %3800 = vmatmul.mubr.msk.bf16.gmra.mxu0 %vm421_vm1, %v4321_v33  ;;  %3805 = vmatmul.mubr.msk.bf16.gmra.mxu1 %vm421_vm1, %v4368_v43 }
  0x9f   : > { %885 = vmatprep.mubr.bf16.mxu1 %v5993_v0  ;;  %3942 = vmatprep.mubr.msk.bf16.mxu0 %vm421_vm1, %v4263_v17  ;;  %v281_v17 = vunpack.c.h.bf16 %v4387_v46 }
  0xa1   : > { %v4594_v23 = vsub.f32 %v4383_v45, %v281_v17  ;;  %v286_v45 = vunpack.c.l.bf16 %v4321_v33 }
  0xa3   : > { %v4600_v25 = vpack.c.bf16 %v4594_v23, %v4591_v22 }
  0xa6   : > { %3806 = vmatmul.mubr.msk.bf16.gmra.mxu1 %vm421_vm1, %v4387_v46  ;;  %3943 = vmatmul.mubr.msk.bf16.vlgmr.msra.gmra.mxu0 %vm421_vm1, %v4317_v32  ;;  %v282_v32 = vunpack.c.l.bf16 %v4403_v49 }
  0xa7   : > { %1462 = vmatpush1.bf16.msra.mxu0 %v4276_v19  ;;  %895 = vmatprep.mubr.bf16.mxu1 %v5993_v0 }
  0xa8   : > { %3946 = vmatprep.mubr.msk.bf16.mxu0 %vm421_vm1, %v4343_v37  ;;  %1463 = vmatprep.subr.bf16.mxu0 %v4281_v21  ;;  %v4609_v35 = vsub.f32 %v4396_v47, %v282_v32 }
  0xaa   : > { %v4618_v37 = vpack.c.bf16 %v4612_v36, %v4609_v35 }
  0xab   : > { %1464 = vmatpush1.bf16.msra.mxu0 %v4301_v28 }
  0xac   : > { %3845 = vmatprep.subr.msk.bf16.mxu0 %vm446_vm0, %v4309_v30 }
  0xae   : > { %3807 = vmatmul.mubr.msk.bf16.gmra.mxu1 %vm421_vm1, %v4403_v49  ;;  %3947 = vmatmul.mubr.msk.bf16.gmra.mxu0 %vm421_vm1, %v4368_v43 }
  0xaf   : > { %905 = vmatprep.mubr.bf16.mxu1 %v5993_v0  ;;  %3950 = vmatprep.mubr.msk.bf16.mxu0 %vm421_vm1, %v4387_v46  ;;  %v287_v46 = vunpack.c.h.bf16 %v4321_v33 }
  0xb1   : > { %v4656_v47 = vsub.f32 %v4299_v27, %v287_v46 }
  0xb6   : > { %3808 = vmatmul.mubr.msk.bf16.gmra.mxu1 %vm421_vm1, %v4267_v18  ;;  %3951 = vmatmul.mubr.msk.bf16.gmra.mxu0 %vm421_vm1, %v4403_v49 }
  0xb7   : > { %915 = vmatprep.mubr.bf16.mxu1 %v5993_v0  ;;  %3954 = vmatprep.mubr.msk.bf16.mxu0 %vm421_vm1, %v4267_v18 }
  0xbe   : > { %3809 = vmatmul.mubr.msk.bf16.gmra.mxu1 %vm421_vm1, %v4321_v33  ;;  %3955 = vmatmul.mubr.msk.bf16.gmra.mxu0 %vm421_vm1, %v4321_v33  ;;  %v4653_v33 = vsub.f32 %v4290_v24, %v286_v45 }
  0xbf   : > { %1368 = vmatprep.mubr.bf16.mxu1 %v5993_v0  ;;  %1481 = vmatprep.mubr.bf16.mxu0 %v5993_v0 }
  0xc0   : > { %v4668_v24 = vpack.c.bf16 %v4656_v47, %v4653_v33 }
  0xc6   : > { %3819 = vmatmul.mubr.msk.bf16.vlgmr.msra.gmra.mxu1 %vm421_vm1, %v4518_v56  ;;  %3828 = vmatmul.mubr.msk.bf16.vlgmr.msra.gmra.mxu0 %vm421_vm1, %v4518_v56 }
  0xc7   : > { %1575 = vmatpush1.bf16.msra.mxu1 %v4279_v20  ;;  %1688 = vmatpush1.bf16.msra.mxu0 %v4346_v38 }
  0xc8   : > { %1378 = vmatprep.mubr.bf16.mxu1 %v5993_v0  ;;  %1491 = vmatprep.mubr.bf16.mxu0 %v5993_v0 }
  0xc9   : > { %1576 = vmatprep.subr.bf16.mxu1 %v4292_v26  ;;  %1689 = vmatprep.subr.bf16.mxu0 %v4348_v39 }
  0xcb   : > { %1577 = vmatpush1.bf16.msra.mxu1 %v4305_v29  ;;  %1690 = vmatpush1.bf16.msra.mxu0 %v4362_v42 }
  0xcc   : > { %4003 = vmatprep.subr.msk.bf16.mxu1 %vm446_vm0, %v4311_v31  ;;  %3862 = vmatprep.subr.msk.bf16.mxu0 %vm446_vm0, %v4228_v2  ;;  %v278_v2 = vunpack.c.l.bf16 %v4368_v43 }
  0xce   : > { %3820 = vmatmul.mubr.msk.bf16.gmra.mxu1 %vm421_vm1, %v4540_v61  ;;  %3829 = vmatmul.mubr.msk.bf16.gmra.mxu0 %vm421_vm1, %v4540_v61  ;;  %v4573_v9 = vsub.f32 %v4357_v40, %v278_v2  ;;  %v284_v40 = vunpack.c.l.bf16 %v4267_v18 }
  0xcf   : > { %1388 = vmatprep.mubr.bf16.mxu1 %v5993_v0  ;;  %1501 = vmatprep.mubr.bf16.mxu0 %v5993_v0 }
  0xd0   : > { %v4582_v15 = vpack.c.bf16 %v4576_v10, %v4573_v9  ;;  %v4627_v43 = vsub.f32 %v4250_v11, %v284_v40 }
  0xd2   : > { %v4637_v18 = vpack.c.bf16 %v4630_v44, %v4627_v43 }
  0xd6   : > { %3821 = vmatmul.mubr.msk.bf16.gmra.mxu1 %vm421_vm1, %v4564_v7  ;;  %3830 = vmatmul.mubr.msk.bf16.gmra.mxu0 %vm421_vm1, %v4564_v7 }
  0xd7   : > { %1398 = vmatprep.mubr.bf16.mxu1 %v5993_v0  ;;  %1511 = vmatprep.mubr.bf16.mxu0 %v5993_v0 }
  0xde   : > { %3822 = vmatmul.mubr.msk.bf16.gmra.mxu1 %vm421_vm1, %v4582_v15  ;;  %3831 = vmatmul.mubr.msk.bf16.gmra.mxu0 %vm421_vm1, %v4582_v15 }
  0xdf   : > { %1408 = vmatprep.mubr.bf16.mxu1 %v5993_v0  ;;  %1521 = vmatprep.mubr.bf16.mxu0 %v5993_v0 }
  0xe6   : > { %3823 = vmatmul.mubr.msk.bf16.gmra.mxu1 %vm421_vm1, %v4600_v25  ;;  %3832 = vmatmul.mubr.msk.bf16.gmra.mxu0 %vm421_vm1, %v4600_v25 }
  0xe7   : > { %1418 = vmatprep.mubr.bf16.mxu1 %v5993_v0  ;;  %1531 = vmatprep.mubr.bf16.mxu0 %v5993_v0 }
  0xee   : > { %3824 = vmatmul.mubr.msk.bf16.gmra.mxu1 %vm421_vm1, %v4618_v37  ;;  %3833 = vmatmul.mubr.msk.bf16.gmra.mxu0 %vm421_vm1, %v4618_v37 }
  0xef   : > { %1428 = vmatprep.mubr.bf16.mxu1 %v5993_v0  ;;  %1541 = vmatprep.mubr.bf16.mxu0 %v5993_v0 }
  0xf6   : > { %v4646_v11 = vpop.f32.mrf.mxu0  ;;  %v568_v12 = vpop.f32.mrf.mxu1  ;;  %3825 = vmatmul.mubr.msk.bf16.gmra.mxu1 %vm421_vm1, %v4637_v18  ;;  %3834 = vmatmul.mubr.msk.bf16.gmra.mxu0 %vm421_vm1, %v4637_v18 }
  0xf7   : > { %1132 = vst [vmem:[%s4644_s16 + $0x360] sm:$0xff] %v568_v12  ;;  %1438 = vmatprep.mubr.bf16.mxu1 %v5993_v0  ;;  %1551 = vmatprep.mubr.bf16.mxu0 %v5993_v0 }
  0xf8   : > { %v4661_v48 = vpop.f32.mrf.mxu0  ;;  %v570_v49 = vpop.f32.mrf.mxu1 }
  0xf9   : > { %1133 = vst [vmem:[%s4644_s16 + $0x368] sm:$0xff] %v570_v49 }
  0xfa   : > { %v4664_v52 = vpop.f32.mrf.mxu0  ;;  %v572_v53 = vpop.f32.mrf.mxu1 }
  0xfb   : > { %1141 = vst [vmem:[%s4644_s16 + $0x3a8] sm:$0xff] %v572_v53 }
  0xfc   : > { %v4671_v27 = vpop.f32.mrf.mxu0  ;;  %v574_v57 = vpop.f32.mrf.mxu1 }
  0xfd   : > { %1142 = vst [vmem:[%s4644_s16 + $0x3b0] sm:$0xff] %v574_v57 }
  0xfe   : > { %v4674_v58 = vpop.f32.mrf.mxu0  ;;  %v578_v62 = vpop.f32.mrf.mxu1  ;;  %3826 = vmatmul.mubr.msk.bf16.gmra.mxu1 %vm421_vm1, %v4668_v24  ;;  %3835 = vmatmul.mubr.msk.bf16.gmra.mxu0 %vm421_vm1, %v4668_v24 }
  0xff   : > { %1150 = vst [vmem:[%s4644_s16 + $0x3f0] sm:$0xff] %v578_v62  ;;  %1594 = vmatprep.mubr.bf16.mxu1 %v5993_v0  ;;  %1707 = vmatprep.mubr.bf16.mxu0 %v5993_v0 }
 0x100   : > { %v4683_v63 = vpop.f32.mrf.mxu0  ;;  %v580_v2 = vpop.f32.mrf.mxu1 }
 0x101   : > { %1151 = vst [vmem:[%s4644_s16 + $0x3f8] sm:$0xff] %v580_v2 }
 0x102   : > { %v4686_v8 = vpop.f32.mrf.mxu0  ;;  %v582_v16 = vpop.f32.mrf.mxu1 }
 0x103   : > { %1159 = vst [vmem:[%s4644_s16 + $0x438] sm:$0xff] %v582_v16 }
 0x104   : > { %v4689_v17 = vpop.f32.mrf.mxu0  ;;  %v584_v32 = vpop.f32.mrf.mxu1 }
 0x105   : > { %1160 = vst [vmem:[%s4644_s16 + $0x440] sm:$0xff] %v584_v32 }
 0x106   : > { %v4692_v34 = vpop.f32.mrf.mxu0  ;;  %v4694_v40 = vpop.f32.mrf.mxu1  ;;  %3837 = vmatmul.mubr.msk.bf16.vlgmr.msra.gmra.mxu1 %vm421_vm1, %v4518_v56  ;;  %3846 = vmatmul.mubr.msk.bf16.vlgmr.msra.gmra.mxu0 %vm421_vm1, %v4518_v56 }
 0x107   : > { %5998 = vst [vmem:[#allocation9_spill] sm:$0xff] %v4692_v34  ;;  %3959 = vmatpush3.bf16.msra.mxu1 %v4413_v50  ;;  %2354 = vmatpush1.bf16.msra.mxu0 %v4239_v6 }
 0x108   : > { %v4702_v41 = vpop.f32.mrf.mxu0  ;;  %v4704_v45 = vpop.f32.mrf.mxu1  ;;  %1604 = vmatprep.mubr.bf16.mxu1 %v5993_v0  ;;  %1717 = vmatprep.mubr.bf16.mxu0 %v5993_v0 }
 0x109   : > { %5999 = vst [vmem:[#allocation10_spill] sm:$0xff] %v4702_v41  ;;  %3960 = vmatprep.subr.bf16.mxu1 %v4415_v51  ;;  %2355 = vmatprep.subr.bf16.mxu0 %v4230_v4 }
 0x10a   : > { %v4710_v46 = vpop.f32.mrf.mxu0  ;;  %v4712_v12 = vpop.f32.mrf.mxu1 }
 0x10b   : > { %6000 = vst [vmem:[#allocation11_spill] sm:$0xff] %v4710_v46  ;;  %3961 = vmatpush3.bf16.msra.mxu1 %v4415_v51  ;;  %2356 = vmatpush1.bf16.msra.mxu0 %v4232_v5 }
 0x10c   : > { %v4716_v6 = vpop.f32.mrf.mxu0  ;;  %v4718_v49 = vpop.f32.mrf.mxu1  ;;  %3871 = vmatprep.subr.msk.bf16.mxu1 %vm446_vm0, %v4255_v13  ;;  %3880 = vmatprep.subr.msk.bf16.mxu0 %vm446_vm0, %v4259_v14 }
 0x10d   : > { %6001 = vst [vmem:[#allocation12_spill] sm:$0xff] %v4716_v6 }
 0x10e   : > { %v4724_v53 = vpop.f32.mrf.mxu0  ;;  %v4726_v4 = vpop.f32.mrf.mxu1  ;;  %3838 = vmatmul.mubr.msk.bf16.gmra.mxu1 %vm421_vm1, %v4540_v61  ;;  %3847 = vmatmul.mubr.msk.bf16.gmra.mxu0 %vm421_vm1, %v4540_v61 }
 0x10f   : > { %6002 = vst [vmem:[#allocation13_spill] sm:$0xff] %v4724_v53  ;;  %1614 = vmatprep.mubr.bf16.mxu1 %v5993_v0  ;;  %1727 = vmatprep.mubr.bf16.mxu0 %v5993_v0 }
 0x110   : > { %v4734_v5 = vpop.f32.mrf.mxu0  ;;  %v4736_v13 = vpop.f32.mrf.mxu1 }
 0x111   : > { %6003 = vst [vmem:[#allocation14_spill] sm:$0xff] %v4734_v5 }
 0x112   : > { %v4738_v57 = vpop.f32.mrf.mxu0  ;;  %v4740_v14 = vpop.f32.mrf.mxu1 }
 0x113   : > { %6004 = vst [vmem:[#allocation15_spill] sm:$0xff] %v4738_v57 }
 0x114   : > { %v4742_v62 = vpop.f32.mrf.mxu0  ;;  %v4744_v2 = vpop.f32.mrf.mxu1 }
 0x115   : > { %6005 = vst [vmem:[#allocation16_spill] sm:$0xff] %v4742_v62 }
 0x116   : > { %v4746_v16 = vpop.f32.mrf.mxu0  ;;  %v4748_v32 = vpop.f32.mrf.mxu1  ;;  %3839 = vmatmul.mubr.msk.bf16.gmra.mxu1 %vm421_vm1, %v4564_v7  ;;  %3848 = vmatmul.mubr.msk.bf16.gmra.mxu0 %vm421_vm1, %v4564_v7 }
 0x117   : > { %6006 = vst [vmem:[#allocation17_spill] sm:$0xff] %v4746_v16  ;;  %6007 = vst [vmem:[#allocation18_spill] sm:$0xff] %v4748_v32  ;;  %1624 = vmatprep.mubr.bf16.mxu1 %v5993_v0  ;;  %1737 = vmatprep.mubr.bf16.mxu0 %v5993_v0 }
 0x118   : > { %v4756_v57 = vpop.f32.mrf.mxu0  ;;  %v4758_v5 = vpop.f32.mrf.mxu1 }
 0x119   : > { %6008 = vst [vmem:[#allocation19_spill] sm:$0xff] %v4756_v57  ;;  %6009 = vst [vmem:[#allocation20_spill] sm:$0xff] %v4758_v5 }
 0x11a   : > { %v4760_v62 = vpop.f32.mrf.mxu0  ;;  %v4762_v53 = vpop.f32.mrf.mxu1 }
 0x11b   : > { %6010 = vst [vmem:[#allocation21_spill] sm:$0xff] %v4760_v62  ;;  %6011 = vst [vmem:[#allocation22_spill] sm:$0xff] %v4762_v53 }
 0x11c   : > { %v4764_v16 = vpop.f32.mrf.mxu0  ;;  %v4766_v6 = vpop.f32.mrf.mxu1 }
 0x11d   : > { %6012 = vst [vmem:[#allocation23_spill] sm:$0xff] %v4764_v16  ;;  %6013 = vst [vmem:[#allocation24_spill] sm:$0xff] %v4766_v6 }
 0x11e   : > { %v4768_v46 = vpop.f32.mrf.mxu0  ;;  %v4770_v41 = vpop.f32.mrf.mxu1  ;;  %3840 = vmatmul.mubr.msk.bf16.gmra.mxu1 %vm421_vm1, %v4582_v15  ;;  %3849 = vmatmul.mubr.msk.bf16.gmra.mxu0 %vm421_vm1, %v4582_v15 }
 0x11f   : > { %6014 = vst [vmem:[#allocation25_spill] sm:$0xff] %v4768_v46  ;;  %6015 = vst [vmem:[#allocation26_spill] sm:$0xff] %v4770_v41  ;;  %1634 = vmatprep.mubr.bf16.mxu1 %v5993_v0  ;;  %1747 = vmatprep.mubr.bf16.mxu0 %v5993_v0 }
 0x120   : > { %v4778_v62 = vpop.f32.mrf.mxu0  ;;  %v4780_v16 = vpop.f32.mrf.mxu1 }
 0x121   : > { %6016 = vst [vmem:[#allocation27_spill] sm:$0xff] %v4778_v62  ;;  %6017 = vst [vmem:[#allocation28_spill] sm:$0xff] %v4780_v16 }
 0x122   : > { %v4782_v57 = vpop.f32.mrf.mxu0  ;;  %v4784_v46 = vpop.f32.mrf.mxu1 }
 0x123   : > { %6018 = vst [vmem:[#allocation29_spill] sm:$0xff] %v4782_v57  ;;  %6019 = vst [vmem:[#allocation30_spill] sm:$0xff] %v4784_v46 }
 0x124   : > { %v4786_v41 = vpop.f32.mrf.mxu0  ;;  %v4788_v6 = vpop.f32.mrf.mxu1 }
 0x125   : > { %6020 = vst [vmem:[#allocation31_spill] sm:$0xff] %v4786_v41  ;;  %6021 = vst [vmem:[#allocation32_spill] sm:$0xff] %v4788_v6 }
 0x126   : > { %v4790_v53 = vpop.f32.mrf.mxu1  ;;  %v734_v5 = vpop.f32.mrf.mxu0  ;;  %3841 = vmatmul.mubr.msk.bf16.gmra.mxu1 %vm421_vm1, %v4600_v25  ;;  %3850 = vmatmul.mubr.msk.bf16.gmra.mxu0 %vm421_vm1, %v4600_v25 }
 0x127   : > { %6022 = vst [vmem:[#allocation33_spill] sm:$0xff] %v4790_v53  ;;  %1027 = vst [vmem:[%s4644_s16 + $0x20] sm:$0xff] %v734_v5  ;;  %1644 = vmatprep.mubr.bf16.mxu1 %v5993_v0  ;;  %1757 = vmatprep.mubr.bf16.mxu0 %v5993_v0 }
 0x128   : > { %v4799_v57 = vpop.f32.mrf.mxu1  ;;  %v736_v41 = vpop.f32.mrf.mxu0 }
 0x129   : > { %6023 = vst [vmem:[#allocation34_spill] sm:$0xff] %v4799_v57  ;;  %1028 = vst [vmem:[%s4644_s16 + $0x28] sm:$0xff] %v736_v41 }
 0x12a   : > { %v4802_v62 = vpop.f32.mrf.mxu1  ;;  %v738_v53 = vpop.f32.mrf.mxu0 }
 0x12b   : > { %6024 = vst [vmem:[#allocation35_spill] sm:$0xff] %v4802_v62  ;;  %1037 = vst [vmem:[%s4644_s16 + $0x68] sm:$0xff] %v738_v53 }
 0x12c   : > { %v4805_v6 = vpop.f32.mrf.mxu1  ;;  %v740_v46 = vpop.f32.mrf.mxu0 }
 0x12d   : > { %6025 = vst [vmem:[#allocation36_spill] sm:$0xff] %v4805_v6  ;;  %1038 = vst [vmem:[%s4644_s16 + $0x70] sm:$0xff] %v740_v46 }
 0x12e   : > { %v4808_v5 = vpop.f32.mrf.mxu1  ;;  %v744_v16 = vpop.f32.mrf.mxu0  ;;  %3842 = vmatmul.mubr.msk.bf16.gmra.mxu1 %vm421_vm1, %v4618_v37  ;;  %3851 = vmatmul.mubr.msk.bf16.gmra.mxu0 %vm421_vm1, %v4618_v37 }
 0x12f   : > { %6026 = vst [vmem:[#allocation37_spill] sm:$0xff] %v4808_v5  ;;  %1046 = vst [vmem:[%s4644_s16 + $0xb0] sm:$0xff] %v744_v16  ;;  %1654 = vmatprep.mubr.bf16.mxu1 %v5993_v0  ;;  %1767 = vmatprep.mubr.bf16.mxu0 %v5993_v0 }
 0x130   : > { %v4817_v41 = vpop.f32.mrf.mxu1  ;;  %v746_v53 = vpop.f32.mrf.mxu0 }
 0x131   : > { %6027 = vst [vmem:[#allocation38_spill] sm:$0xff] %v4817_v41  ;;  %1047 = vst [vmem:[%s4644_s16 + $0xb8] sm:$0xff] %v746_v53 }
 0x132   : > { %v4820_v46 = vpop.f32.mrf.mxu1  ;;  %v748_v5 = vpop.f32.mrf.mxu0 }
 0x133   : > { %6028 = vst [vmem:[#allocation39_spill] sm:$0xff] %v4820_v46  ;;  %1055 = vst [vmem:[%s4644_s16 + $0xf8] sm:$0xff] %v748_v5  ;;  %v313_v46 = vunpack.c.h.bf16 %v4518_v56 }
 0x134   : > { %v4823_v6 = vpop.f32.mrf.mxu1  ;;  %v750_v62 = vpop.f32.mrf.mxu0 }
 0x135   : > { %6029 = vst [vmem:[#allocation40_spill] sm:$0xff] %v4823_v6  ;;  %1056 = vst [vmem:[%s4644_s16 + $0x100] sm:$0xff] %v750_v62  ;;  %v312_v6 = vunpack.c.l.bf16 %v4518_v56 }
 0x136   : > { %v4826_v16 = vpop.f32.mrf.mxu1  ;;  %v754_v57 = vpop.f32.mrf.mxu0  ;;  %3843 = vmatmul.mubr.msk.bf16.gmra.mxu1 %vm421_vm1, %v4637_v18  ;;  %3852 = vmatmul.mubr.msk.bf16.gmra.mxu0 %vm421_vm1, %v4637_v18 }
 0x137   : > { %6030 = vst [vmem:[#allocation41_spill] sm:$0xff] %v4826_v16  ;;  %1064 = vst [vmem:[%s4644_s16 + $0x140] sm:$0xff] %v754_v57  ;;  %1664 = vmatprep.mubr.bf16.mxu1 %v5993_v0  ;;  %1777 = vmatprep.mubr.bf16.mxu0 %v5993_v0 }
 0x138   : > { %v4835_v5 = vpop.f32.mrf.mxu1  ;;  %v756_v53 = vpop.f32.mrf.mxu0 }
 0x139   : > { %6031 = vst [vmem:[#allocation42_spill] sm:$0xff] %v4835_v5  ;;  %1065 = vst [vmem:[%s4644_s16 + $0x148] sm:$0xff] %v756_v53  ;;  %v328_v53 = vsub.f32 %v4509_v54, %v312_v6  ;;  %v314_v54 = vunpack.c.l.bf16 %v4540_v61 }
 0x13a   : > { %v4838_v62 = vpop.f32.mrf.mxu1  ;;  %v758_v16 = vpop.f32.mrf.mxu0 }
 0x13b   : > { %6032 = vst [vmem:[#allocation43_spill] sm:$0xff] %v4838_v62  ;;  %1073 = vst [vmem:[%s4644_s16 + $0x188] sm:$0xff] %v758_v16  ;;  %v329_v62 = vsub.f32 %v4512_v55, %v313_v46  ;;  %v6035_v16 = vmov 0   ;;  %v315_v55 = vunpack.c.h.bf16 %v4540_v61 }
 0x13c   : > { %v4843_v41 = vpop.f32.mrf.mxu1  ;;  %v760_v57 = vpop.f32.mrf.mxu0 }
 0x13d   : > { %6033 = vst [vmem:[#allocation44_spill] sm:$0xff] %v4843_v41  ;;  %1074 = vst [vmem:[%s4644_s16 + $0x190] sm:$0xff] %v760_v57  ;;  %v4863_v34 = vpack.c.bf16 %v329_v62, %v328_v53  ;;  %v331_v62 = vsub.f32 %v4530_v60, %v315_v55 }
 0x13e   : > { %v4846_v32 = vpop.f32.mrf.mxu1  ;;  %v764_v0 = vpop.f32.mrf.mxu0  ;;  %3844 = vmatmul.mubr.msk.bf16.gmra.mxu1 %vm421_vm1, %v4668_v24  ;;  %3853 = vmatmul.mubr.msk.bf16.gmra.mxu0 %vm421_vm1, %v4668_v24 }
 0x13f   : > { %6034 = vst [vmem:[#allocation45_spill] sm:$0xff] %v4846_v32  ;;  %1082 = vst [vmem:[%s4644_s16 + $0x1d0] sm:$0xff] %v764_v0  ;;  %3962 = vmatprep.mubr.msk.bf16.mxu1 %vm421_vm1, %v4518_v56  ;;  %2373 = vmatprep.mubr.bf16.mxu0 %v6035_v16 }
 0x140   : > { %v4858_v57 = vpop.f32.mrf.mxu1  ;;  %v766_v32 = vpop.f32.mrf.mxu0 }
 0x141   : > { %1083 = vst [vmem:[%s4644_s16 + $0x1d8] sm:$0xff] %v766_v32  ;;  %v330_v32 = vsub.f32 %v4527_v59, %v314_v54 }
 0x142   : > { %v4861_v41 = vpop.f32.mrf.mxu1  ;;  %v768_v5 = vpop.f32.mrf.mxu0 }
 0x143   : > { %1091 = vst [vmem:[%s4644_s16 + $0x218] sm:$0xff] %v768_v5 }
 0x144   : > { %v4868_v0 = vpop.f32.mrf.mxu1  ;;  %v770_v56 = vpop.f32.mrf.mxu0 }
 0x145   : > { %1092 = vst [vmem:[%s4644_s16 + $0x220] sm:$0xff] %v770_v56 }
 0x146   : > { %v774_v6 = vpop.f32.mrf.mxu0  ;;  %v4871_v46 = vpop.f32.mrf.mxu1  ;;  %3963 = vmatmul.mubr.msk.bf16.vlgmr.msra.gmra.mxu1 %vm421_vm1, %v4540_v61  ;;  %3863 = vmatmul.mubr.msk.bf16.vlgmr.msra.gmra.mxu0 %vm421_vm1, %v4863_v34  ;;  %v317_v61 = vunpack.c.h.bf16 %v4564_v7 }
 0x147   : > { %1100 = vst [vmem:[%s4644_s16 + $0x260] sm:$0xff] %v774_v6  ;;  %2467 = vmatpush1.bf16.msra.mxu1 %v4276_v19  ;;  %2580 = vmatpush1.bf16.msra.mxu0 %v4279_v20  ;;  %v4892_v19 = vpack.c.bf16 %v331_v62, %v330_v32  ;;  %v316_v20 = vunpack.c.l.bf16 %v4564_v7 }
 0x148   : > { %v776_v5 = vpop.f32.mrf.mxu0  ;;  %v4882_v53 = vpop.f32.mrf.mxu1  ;;  %3966 = vmatprep.mubr.msk.bf16.mxu1 %vm421_vm1, %v4564_v7  ;;  %2383 = vmatprep.mubr.bf16.mxu0 %v6035_v16 }
 0x149   : > { %1101 = vst [vmem:[%s4644_s16 + $0x268] sm:$0xff] %v776_v5  ;;  %2468 = vmatprep.subr.bf16.mxu1 %v4281_v21  ;;  %2581 = vmatprep.subr.bf16.mxu0 %v4292_v26 }
 0x14a   : > { %v778_v59 = vpop.f32.mrf.mxu0  ;;  %v4890_v60 = vpop.f32.mrf.mxu1 }
 0x14b   : > { %1109 = vst [vmem:[%s4644_s16 + $0x2a8] sm:$0xff] %v778_v59  ;;  %2469 = vmatpush1.bf16.msra.mxu1 %v4301_v28  ;;  %2582 = vmatpush1.bf16.msra.mxu0 %v4305_v29  ;;  %v332_v28 = vsub.f32 %v4555_v1, %v316_v20  ;;  %v333_v29 = vsub.f32 %v4558_v3, %v317_v61  ;;  %v318_v1 = vunpack.c.l.bf16 %v4582_v15  ;;  %v319_v3 = vunpack.c.h.bf16 %v4582_v15 }
 0x14c   : > { %v780_v54 = vpop.f32.mrf.mxu0  ;;  %v4899_v21 = vpop.f32.mrf.mxu1  ;;  %3889 = vmatprep.subr.msk.bf16.mxu1 %vm446_vm0, %v4309_v30  ;;  %4004 = vmatprep.subr.msk.bf16.mxu0 %vm446_vm0, %v4311_v31 }
 0x14d   : > { %1110 = vst [vmem:[%s4644_s16 + $0x2b0] sm:$0xff] %v780_v54  ;;  %v4920_v6 = vpack.c.bf16 %v333_v29, %v332_v28  ;;  %v334_v20 = vsub.f32 %v4573_v9, %v318_v1  ;;  %v321_v28 = vunpack.c.h.bf16 %v4600_v25 }
 0x14e   : > { %v784_v26 = vpop.f32.mrf.mxu0  ;;  %v857_v55 = vpop.f32.mrf.mxu1  ;;  %3967 = vmatmul.mubr.msk.bf16.gmra.mxu1 %vm421_vm1, %v4582_v15  ;;  %3864 = vmatmul.mubr.msk.bf16.gmra.mxu0 %vm421_vm1, %v4892_v19  ;;  %v335_v15 = vsub.f32 %v4576_v10, %v319_v3  ;;  %v320_v10 = vunpack.c.l.bf16 %v4600_v25 }
 0x14f   : > { %1118 = vst [vmem:[%s4644_s16 + $0x2f0] sm:$0xff] %v784_v26  ;;  %1048 = vst [vmem:[%s4644_s16 + $0xc0] sm:$0xff] %v857_v55  ;;  %3970 = vmatprep.mubr.msk.bf16.mxu1 %vm421_vm1, %v4600_v25  ;;  %2393 = vmatprep.mubr.bf16.mxu0 %v6035_v16  ;;  %v337_v25 = vsub.f32 %v4594_v23, %v321_v28  ;;  %v323_v23 = vunpack.c.h.bf16 %v4618_v37 }
 0x150   : > { %v786_v30 = vpop.f32.mrf.mxu0  ;;  %v4917_v31 = vpop.f32.mrf.mxu1  ;;  %v4941_v9 = vpack.c.bf16 %v335_v15, %v334_v20  ;;  %v336_v1 = vsub.f32 %v4591_v22, %v320_v10  ;;  %v322_v22 = vunpack.c.l.bf16 %v4618_v37 }
 0x151   : > { %1119 = vst [vmem:[%s4644_s16 + $0x2f8] sm:$0xff] %v786_v30 }
 0x152   : > { %v788_v7 = vpop.f32.mrf.mxu0  ;;  %v861_v56 = vpop.f32.mrf.mxu1 }
 0x153   : > { %1127 = vst [vmem:[%s4644_s16 + $0x338] sm:$0xff] %v788_v7  ;;  %1057 = vst [vmem:[%s4644_s16 + $0x108] sm:$0xff] %v861_v56 }
 0x154   : > { %v790_v32 = vpop.f32.mrf.mxu0  ;;  %v863_v62 = vpop.f32.mrf.mxu1 }
 0x155   : > { %1128 = vst [vmem:[%s4644_s16 + $0x340] sm:$0xff] %v790_v32  ;;  %1058 = vst [vmem:[%s4644_s16 + $0x110] sm:$0xff] %v863_v62 }
 0x156   : > { %v794_v5 = vpop.f32.mrf.mxu0  ;;  %v867_v59 = vpop.f32.mrf.mxu1  ;;  %3971 = vmatmul.mubr.msk.bf16.gmra.mxu1 %vm421_vm1, %v4618_v37  ;;  %3865 = vmatmul.mubr.msk.bf16.gmra.mxu0 %vm421_vm1, %v4920_v6  ;;  %v339_v37 = vsub.f32 %v4612_v36, %v323_v23 }
 0x157   : > { %1136 = vst [vmem:[%s4644_s16 + $0x380] sm:$0xff] %v794_v5  ;;  %1066 = vst [vmem:[%s4644_s16 + $0x150] sm:$0xff] %v867_v59  ;;  %3974 = vmatprep.mubr.msk.bf16.mxu1 %vm421_vm1, %v4637_v18  ;;  %2403 = vmatprep.mubr.bf16.mxu0 %v6035_v16  ;;  %v4961_v59 = vpack.c.bf16 %v337_v25, %v336_v1 }
 0x158   : > { %v796_v61 = vpop.f32.mrf.mxu0  ;;  %v869_v54 = vpop.f32.mrf.mxu1 }
 0x159   : > { %1137 = vst [vmem:[%s4644_s16 + $0x388] sm:$0xff] %v796_v61  ;;  %1067 = vst [vmem:[%s4644_s16 + $0x158] sm:$0xff] %v869_v54 }
 0x15a   : > { %v798_v26 = vpop.f32.mrf.mxu0  ;;  %v871_v55 = vpop.f32.mrf.mxu1 }
 0x15b   : > { %1145 = vst [vmem:[%s4644_s16 + $0x3c8] sm:$0xff] %v798_v26  ;;  %1075 = vst [vmem:[%s4644_s16 + $0x198] sm:$0xff] %v871_v55  ;;  %v338_v26 = vsub.f32 %v4609_v35, %v322_v22 }
 0x15c   : > { %v800_v29 = vpop.f32.mrf.mxu0  ;;  %v873_v30 = vpop.f32.mrf.mxu1 }
 0x15d   : > { %1146 = vst [vmem:[%s4644_s16 + $0x3d0] sm:$0xff] %v800_v29  ;;  %1076 = vst [vmem:[%s4644_s16 + $0x1a0] sm:$0xff] %v873_v30  ;;  %v4985_v28 = vpack.c.bf16 %v339_v37, %v338_v26  ;;  %v325_v29 = vunpack.c.h.bf16 %v4637_v18 }
 0x15e   : > { %v804_v7 = vpop.f32.mrf.mxu0  ;;  %v877_v56 = vpop.f32.mrf.mxu1  ;;  %3975 = vmatmul.mubr.msk.bf16.gmra.mxu1 %vm421_vm1, %v4668_v24  ;;  %3866 = vmatmul.mubr.msk.bf16.gmra.mxu0 %vm421_vm1, %v4941_v9 }
 0x15f   : > { %1154 = vst [vmem:[%s4644_s16 + $0x410] sm:$0xff] %v804_v7  ;;  %1084 = vst [vmem:[%s4644_s16 + $0x1e0] sm:$0xff] %v877_v56  ;;  %2413 = vmatprep.mubr.bf16.mxu0 %v6035_v16  ;;  %2486 = vmatprep.mubr.bf16.mxu1 %v6035_v16 }
 0x160   : > { %v806_v3 = vpop.f32.mrf.mxu0  ;;  %v879_v32 = vpop.f32.mrf.mxu1 }
 0x161   : > { %1155 = vst [vmem:[%s4644_s16 + $0x418] sm:$0xff] %v806_v3  ;;  %1085 = vst [vmem:[%s4644_s16 + $0x1e8] sm:$0xff] %v879_v32 }
 0x162   : > { %v808_v62 = vpop.f32.mrf.mxu0  ;;  %v881_v5 = vpop.f32.mrf.mxu1 }
 0x163   : > { %1163 = vst [vmem:[%s4644_s16 + $0x458] sm:$0xff] %v808_v62  ;;  %1093 = vst [vmem:[%s4644_s16 + $0x228] sm:$0xff] %v881_v5  ;;  %v327_v62 = vunpack.c.h.bf16 %v4668_v24 }
 0x164   : > { %v810_v20 = vpop.f32.mrf.mxu0  ;;  %v883_v15 = vpop.f32.mrf.mxu1 }
 0x165   : > { %1164 = vst [vmem:[%s4644_s16 + $0x460] sm:$0xff] %v810_v20  ;;  %1094 = vst [vmem:[%s4644_s16 + $0x230] sm:$0xff] %v883_v15  ;;  %v343_v15 = vsub.f32 %v4656_v47, %v327_v62 }
 0x166   : > { %v887_v61 = vpop.f32.mrf.mxu1  ;;  %v3944_v54 = vpop.f32.mrf.mxu0  ;;  %3867 = vmatmul.mubr.msk.bf16.gmra.mxu0 %vm421_vm1, %v4961_v59  ;;  %3872 = vmatmul.mubr.msk.bf16.vlgmr.msra.gmra.mxu1 %vm421_vm1, %v4863_v34 }
 0x167   : > { %1102 = vst [vmem:[%s4644_s16 + $0x270] sm:$0xff] %v887_v61  ;;  %1050 = vst.msk [vmem:[%s4644_s16 + $0xd0] sm:$0xff] %vm1031_vm2, %v3944_v54  ;;  %2693 = vmatpush1.bf16.msra.mxu1 %v4346_v38  ;;  %2423 = vmatprep.mubr.bf16.mxu0 %v6035_v16  ;;  %v324_v38 = vunpack.c.l.bf16 %v4637_v18 }
 0x168   : > { %v889_v55 = vpop.f32.mrf.mxu1  ;;  %v960_v10 = vpop.f32.mrf.mxu0  ;;  %2496 = vmatprep.mubr.bf16.mxu1 %v6035_v16  ;;  %2694 = vmatprep.subr.bf16.mxu1 %v4348_v39 }
 0x169   : > { %1103 = vst [vmem:[%s4644_s16 + $0x278] sm:$0xff] %v889_v55  ;;  %1032 = vst.msk [vmem:[%s4644_s16 + $0x40] sm:$0xff] %vm1031_vm2, %v960_v10  ;;  %v340_v18 = vsub.f32 %v4627_v43, %v324_v38 }
 0x16a   : > { %v891_v35 = vpop.f32.mrf.mxu1  ;;  %v3945_v36 = vpop.f32.mrf.mxu0 }
 0x16b   : > { %1111 = vst [vmem:[%s4644_s16 + $0x2b8] sm:$0xff] %v891_v35  ;;  %1059 = vst.msk [vmem:[%s4644_s16 + $0x118] sm:$0xff] %vm1031_vm2, %v3945_v36  ;;  %2695 = vmatpush1.bf16.msra.mxu1 %v4362_v42  ;;  %v341_v42 = vsub.f32 %v4630_v44, %v325_v29  ;;  %v326_v44 = vunpack.c.l.bf16 %v4668_v24 }
 0x16c   : > { %v893_v30 = vpop.f32.mrf.mxu1  ;;  %v963_v39 = vpop.f32.mrf.mxu0 }
 0x16d   : > { %1112 = vst [vmem:[%s4644_s16 + $0x2c0] sm:$0xff] %v893_v30  ;;  %1041 = vst.msk [vmem:[%s4644_s16 + $0x88] sm:$0xff] %vm1031_vm2, %v963_v39  ;;  %v5010_v43 = vpack.c.bf16 %v341_v42, %v340_v18  ;;  %v342_v24 = vsub.f32 %v4653_v33, %v326_v44 }
 0x16e   : > { %v897_v7 = vpop.f32.mrf.mxu1  ;;  %v3948_v56 = vpop.f32.mrf.mxu0  ;;  %3868 = vmatmul.mubr.msk.bf16.gmra.mxu0 %vm421_vm1, %v4985_v28  ;;  %3873 = vmatmul.mubr.msk.bf16.gmra.mxu1 %vm421_vm1, %v4892_v19 }
 0x16f   : > { %1120 = vst [vmem:[%s4644_s16 + $0x300] sm:$0xff] %v897_v7  ;;  %1086 = vst.msk [vmem:[%s4644_s16 + $0x1f0] sm:$0xff] %vm1031_vm2, %v3948_v56  ;;  %2433 = vmatprep.mubr.bf16.mxu0 %v6035_v16  ;;  %2506 = vmatprep.mubr.bf16.mxu1 %v6035_v16  ;;  %v5034_v37 = vpack.c.bf16 %v343_v15, %v342_v24 }
 0x170   : > { %v899_v1 = vpop.f32.mrf.mxu1  ;;  %v976_v25 = vpop.f32.mrf.mxu0 }
 0x171   : > { %1121 = vst [vmem:[%s4644_s16 + $0x308] sm:$0xff] %v899_v1  ;;  %1068 = vst.msk [vmem:[%s4644_s16 + $0x160] sm:$0xff] %vm1031_vm2, %v976_v25 }
 0x172   : > { %v901_v3 = vpop.f32.mrf.mxu1  ;;  %v3949_v32 = vpop.f32.mrf.mxu0 }
 0x173   : > { %1129 = vst [vmem:[%s4644_s16 + $0x348] sm:$0xff] %v901_v3  ;;  %1095 = vst.msk [vmem:[%s4644_s16 + $0x238] sm:$0xff] %vm1031_vm2, %v3949_v32 }
 0x174   : > { %v903_v5 = vpop.f32.mrf.mxu1  ;;  %v979_v22 = vpop.f32.mrf.mxu0 }
 0x175   : > { %1130 = vst [vmem:[%s4644_s16 + $0x350] sm:$0xff] %v903_v5  ;;  %1077 = vst.msk [vmem:[%s4644_s16 + $0x1a8] sm:$0xff] %vm1031_vm2, %v979_v22  ;;  %v4060_v5 = vld [vmem:[#allocation3 + $0x20] ss:$36 sps:$4 sm:$0xff]  }
 0x176   : > { %v907_v23 = vpop.f32.mrf.mxu1  ;;  %v3952_v20 = vpop.f32.mrf.mxu0  ;;  %3869 = vmatmul.mubr.msk.bf16.gmra.mxu0 %vm421_vm1, %v5010_v43  ;;  %3874 = vmatmul.mubr.msk.bf16.gmra.mxu1 %vm421_vm1, %v4920_v6 }
 0x177   : > { %1138 = vst [vmem:[%s4644_s16 + $0x390] sm:$0xff] %v907_v23  ;;  %1122 = vst.msk [vmem:[%s4644_s16 + $0x310] sm:$0xff] %vm1031_vm2, %v3952_v20  ;;  %2443 = vmatprep.mubr.bf16.mxu0 %v6035_v16  ;;  %2516 = vmatprep.mubr.bf16.mxu1 %v6035_v16 }
 0x178   : > { %v909_v61 = vpop.f32.mrf.mxu1  ;;  %v992_v54 = vpop.f32.mrf.mxu0 }
 0x179   : > { %1139 = vst [vmem:[%s4644_s16 + $0x398] sm:$0xff] %v909_v61  ;;  %1104 = vst.msk [vmem:[%s4644_s16 + $0x280] sm:$0xff] %vm1031_vm2, %v992_v54 }
 0x17a   : > { %v911_v26 = vpop.f32.mrf.mxu1  ;;  %v3953_v33 = vpop.f32.mrf.mxu0 }
 0x17b   : > { %1147 = vst [vmem:[%s4644_s16 + $0x3d8] sm:$0xff] %v911_v26  ;;  %1131 = vst.msk [vmem:[%s4644_s16 + $0x358] sm:$0xff] %vm1031_vm2, %v3953_v33 }
 0x17c   : > { %v913_v47 = vpop.f32.mrf.mxu1  ;;  %v995_v55 = vpop.f32.mrf.mxu0 }
 0x17d   : > { %1148 = vst [vmem:[%s4644_s16 + $0x3e0] sm:$0xff] %v913_v47  ;;  %1113 = vst.msk [vmem:[%s4644_s16 + $0x2c8] sm:$0xff] %vm1031_vm2, %v995_v55 }
 0x17e   : > { %v917_v10 = vpop.f32.mrf.mxu1  ;;  %v3956_v35 = vpop.f32.mrf.mxu0  ;;  %3870 = vmatmul.mubr.msk.bf16.gmra.mxu0 %vm421_vm1, %v5034_v37  ;;  %3875 = vmatmul.mubr.msk.bf16.gmra.mxu1 %vm421_vm1, %v4941_v9 }
 0x17f   : > { %1156 = vst [vmem:[%s4644_s16 + $0x420] sm:$0xff] %v917_v10  ;;  %1158 = vst.msk [vmem:[%s4644_s16 + $0x430] sm:$0xff] %vm1031_vm2, %v3956_v35  ;;  %2526 = vmatprep.mubr.bf16.mxu1 %v6035_v16  ;;  %2599 = vmatprep.mubr.bf16.mxu0 %v6035_v16  ;;  %v6037_v10 = vld [vmem:[#allocation18_spill] sm:$0xff] }
 0x180   : > { %v919_v36 = vpop.f32.mrf.mxu1  ;;  %v1008_v38 = vpop.f32.mrf.mxu0 }
 0x181   : > { %1157 = vst [vmem:[%s4644_s16 + $0x428] sm:$0xff] %v919_v36  ;;  %1140 = vst.msk [vmem:[%s4644_s16 + $0x3a0] sm:$0xff] %vm1031_vm2, %v1008_v38  ;;  %v6038_v36 = vld [vmem:[#allocation10_spill] sm:$0xff] }
 0x182   : > { %v921_v29 = vpop.f32.mrf.mxu1  ;;  %v3957_v30 = vpop.f32.mrf.mxu0 }
 0x183   : > { %1165 = vst [vmem:[%s4644_s16 + $0x468] sm:$0xff] %v921_v29  ;;  %1167 = vst.msk [vmem:[%s4644_s16 + $0x478] sm:$0xff] %vm1031_vm2, %v3957_v30  ;;  %v6039_v29 = vld [vmem:[#allocation20_spill] sm:$0xff] }
 0x184   : > { %v923_v39 = vpop.f32.mrf.mxu1  ;;  %v1011_v7 = vpop.f32.mrf.mxu0 }
 0x185   : > { %1166 = vst [vmem:[%s4644_s16 + $0x470] sm:$0xff] %v923_v39  ;;  %1149 = vst.msk [vmem:[%s4644_s16 + $0x3e8] sm:$0xff] %vm1031_vm2, %v1011_v7 }
 0x186   : > { %v1370_v56 = vpop.f32.mrf.mxu1  ;;  %v1483_v18 = vpop.f32.mrf.mxu0  ;;  %3876 = vmatmul.mubr.msk.bf16.gmra.mxu1 %vm421_vm1, %v4961_v59  ;;  %3881 = vmatmul.mubr.msk.bf16.vlgmr.msra.gmra.mxu0 %vm421_vm1, %v4863_v34 }
 0x187   : > { %v1885_v42 = vadd.f32 %v1370_v56, %v4646_v11  ;;  %v1887_v1 = vadd.f32 %v1483_v18, %v4694_v40  ;;  %3979 = vmatpush3.bf16.msra.mxu0 %v4413_v50  ;;  %2536 = vmatprep.mubr.bf16.mxu1 %v6035_v16  ;;  %v6040_v56 = vld [vmem:[#allocation11_spill] sm:$0xff] }
 0x188   : > { %v1372_v25 = vpop.f32.mrf.mxu1  ;;  %v1485_v3 = vpop.f32.mrf.mxu0  ;;  %2609 = vmatprep.mubr.bf16.mxu0 %v6035_v16  ;;  %3980 = vmatprep.subr.bf16.mxu0 %v4415_v51 }
 0x189   : > { %2029 = vst [vmem:[%s4644_s16] sm:$0xff] %v1885_v42  ;;  %2031 = vst [vmem:[%s4644_s16 + $0x10] sm:$0xff] %v1887_v1  ;;  %v1886_v32 = vadd.f32 %v1372_v25, %v4661_v48  ;;  %v1888_v11 = vadd.f32 %v1485_v3, %v4704_v45  ;;  %v6041_v42 = vld [vmem:[#allocation22_spill] sm:$0xff] }
 0x18a   : > { %v1374_v44 = vpop.f32.mrf.mxu1  ;;  %v1487_v40 = vpop.f32.mrf.mxu0 }
 0x18b   : > { %2030 = vst [vmem:[%s4644_s16 + $0x8] sm:$0xff] %v1886_v32  ;;  %2032 = vst [vmem:[%s4644_s16 + $0x18] sm:$0xff] %v1888_v11  ;;  %v1894_v50 = vadd.f32 %v1374_v44, %v4664_v52  ;;  %v1896_v62 = vadd.f32 %v1487_v40, %v4712_v12  ;;  %3981 = vmatpush3.bf16.msra.mxu0 %v4060_v5  ;;  %v6042_v32 = vld [vmem:[#allocation12_spill] sm:$0xff]  ;;  %v6044_v5 = vld [vmem:[#allocation13_spill] sm:$0xff] }
 0x18c   : > { %v1376_v51 = vpop.f32.mrf.mxu1  ;;  %v1489_v22 = vpop.f32.mrf.mxu0  ;;  %v6043_v44 = vld [vmem:[#allocation24_spill] sm:$0xff] }
 0x18d   : > { %2038 = vst [vmem:[%s4644_s16 + $0x48] sm:$0xff] %v1894_v50  ;;  %2040 = vst [vmem:[%s4644_s16 + $0x58] sm:$0xff] %v1896_v62  ;;  %v1895_v48 = vadd.f32 %v1376_v51, %v4671_v27  ;;  %v1897_v45 = vadd.f32 %v1489_v22, %v4718_v49  ;;  %v6045_v22 = vld [vmem:[#allocation26_spill] sm:$0xff] }
 0x18e   : > { %v1380_v23 = vpop.f32.mrf.mxu1  ;;  %v1493_v20 = vpop.f32.mrf.mxu0  ;;  %3877 = vmatmul.mubr.msk.bf16.gmra.mxu1 %vm421_vm1, %v4985_v28  ;;  %3882 = vmatmul.mubr.msk.bf16.gmra.mxu0 %vm421_vm1, %v4892_v19 }
 0x18f   : > { %2039 = vst [vmem:[%s4644_s16 + $0x50] sm:$0xff] %v1895_v48  ;;  %2041 = vst [vmem:[%s4644_s16 + $0x60] sm:$0xff] %v1897_v45  ;;  %v1903_v52 = vadd.f32 %v1380_v23, %v4674_v58  ;;  %v1905_v12 = vadd.f32 %v1493_v20, %v4726_v4  ;;  %2546 = vmatprep.mubr.bf16.mxu1 %v6035_v16  ;;  %2619 = vmatprep.mubr.bf16.mxu0 %v6035_v16  ;;  %v6046_v20 = vld [vmem:[#allocation14_spill] sm:$0xff] }
 0x190   : > { %v1382_v27 = vpop.f32.mrf.mxu1  ;;  %v1495_v49 = vpop.f32.mrf.mxu0 }
 0x191   : > { %2047 = vst [vmem:[%s4644_s16 + $0x90] sm:$0xff] %v1903_v52  ;;  %2049 = vst [vmem:[%s4644_s16 + $0xa0] sm:$0xff] %v1905_v12  ;;  %v1904_v24 = vadd.f32 %v1382_v27, %v4683_v63  ;;  %v1906_v15 = vadd.f32 %v1495_v49, %v4736_v13  ;;  %v6047_v12 = vld [vmem:[#allocation28_spill] sm:$0xff] }
 0x192   : > { %v1384_v61 = vpop.f32.mrf.mxu1  ;;  %v1497_v54 = vpop.f32.mrf.mxu0 }
 0x193   : > { %2048 = vst [vmem:[%s4644_s16 + $0x98] sm:$0xff] %v1904_v24  ;;  %2050 = vst [vmem:[%s4644_s16 + $0xa8] sm:$0xff] %v1906_v15  ;;  %v1912_v58 = vadd.f32 %v1384_v61, %v4686_v8  ;;  %v1914_v4 = vadd.f32 %v1497_v54, %v4740_v14  ;;  %v6036_v8 = vld [vmem:[#allocation9_spill] sm:$0xff]  ;;  %v6048_v15 = vld [vmem:[#allocation15_spill] sm:$0xff] }
 0x194   : > { %v1386_v26 = vpop.f32.mrf.mxu1  ;;  %v1499_v33 = vpop.f32.mrf.mxu0  ;;  %v6049_v54 = vld [vmem:[#allocation30_spill] sm:$0xff] }
 0x195   : > { %2056 = vst [vmem:[%s4644_s16 + $0xd8] sm:$0xff] %v1912_v58  ;;  %2058 = vst [vmem:[%s4644_s16 + $0xe8] sm:$0xff] %v1914_v4  ;;  %v1913_v63 = vadd.f32 %v1386_v26, %v4689_v17  ;;  %v1915_v13 = vadd.f32 %v1499_v33, %v4744_v2  ;;  %v6050_v33 = vld [vmem:[#allocation16_spill] sm:$0xff] }
 0x196   : > { %v1390_v47 = vpop.f32.mrf.mxu1  ;;  %v1503_v55 = vpop.f32.mrf.mxu0  ;;  %3878 = vmatmul.mubr.msk.bf16.gmra.mxu1 %vm421_vm1, %v5010_v43  ;;  %3883 = vmatmul.mubr.msk.bf16.gmra.mxu0 %vm421_vm1, %v4920_v6 }
 0x197   : > { %2057 = vst [vmem:[%s4644_s16 + $0xe0] sm:$0xff] %v1913_v63  ;;  %2059 = vst [vmem:[%s4644_s16 + $0xf0] sm:$0xff] %v1915_v13  ;;  %v1921_v14 = vadd.f32 %v1390_v47, %v6036_v8  ;;  %v1923_v35 = vadd.f32 %v1503_v55, %v6037_v10  ;;  %2556 = vmatprep.mubr.bf16.mxu1 %v6035_v16  ;;  %2629 = vmatprep.mubr.bf16.mxu0 %v6035_v16  ;;  %v6051_v13 = vld [vmem:[#allocation32_spill] sm:$0xff] }
 0x198   : > { %v1392_v17 = vpop.f32.mrf.mxu1  ;;  %v1505_v2 = vpop.f32.mrf.mxu0 }
 0x199   : > { %2065 = vst [vmem:[%s4644_s16 + $0x120] sm:$0xff] %v1921_v14  ;;  %2067 = vst [vmem:[%s4644_s16 + $0x130] sm:$0xff] %v1923_v35  ;;  %v1922_v38 = vadd.f32 %v1392_v17, %v6038_v36  ;;  %v1924_v30 = vadd.f32 %v1505_v2, %v6039_v29  ;;  %v6052_v14 = vld [vmem:[#allocation17_spill] sm:$0xff] }
 0x19a   : > { %v1394_v39 = vpop.f32.mrf.mxu1  ;;  %v1507_v7 = vpop.f32.mrf.mxu0  ;;  %v6053_v35 = vld [vmem:[#allocation33_spill] sm:$0xff] }
 0x19b   : > { %2066 = vst [vmem:[%s4644_s16 + $0x128] sm:$0xff] %v1922_v38  ;;  %2068 = vst [vmem:[%s4644_s16 + $0x138] sm:$0xff] %v1924_v30  ;;  %v1930_v18 = vadd.f32 %v1394_v39, %v6040_v56  ;;  %v1932_v1 = vadd.f32 %v1507_v7, %v6041_v42  ;;  %v6054_v38 = vld [vmem:[#allocation19_spill] sm:$0xff]  ;;  %v6055_v30 = vld [vmem:[#allocation34_spill] sm:$0xff] }
 0x19c   : > { %v1396_v25 = vpop.f32.mrf.mxu1  ;;  %v1509_v3 = vpop.f32.mrf.mxu0 }
 0x19d   : > { %2074 = vst [vmem:[%s4644_s16 + $0x168] sm:$0xff] %v1930_v18  ;;  %2076 = vst [vmem:[%s4644_s16 + $0x178] sm:$0xff] %v1932_v1  ;;  %v1931_v11 = vadd.f32 %v1396_v25, %v6042_v32  ;;  %v1933_v40 = vadd.f32 %v1509_v3, %v6043_v44  ;;  %v6056_v18 = vld [vmem:[#allocation21_spill] sm:$0xff]  ;;  %v6057_v1 = vld [vmem:[#allocation35_spill] sm:$0xff] }
 0x19e   : > { %v1400_v50 = vpop.f32.mrf.mxu1  ;;  %v1513_v62 = vpop.f32.mrf.mxu0  ;;  %3879 = vmatmul.mubr.msk.bf16.gmra.mxu1 %vm421_vm1, %v5034_v37  ;;  %3884 = vmatmul.mubr.msk.bf16.gmra.mxu0 %vm421_vm1, %v4941_v9 }
 0x19f   : > { %2075 = vst [vmem:[%s4644_s16 + $0x170] sm:$0xff] %v1931_v11  ;;  %2077 = vst [vmem:[%s4644_s16 + $0x180] sm:$0xff] %v1933_v40  ;;  %v1939_v51 = vadd.f32 %v1400_v50, %v6044_v5  ;;  %v1941_v48 = vadd.f32 %v1513_v62, %v6045_v22  ;;  %2639 = vmatprep.mubr.bf16.mxu0 %v6035_v16  ;;  %2712 = vmatprep.mubr.bf16.mxu1 %v6035_v16  ;;  %v6058_v11 = vld [vmem:[#allocation23_spill] sm:$0xff]  ;;  %v6059_v40 = vld [vmem:[#allocation36_spill] sm:$0xff] }
 0x1a0   : > { %v1402_v45 = vpop.f32.mrf.mxu1  ;;  %v1515_v23 = vpop.f32.mrf.mxu0 }
 0x1a1   : > { %2083 = vst [vmem:[%s4644_s16 + $0x1b0] sm:$0xff] %v1939_v51  ;;  %2085 = vst [vmem:[%s4644_s16 + $0x1c0] sm:$0xff] %v1941_v48  ;;  %v1940_v52 = vadd.f32 %v1402_v45, %v6046_v20  ;;  %v1942_v27 = vadd.f32 %v1515_v23, %v6047_v12  ;;  %v6060_v51 = vld [vmem:[#allocation25_spill] sm:$0xff] }
 0x1a2   : > { %v1404_v49 = vpop.f32.mrf.mxu1  ;;  %v1517_v24 = vpop.f32.mrf.mxu0  ;;  %v6061_v48 = vld [vmem:[#allocation37_spill] sm:$0xff] }
 0x1a3   : > { %2084 = vst [vmem:[%s4644_s16 + $0x1b8] sm:$0xff] %v1940_v52  ;;  %2086 = vst [vmem:[%s4644_s16 + $0x1c8] sm:$0xff] %v1942_v27  ;;  %v1948_v61 = vadd.f32 %v1404_v49, %v6048_v15  ;;  %v1950_v58 = vadd.f32 %v1517_v24, %v6049_v54  ;;  %v6062_v52 = vld [vmem:[#allocation27_spill] sm:$0xff]  ;;  %v6063_v27 = vld [vmem:[#allocation38_spill] sm:$0xff] }
 0x1a4   : > { %v1406_v4 = vpop.f32.mrf.mxu1  ;;  %v1519_v26 = vpop.f32.mrf.mxu0 }
 0x1a5   : > { %2092 = vst [vmem:[%s4644_s16 + $0x1f8] sm:$0xff] %v1948_v61  ;;  %2094 = vst [vmem:[%s4644_s16 + $0x208] sm:$0xff] %v1950_v58  ;;  %v1949_v63 = vadd.f32 %v1406_v4, %v6050_v33  ;;  %v1951_v47 = vadd.f32 %v1519_v26, %v6051_v13  ;;  %v6064_v61 = vld [vmem:[#allocation29_spill] sm:$0xff]  ;;  %v6065_v58 = vld [vmem:[#allocation39_spill] sm:$0xff] }
 0x1a6   : > { %v1410_v55 = vpop.f32.mrf.mxu1  ;;  %v1523_v8 = vpop.f32.mrf.mxu0  ;;  %3885 = vmatmul.mubr.msk.bf16.gmra.mxu0 %vm421_vm1, %v4961_v59  ;;  %3890 = vmatmul.mubr.msk.bf16.vlgmr.msra.gmra.mxu1 %vm421_vm1, %v4863_v34 }
 0x1a7   : > { %2093 = vst [vmem:[%s4644_s16 + $0x200] sm:$0xff] %v1949_v63  ;;  %2095 = vst [vmem:[%s4644_s16 + $0x210] sm:$0xff] %v1951_v47  ;;  %v1957_v10 = vadd.f32 %v1410_v55, %v6052_v14  ;;  %v1959_v17 = vadd.f32 %v1523_v8, %v6053_v35  ;;  %2649 = vmatprep.mubr.bf16.mxu0 %v6035_v16  ;;  %2722 = vmatprep.mubr.bf16.mxu1 %v6035_v16  ;;  %v6066_v63 = vld [vmem:[#allocation31_spill] sm:$0xff]  ;;  %v6067_v47 = vld [vmem:[#allocation40_spill] sm:$0xff] }
 0x1a8   : > { %v1412_v2 = vpop.f32.mrf.mxu1  ;;  %v1525_v36 = vpop.f32.mrf.mxu0  ;;  %v1276_v8 = vld [vmem:[%s4644_s16 + $0x360] sm:$0xff] }
 0x1a9   : > { %2101 = vst [vmem:[%s4644_s16 + $0x240] sm:$0xff] %v1957_v10  ;;  %2103 = vst [vmem:[%s4644_s16 + $0x250] sm:$0xff] %v1959_v17  ;;  %v1958_v29 = vadd.f32 %v1412_v2, %v6054_v38  ;;  %v1960_v39 = vadd.f32 %v1525_v36, %v6055_v30  ;;  %v6068_v17 = vld [vmem:[#allocation41_spill] sm:$0xff]  ;;  %v1277_v36 = vld [vmem:[%s4644_s16 + $0x368] sm:$0xff] }
 0x1aa   : > { %v1414_v7 = vpop.f32.mrf.mxu1  ;;  %v1527_v56 = vpop.f32.mrf.mxu0 }
 0x1ab   : > { %2102 = vst [vmem:[%s4644_s16 + $0x248] sm:$0xff] %v1958_v29  ;;  %2104 = vst [vmem:[%s4644_s16 + $0x258] sm:$0xff] %v1960_v39  ;;  %v1966_v42 = vadd.f32 %v1414_v7, %v6056_v18  ;;  %v1968_v25 = vadd.f32 %v1527_v56, %v6057_v1  ;;  %v6069_v39 = vld [vmem:[#allocation42_spill] sm:$0xff]  ;;  %v1285_v56 = vld [vmem:[%s4644_s16 + $0x3a8] sm:$0xff] }
 0x1ac   : > { %v1416_v3 = vpop.f32.mrf.mxu1  ;;  %v1529_v32 = vpop.f32.mrf.mxu0 }
 0x1ad   : > { %2110 = vst [vmem:[%s4644_s16 + $0x288] sm:$0xff] %v1966_v42  ;;  %2112 = vst [vmem:[%s4644_s16 + $0x298] sm:$0xff] %v1968_v25  ;;  %v1967_v44 = vadd.f32 %v1416_v3, %v6058_v11  ;;  %v1969_v50 = vadd.f32 %v1529_v32, %v6059_v40  ;;  %v6070_v25 = vld [vmem:[#allocation43_spill] sm:$0xff]  ;;  %v1286_v32 = vld [vmem:[%s4644_s16 + $0x3b0] sm:$0xff] }
 0x1ae   : > { %v1420_v62 = vpop.f32.mrf.mxu1  ;;  %v1533_v5 = vpop.f32.mrf.mxu0  ;;  %3886 = vmatmul.mubr.msk.bf16.gmra.mxu0 %vm421_vm1, %v4985_v28  ;;  %3891 = vmatmul.mubr.msk.bf16.gmra.mxu1 %vm421_vm1, %v4892_v19 }
 0x1af   : > { %2111 = vst [vmem:[%s4644_s16 + $0x290] sm:$0xff] %v1967_v44  ;;  %2113 = vst [vmem:[%s4644_s16 + $0x2a0] sm:$0xff] %v1969_v50  ;;  %v1975_v22 = vadd.f32 %v1420_v62, %v6060_v51  ;;  %v1977_v45 = vadd.f32 %v1533_v5, %v6061_v48  ;;  %2659 = vmatprep.mubr.bf16.mxu0 %v6035_v16  ;;  %2732 = vmatprep.mubr.bf16.mxu1 %v6035_v16  ;;  %v6071_v50 = vld [vmem:[#allocation44_spill] sm:$0xff] }
 0x1b0   : > { %v1422_v23 = vpop.f32.mrf.mxu1  ;;  %v1535_v20 = vpop.f32.mrf.mxu0  ;;  %v1294_v5 = vld [vmem:[%s4644_s16 + $0x3f0] sm:$0xff] }
 0x1b1   : > { %2119 = vst [vmem:[%s4644_s16 + $0x2d0] sm:$0xff] %v1975_v22  ;;  %2121 = vst [vmem:[%s4644_s16 + $0x2e0] sm:$0xff] %v1977_v45  ;;  %v1976_v12 = vadd.f32 %v1422_v23, %v6062_v52  ;;  %v1978_v49 = vadd.f32 %v1535_v20, %v6063_v27  ;;  %v6072_v45 = vld [vmem:[#allocation45_spill] sm:$0xff] }
 0x1b2   : > { %v1424_v24 = vpop.f32.mrf.mxu1  ;;  %v1537_v15 = vpop.f32.mrf.mxu0  ;;  %v1295_v20 = vld [vmem:[%s4644_s16 + $0x3f8] sm:$0xff] }
 0x1b3   : > { %2120 = vst [vmem:[%s4644_s16 + $0x2d8] sm:$0xff] %v1976_v12  ;;  %2122 = vst [vmem:[%s4644_s16 + $0x2e8] sm:$0xff] %v1978_v49  ;;  %v1984_v54 = vadd.f32 %v1424_v24, %v6064_v61  ;;  %v1986_v4 = vadd.f32 %v1537_v15, %v6065_v58  ;;  %v1303_v24 = vld [vmem:[%s4644_s16 + $0x438] sm:$0xff]  ;;  %v1304_v58 = vld [vmem:[%s4644_s16 + $0x440] sm:$0xff] }
 0x1b4   : > { %v1426_v26 = vpop.f32.mrf.mxu1  ;;  %v1539_v33 = vpop.f32.mrf.mxu0 }
 0x1b5   : > { %2128 = vst [vmem:[%s4644_s16 + $0x318] sm:$0xff] %v1984_v54  ;;  %2130 = vst [vmem:[%s4644_s16 + $0x328] sm:$0xff] %v1986_v4  ;;  %v1985_v13 = vadd.f32 %v1426_v26, %v6066_v63  ;;  %v1987_v55 = vadd.f32 %v1539_v33, %v6067_v47  ;;  %v1172_v63 = vld [vmem:[%s4644_s16 + $0x20] sm:$0xff] }
 0x1b6   : > { %v1430_v14 = vpop.f32.mrf.mxu1  ;;  %v1543_v10 = vpop.f32.mrf.mxu0  ;;  %3887 = vmatmul.mubr.msk.bf16.gmra.mxu0 %vm421_vm1, %v5010_v43  ;;  %3892 = vmatmul.mubr.msk.bf16.gmra.mxu1 %vm421_vm1, %v4920_v6 }
 0x1b7   : > { %2129 = vst [vmem:[%s4644_s16 + $0x320] sm:$0xff] %v1985_v13  ;;  %2131 = vst [vmem:[%s4644_s16 + $0x330] sm:$0xff] %v1987_v55  ;;  %v1993_v35 = vadd.f32 %v1430_v14, %v1276_v8  ;;  %v1995_v2 = vadd.f32 %v1543_v10, %v6068_v17  ;;  %2669 = vmatprep.mubr.bf16.mxu0 %v6035_v16  ;;  %2742 = vmatprep.mubr.bf16.mxu1 %v6035_v16 }
 0x1b8   : > { %v1432_v38 = vpop.f32.mrf.mxu1  ;;  %v1545_v29 = vpop.f32.mrf.mxu0 }
 0x1b9   : > { %2137 = vst [vmem:[%s4644_s16 + $0x360] sm:$0xff] %v1993_v35  ;;  %2139 = vst [vmem:[%s4644_s16 + $0x370] sm:$0xff] %v1995_v2  ;;  %v1994_v30 = vadd.f32 %v1432_v38, %v1277_v36  ;;  %v1996_v7 = vadd.f32 %v1545_v29, %v6069_v39  ;;  %v1181_v35 = vld [vmem:[%s4644_s16 + $0x68] sm:$0xff]  ;;  %v1182_v36 = vld [vmem:[%s4644_s16 + $0x70] sm:$0xff] }
 0x1ba   : > { %v1434_v18 = vpop.f32.mrf.mxu1  ;;  %v1547_v42 = vpop.f32.mrf.mxu0  ;;  %v1190_v39 = vld [vmem:[%s4644_s16 + $0xb0] sm:$0xff] }
 0x1bb   : > { %2138 = vst [vmem:[%s4644_s16 + $0x368] sm:$0xff] %v1994_v30  ;;  %2140 = vst [vmem:[%s4644_s16 + $0x378] sm:$0xff] %v1996_v7  ;;  %v2002_v1 = vadd.f32 %v1434_v18, %v1285_v56  ;;  %v2004_v3 = vadd.f32 %v1547_v42, %v6070_v25  ;;  %v1192_v56 = vld [vmem:[%s4644_s16 + $0xc0] sm:$0xff]  ;;  %v1191_v42 = vld [vmem:[%s4644_s16 + $0xb8] sm:$0xff] }
 0x1bc   : > { %v1436_v11 = vpop.f32.mrf.mxu1  ;;  %v1549_v44 = vpop.f32.mrf.mxu0 }
 0x1bd   : > { %2146 = vst [vmem:[%s4644_s16 + $0x3a8] sm:$0xff] %v2002_v1  ;;  %2148 = vst [vmem:[%s4644_s16 + $0x3b8] sm:$0xff] %v2004_v3  ;;  %v2003_v40 = vadd.f32 %v1436_v11, %v1286_v32  ;;  %v2005_v62 = vadd.f32 %v1549_v44, %v6071_v50  ;;  %v1199_v32 = vld [vmem:[%s4644_s16 + $0xf8] sm:$0xff]  ;;  %v1201_v44 = vld [vmem:[%s4644_s16 + $0x108] sm:$0xff] }
 0x1be   : > { %v1440_v51 = vpop.f32.mrf.mxu1  ;;  %v1553_v22 = vpop.f32.mrf.mxu0  ;;  %3888 = vmatmul.mubr.msk.bf16.gmra.mxu0 %vm421_vm1, %v5034_v37  ;;  %3893 = vmatmul.mubr.msk.bf16.gmra.mxu1 %vm421_vm1, %v4941_v9 }
 0x1bf   : > { %2147 = vst [vmem:[%s4644_s16 + $0x3b0] sm:$0xff] %v2003_v40  ;;  %2149 = vst [vmem:[%s4644_s16 + $0x3c0] sm:$0xff] %v2005_v62  ;;  %v2011_v48 = vadd.f32 %v1440_v51, %v1294_v5  ;;  %v2013_v23 = vadd.f32 %v1553_v22, %v6072_v45  ;;  %2752 = vmatprep.mubr.bf16.mxu1 %v6035_v16  ;;  %3982 = vmatprep.mubr.msk.bf16.mxu0 %vm421_vm1, %v4863_v34  ;;  %v1200_v62 = vld [vmem:[%s4644_s16 + $0x100] sm:$0xff]  ;;  %v1202_v51 = vld [vmem:[%s4644_s16 + $0x110] sm:$0xff] }
 0x1c0   : > { %v1442_v52 = vpop.f32.mrf.mxu1  ;;  %v1555_v12 = vpop.f32.mrf.mxu0  ;;  %v1208_v45 = vld [vmem:[%s4644_s16 + $0x140] sm:$0xff] }
 0x1c1   : > { %2155 = vst [vmem:[%s4644_s16 + $0x3f0] sm:$0xff] %v2011_v48  ;;  %2157 = vst [vmem:[%s4644_s16 + $0x400] sm:$0xff] %v2013_v23  ;;  %v2012_v27 = vadd.f32 %v1442_v52, %v1295_v20  ;;  %v2014_v49 = vadd.f32 %v1555_v12, %v4858_v57  ;;  %v1210_v20 = vld [vmem:[%s4644_s16 + $0x150] sm:$0xff] }
 0x1c2   : > { %v1444_v15 = vpop.f32.mrf.mxu1  ;;  %v1557_v61 = vpop.f32.mrf.mxu0 }
 0x1c3   : > { %2156 = vst [vmem:[%s4644_s16 + $0x3f8] sm:$0xff] %v2012_v27  ;;  %2158 = vst [vmem:[%s4644_s16 + $0x408] sm:$0xff] %v2014_v49  ;;  %v2020_v54 = vadd.f32 %v1444_v15, %v1303_v24  ;;  %v2022_v34 = vadd.f32 %v1557_v61, %v4861_v41  ;;  %v1209_v49 = vld [vmem:[%s4644_s16 + $0x148] sm:$0xff]  ;;  %v1211_v15 = vld [vmem:[%s4644_s16 + $0x158] sm:$0xff] }
 0x1c4   : > { %v1446_v4 = vpop.f32.mrf.mxu1  ;;  %v1559_v26 = vpop.f32.mrf.mxu0 }
 0x1c5   : > { %2164 = vst [vmem:[%s4644_s16 + $0x438] sm:$0xff] %v2020_v54  ;;  %2166 = vst [vmem:[%s4644_s16 + $0x448] sm:$0xff] %v2022_v34  ;;  %v2021_v33 = vadd.f32 %v1446_v4, %v1304_v58  ;;  %v2023_v57 = vadd.f32 %v1559_v26, %v4868_v0  ;;  %v1173_v0 = vld [vmem:[%s4644_s16 + $0x28] sm:$0xff]  ;;  %v1219_v4 = vld [vmem:[%s4644_s16 + $0x198] sm:$0xff] }
 0x1c6   : > { %v1596_v13 = vpop.f32.mrf.mxu1  ;;  %v1709_v47 = vpop.f32.mrf.mxu0  ;;  %3894 = vmatmul.mubr.msk.bf16.gmra.mxu1 %vm421_vm1, %v4961_v59  ;;  %3983 = vmatmul.mubr.msk.bf16.vlgmr.msra.gmra.mxu0 %vm421_vm1, %v4892_v19  ;;  %v1217_v34 = vld [vmem:[%s4644_s16 + $0x188] sm:$0xff] }
 0x1c7   : > { %2165 = vst [vmem:[%s4644_s16 + $0x440] sm:$0xff] %v2021_v33  ;;  %2167 = vst [vmem:[%s4644_s16 + $0x450] sm:$0xff] %v2023_v57  ;;  %v1889_v41 = vadd.f32 %v1596_v13, %v1172_v63  ;;  %v1891_v55 = vadd.f32 %v1709_v47, %v4871_v46  ;;  %2762 = vmatprep.mubr.bf16.mxu1 %v6035_v16  ;;  %3986 = vmatprep.mubr.msk.bf16.mxu0 %vm421_vm1, %v4920_v6  ;;  %v1218_v33 = vld [vmem:[%s4644_s16 + $0x190] sm:$0xff]  ;;  %v1220_v63 = vld [vmem:[%s4644_s16 + $0x1a0] sm:$0xff] }
 0x1c8   : > { %v1598_v8 = vpop.f32.mrf.mxu1  ;;  %v1711_v14 = vpop.f32.mrf.mxu0 }
 0x1c9   : > { %2033 = vst [vmem:[%s4644_s16 + $0x20] sm:$0xff] %v1889_v41  ;;  %2035 = vst [vmem:[%s4644_s16 + $0x30] sm:$0xff] %v1891_v55  ;;  %v1890_v19 = vadd.f32 %v1598_v8, %v1173_v0  ;;  %v1892_v10 = vadd.f32 %v1711_v14, %v4882_v53  ;;  %v1226_v55 = vld [vmem:[%s4644_s16 + $0x1d0] sm:$0xff]  ;;  %v1228_v8 = vld [vmem:[%s4644_s16 + $0x1e0] sm:$0xff] }
 0x1ca   : > { %v1600_v46 = vpop.f32.mrf.mxu1  ;;  %v1713_v17 = vpop.f32.mrf.mxu0 }
 0x1cb   : > { %2034 = vst [vmem:[%s4644_s16 + $0x28] sm:$0xff] %v1890_v19  ;;  %2036 = vst [vmem:[%s4644_s16 + $0x38] sm:$0xff] %v1892_v10  ;;  %v1898_v2 = vadd.f32 %v1600_v46, %v1181_v35  ;;  %v1900_v6 = vadd.f32 %v1713_v17, %v4890_v60  ;;  %v1227_v35 = vld [vmem:[%s4644_s16 + $0x1d8] sm:$0xff]  ;;  %v1229_v17 = vld [vmem:[%s4644_s16 + $0x1e8] sm:$0xff] }
 0x1cc   : > { %v1602_v38 = vpop.f32.mrf.mxu1  ;;  %v1715_v29 = vpop.f32.mrf.mxu0 }
 0x1cd   : > { %2042 = vst [vmem:[%s4644_s16 + $0x68] sm:$0xff] %v1898_v2  ;;  %2044 = vst [vmem:[%s4644_s16 + $0x78] sm:$0xff] %v1900_v6  ;;  %v1899_v30 = vadd.f32 %v1602_v38, %v1182_v36  ;;  %v1901_v53 = vadd.f32 %v1715_v29, %v4899_v21  ;;  %v1235_v38 = vld [vmem:[%s4644_s16 + $0x218] sm:$0xff]  ;;  %v1237_v29 = vld [vmem:[%s4644_s16 + $0x228] sm:$0xff] }
 0x1ce   : > { %v1606_v7 = vpop.f32.mrf.mxu1  ;;  %v1719_v18 = vpop.f32.mrf.mxu0  ;;  %3895 = vmatmul.mubr.msk.bf16.gmra.mxu1 %vm421_vm1, %v4985_v28  ;;  %3987 = vmatmul.mubr.msk.bf16.gmra.mxu0 %vm421_vm1, %v4941_v9 }
 0x1cf   : > { %2043 = vst [vmem:[%s4644_s16 + $0x70] sm:$0xff] %v1899_v30  ;;  %2045 = vst [vmem:[%s4644_s16 + $0x80] sm:$0xff] %v1901_v53  ;;  %v1907_v60 = vadd.f32 %v1606_v7, %v1190_v39  ;;  %v1909_v21 = vadd.f32 %v1719_v18, %v1192_v56  ;;  %2772 = vmatprep.mubr.bf16.mxu1 %v6035_v16  ;;  %3990 = vmatprep.mubr.msk.bf16.mxu0 %vm421_vm1, %v4961_v59  ;;  %v1236_v7 = vld [vmem:[%s4644_s16 + $0x220] sm:$0xff]  ;;  %v1238_v18 = vld [vmem:[%s4644_s16 + $0x230] sm:$0xff] }
 0x1d0   : > { %v1608_v1 = vpop.f32.mrf.mxu1  ;;  %v1721_v25 = vpop.f32.mrf.mxu0 }
 0x1d1   : > { %2051 = vst [vmem:[%s4644_s16 + $0xb0] sm:$0xff] %v1907_v60  ;;  %2053 = vst [vmem:[%s4644_s16 + $0xc0] sm:$0xff] %v1909_v21  ;;  %v1908_v9 = vadd.f32 %v1608_v1, %v1191_v42  ;;  %v1910_v3 = vadd.f32 %v1721_v25, %v4917_v31  ;;  %v1244_v1 = vld [vmem:[%s4644_s16 + $0x260] sm:$0xff] }
 0x1d2   : > { %v1610_v11 = vpop.f32.mrf.mxu1  ;;  %v1723_v40 = vpop.f32.mrf.mxu0 }
 0x1d3   : > { %2052 = vst [vmem:[%s4644_s16 + $0xb8] sm:$0xff] %v1908_v9  ;;  %2054 = vst [vmem:[%s4644_s16 + $0xc8] sm:$0xff] %v1910_v3  ;;  %v1916_v59 = vadd.f32 %v1610_v11, %v1199_v32  ;;  %v1918_v50 = vadd.f32 %v1723_v40, %v1201_v44  ;;  %v1246_v9 = vld [vmem:[%s4644_s16 + $0x270] sm:$0xff]  ;;  %v1245_v44 = vld [vmem:[%s4644_s16 + $0x268] sm:$0xff] }
 0x1d4   : > { %v1612_v5 = vpop.f32.mrf.mxu1  ;;  %v1725_v22 = vpop.f32.mrf.mxu0 }
 0x1d5   : > { %2060 = vst [vmem:[%s4644_s16 + $0xf8] sm:$0xff] %v1916_v59  ;;  %2062 = vst [vmem:[%s4644_s16 + $0x108] sm:$0xff] %v1918_v50  ;;  %v1917_v31 = vadd.f32 %v1612_v5, %v1200_v62  ;;  %v1919_v48 = vadd.f32 %v1725_v22, %v1202_v51  ;;  %v1247_v59 = vld [vmem:[%s4644_s16 + $0x278] sm:$0xff]  ;;  %v1253_v51 = vld [vmem:[%s4644_s16 + $0x2a8] sm:$0xff] }
 0x1d6   : > { %v1616_v23 = vpop.f32.mrf.mxu1  ;;  %v1729_v52 = vpop.f32.mrf.mxu0  ;;  %3896 = vmatmul.mubr.msk.bf16.gmra.mxu1 %vm421_vm1, %v5010_v43  ;;  %3991 = vmatmul.mubr.msk.bf16.gmra.mxu0 %vm421_vm1, %v4985_v28 }
 0x1d7   : > { %2061 = vst [vmem:[%s4644_s16 + $0x100] sm:$0xff] %v1917_v31  ;;  %2063 = vst [vmem:[%s4644_s16 + $0x110] sm:$0xff] %v1919_v48  ;;  %v1925_v12 = vadd.f32 %v1616_v23, %v1208_v45  ;;  %v1927_v27 = vadd.f32 %v1729_v52, %v1210_v20  ;;  %2782 = vmatprep.mubr.bf16.mxu1 %v6035_v16  ;;  %3994 = vmatprep.mubr.msk.bf16.mxu0 %vm421_vm1, %v5010_v43  ;;  %v1255_v31 = vld [vmem:[%s4644_s16 + $0x2b8] sm:$0xff]  ;;  %v1254_v20 = vld [vmem:[%s4644_s16 + $0x2b0] sm:$0xff] }
 0x1d8   : > { %v1618_v24 = vpop.f32.mrf.mxu1  ;;  %v1731_v61 = vpop.f32.mrf.mxu0 }
 0x1d9   : > { %2069 = vst [vmem:[%s4644_s16 + $0x140] sm:$0xff] %v1925_v12  ;;  %2071 = vst [vmem:[%s4644_s16 + $0x150] sm:$0xff] %v1927_v27  ;;  %v1926_v28 = vadd.f32 %v1618_v24, %v1209_v49  ;;  %v1928_v54 = vadd.f32 %v1731_v61, %v1211_v15  ;;  %v1256_v12 = vld [vmem:[%s4644_s16 + $0x2c0] sm:$0xff]  ;;  %v1262_v15 = vld [vmem:[%s4644_s16 + $0x2f0] sm:$0xff] }
 0x1da   : > { %v1620_v58 = vpop.f32.mrf.mxu1  ;;  %v1733_v16 = vpop.f32.mrf.mxu0 }
 0x1db   : > { %2070 = vst [vmem:[%s4644_s16 + $0x148] sm:$0xff] %v1926_v28  ;;  %2072 = vst [vmem:[%s4644_s16 + $0x158] sm:$0xff] %v1928_v54  ;;  %v1934_v43 = vadd.f32 %v1620_v58, %v1217_v34  ;;  %v1936_v26 = vadd.f32 %v1733_v16, %v1219_v4  ;;  %v1264_v28 = vld [vmem:[%s4644_s16 + $0x300] sm:$0xff]  ;;  %v1263_v4 = vld [vmem:[%s4644_s16 + $0x2f8] sm:$0xff] }
 0x1dc   : > { %v1622_v57 = vpop.f32.mrf.mxu1  ;;  %v1735_v13 = vpop.f32.mrf.mxu0 }
 0x1dd   : > { %2078 = vst [vmem:[%s4644_s16 + $0x188] sm:$0xff] %v1934_v43  ;;  %2080 = vst [vmem:[%s4644_s16 + $0x198] sm:$0xff] %v1936_v26  ;;  %v1935_v47 = vadd.f32 %v1622_v57, %v1218_v33  ;;  %v1937_v41 = vadd.f32 %v1735_v13, %v1220_v63  ;;  %v1265_v43 = vld [vmem:[%s4644_s16 + $0x308] sm:$0xff]  ;;  %v1271_v63 = vld [vmem:[%s4644_s16 + $0x338] sm:$0xff] }
 0x1de   : > { %v1626_v0 = vpop.f32.mrf.mxu1  ;;  %v1739_v14 = vpop.f32.mrf.mxu0  ;;  %3897 = vmatmul.mubr.msk.bf16.gmra.mxu1 %vm421_vm1, %v5034_v37  ;;  %3995 = vmatmul.mubr.msk.bf16.gmra.mxu0 %vm421_vm1, %v5034_v37 }
 0x1df   : > { %2079 = vst [vmem:[%s4644_s16 + $0x190] sm:$0xff] %v1935_v47  ;;  %2081 = vst [vmem:[%s4644_s16 + $0x1a0] sm:$0xff] %v1937_v41  ;;  %v1943_v19 = vadd.f32 %v1626_v0, %v1226_v55  ;;  %v1945_v10 = vadd.f32 %v1739_v14, %v1228_v8  ;;  %v1273_v47 = vld [vmem:[%s4644_s16 + $0x348] sm:$0xff]  ;;  %v1272_v8 = vld [vmem:[%s4644_s16 + $0x340] sm:$0xff] }
 0x1e0   : > { %v1628_v46 = vpop.f32.mrf.mxu1  ;;  %v1741_v2 = vpop.f32.mrf.mxu0 }
 0x1e1   : > { %2087 = vst [vmem:[%s4644_s16 + $0x1d0] sm:$0xff] %v1943_v19  ;;  %2089 = vst [vmem:[%s4644_s16 + $0x1e0] sm:$0xff] %v1945_v10  ;;  %v1944_v6 = vadd.f32 %v1628_v46, %v1227_v35  ;;  %v1946_v36 = vadd.f32 %v1741_v2, %v1229_v17  ;;  %v1274_v19 = vld [vmem:[%s4644_s16 + $0x350] sm:$0xff]  ;;  %v1280_v17 = vld [vmem:[%s4644_s16 + $0x380] sm:$0xff] }
 0x1e2   : > { %v1630_v37 = vpop.f32.mrf.mxu1  ;;  %v1743_v30 = vpop.f32.mrf.mxu0 }
 0x1e3   : > { %2088 = vst [vmem:[%s4644_s16 + $0x1d8] sm:$0xff] %v1944_v6  ;;  %2090 = vst [vmem:[%s4644_s16 + $0x1e8] sm:$0xff] %v1946_v36  ;;  %v1952_v53 = vadd.f32 %v1630_v37, %v1235_v38  ;;  %v1954_v39 = vadd.f32 %v1743_v30, %v1237_v29  ;;  %v1282_v6 = vld [vmem:[%s4644_s16 + $0x390] sm:$0xff]  ;;  %v1281_v29 = vld [vmem:[%s4644_s16 + $0x388] sm:$0xff] }
 0x1e4   : > { %v1632_v56 = vpop.f32.mrf.mxu1  ;;  %v1745_v60 = vpop.f32.mrf.mxu0 }
 0x1e5   : > { %2096 = vst [vmem:[%s4644_s16 + $0x218] sm:$0xff] %v1952_v53  ;;  %2098 = vst [vmem:[%s4644_s16 + $0x228] sm:$0xff] %v1954_v39  ;;  %v1953_v21 = vadd.f32 %v1632_v56, %v1236_v7  ;;  %v1955_v42 = vadd.f32 %v1745_v60, %v1238_v18  ;;  %v1283_v53 = vld [vmem:[%s4644_s16 + $0x398] sm:$0xff]  ;;  %v3330_v18 = vlaneseq  ;;  %v1289_v60 = vld [vmem:[%s4644_s16 + $0x3c8] sm:$0xff] }
 0x1e6   : > { %v1636_v25 = vpop.f32.mrf.mxu1  ;;  %v1749_v3 = vpop.f32.mrf.mxu0 }
 0x1e7   : > { %2097 = vst [vmem:[%s4644_s16 + $0x220] sm:$0xff] %v1953_v21  ;;  %2099 = vst [vmem:[%s4644_s16 + $0x230] sm:$0xff] %v1955_v42  ;;  %v1961_v32 = vadd.f32 %v1636_v25, %v1244_v1  ;;  %v1963_v11 = vadd.f32 %v1749_v3, %v1246_v9  ;;  %v1291_v42 = vld [vmem:[%s4644_s16 + $0x3d8] sm:$0xff]  ;;  %v1290_v3 = vld [vmem:[%s4644_s16 + $0x3d0] sm:$0xff] }
 0x1e8   : > { %v1638_v40 = vpop.f32.mrf.mxu1  ;;  %v1751_v50 = vpop.f32.mrf.mxu0 }
 0x1e9   : > { %2105 = vst [vmem:[%s4644_s16 + $0x260] sm:$0xff] %v1961_v32  ;;  %2107 = vst [vmem:[%s4644_s16 + $0x270] sm:$0xff] %v1963_v11  ;;  %v1962_v62 = vadd.f32 %v1638_v40, %v1245_v44  ;;  %v1964_v5 = vadd.f32 %v1751_v50, %v1247_v59  ;;  %v1292_v11 = vld [vmem:[%s4644_s16 + $0x3e0] sm:$0xff]  ;;  %v5376_v50 = vshrl.u32 %v3330_v18, 7 }
 0x1ea   : > { %v1640_v22 = vpop.f32.mrf.mxu1  ;;  %v1753_v48 = vpop.f32.mrf.mxu0 }
 0x1eb   : > { %2106 = vst [vmem:[%s4644_s16 + $0x268] sm:$0xff] %v1962_v62  ;;  %2108 = vst [vmem:[%s4644_s16 + $0x278] sm:$0xff] %v1964_v5  ;;  %v1970_v45 = vadd.f32 %v1640_v22, %v1253_v51  ;;  %v1972_v23 = vadd.f32 %v1753_v48, %v1255_v31  ;;  %v1298_v62 = vld [vmem:[%s4644_s16 + $0x410] sm:$0xff]  ;;  %v1300_v51 = vld [vmem:[%s4644_s16 + $0x420] sm:$0xff] }
 0x1ec   : > { %v1642_v52 = vpop.f32.mrf.mxu1  ;;  %v1755_v27 = vpop.f32.mrf.mxu0  ;;  %v3322_v31 = vld [vmem:[#allocation5] sm:$0xff]  ;;  %v3325_v48 = vstv %s5360_s18 }
 0x1ed   : > { %2114 = vst [vmem:[%s4644_s16 + $0x2a8] sm:$0xff] %v1970_v45  ;;  %2116 = vst [vmem:[%s4644_s16 + $0x2b8] sm:$0xff] %v1972_v23  ;;  %v1971_v49 = vadd.f32 %v1642_v52, %v1254_v20  ;;  %v1973_v24 = vadd.f32 %v1755_v27, %v1256_v12  ;;  %v1299_v20 = vld [vmem:[%s4644_s16 + $0x418] sm:$0xff]  ;;  %v1301_v12 = vld [vmem:[%s4644_s16 + $0x428] sm:$0xff] }
 0x1ee   : > { %v1646_v61 = vpop.f32.mrf.mxu1  ;;  %v1759_v54 = vpop.f32.mrf.mxu0 }
 0x1ef   : > { %2115 = vst [vmem:[%s4644_s16 + $0x2b0] sm:$0xff] %v1971_v49  ;;  %2117 = vst [vmem:[%s4644_s16 + $0x2c0] sm:$0xff] %v1973_v24  ;;  %v1979_v34 = vadd.f32 %v1646_v61, %v1262_v15  ;;  %v1981_v58 = vadd.f32 %v1759_v54, %v1264_v28  ;;  %v5389_v15 = vmul.f32 %v3325_v48, %v3322_v31  ;;  %v3332_v61 = vsub.s32 0, %v5376_v50  ;;  %v1307_v28 = vld [vmem:[%s4644_s16 + $0x458] sm:$0xff] }
 0x1f0   : > { %v1648_v16 = vpop.f32.mrf.mxu1  ;;  %v1761_v26 = vpop.f32.mrf.mxu0  ;;  %v2192_v31 = vld [vmem:[%s4644_s16 + $0x98] sm:$0xff] }
 0x1f1   : > { %2123 = vst [vmem:[%s4644_s16 + $0x2f0] sm:$0xff] %v1979_v34  ;;  %2125 = vst [vmem:[%s4644_s16 + $0x300] sm:$0xff] %v1981_v58  ;;  %v1980_v33 = vadd.f32 %v1648_v16, %v1263_v4  ;;  %v1982_v57 = vadd.f32 %v1761_v26, %v1265_v43  ;;  %v1309_v34 = vld [vmem:[%s4644_s16 + $0x468] sm:$0xff]  ;;  %v3336_v43 = vsub.s32 1, %v5376_v50  ;;  %v1308_v26 = vld [vmem:[%s4644_s16 + $0x460] sm:$0xff] }
 0x1f2   : > { %v1650_v13 = vpop.f32.mrf.mxu1  ;;  %v1763_v41 = vpop.f32.mrf.mxu0 }
 0x1f3   : > { %2124 = vst [vmem:[%s4644_s16 + $0x2f8] sm:$0xff] %v1980_v33  ;;  %2126 = vst [vmem:[%s4644_s16 + $0x308] sm:$0xff] %v1982_v57  ;;  %v1988_v55 = vadd.f32 %v1650_v13, %v1271_v63  ;;  %v1990_v0 = vadd.f32 %v1763_v41, %v1273_v47  ;;  %v1310_v57 = vld [vmem:[%s4644_s16 + $0x470] sm:$0xff]  ;;  %v5404_v41 = vrot.slane %v5389_v15, %v3332_v61 }
 0x1f4   : > { %v1652_v14 = vpop.f32.mrf.mxu1  ;;  %v1765_v10 = vpop.f32.mrf.mxu0 }
 0x1f5   : > { %2132 = vst [vmem:[%s4644_s16 + $0x338] sm:$0xff] %v1988_v55  ;;  %2134 = vst [vmem:[%s4644_s16 + $0x348] sm:$0xff] %v1990_v0  ;;  %v1989_v35 = vadd.f32 %v1652_v14, %v1272_v8  ;;  %v1991_v46 = vadd.f32 %v1765_v10, %v1274_v19  ;;  %v1194_v55 = vld [vmem:[%s4644_s16 + $0xd0] sm:$0xff]  ;;  %v2173_v8 = vld [vmem:[%s4644_s16] sm:$0xff] }
 0x1f6   : > { %v1656_v2 = vpop.f32.mrf.mxu1  ;;  %v1769_v36 = vpop.f32.mrf.mxu0 }
 0x1f7   : > { %2133 = vst [vmem:[%s4644_s16 + $0x340] sm:$0xff] %v1989_v35  ;;  %2135 = vst [vmem:[%s4644_s16 + $0x350] sm:$0xff] %v1991_v46  ;;  %v1997_v38 = vadd.f32 %v1656_v2, %v1280_v17  ;;  %v1999_v37 = vadd.f32 %v1769_v36, %v1282_v6  ;;  %v5411_v35 = vrot.slane %v5389_v15, %v3336_v43  ;;  %v1176_v46 = vld [vmem:[%s4644_s16 + $0x40] sm:$0xff]  ;;  %v2174_v2 = vld [vmem:[%s4644_s16 + $0x8] sm:$0xff] }
 0x1f8   : > { %v1658_v30 = vpop.f32.mrf.mxu1  ;;  %v1771_v39 = vpop.f32.mrf.mxu0 }
 0x1f9   : > { %2141 = vst [vmem:[%s4644_s16 + $0x380] sm:$0xff] %v1997_v38  ;;  %2143 = vst [vmem:[%s4644_s16 + $0x390] sm:$0xff] %v1999_v37  ;;  %v1998_v7 = vadd.f32 %v1658_v30, %v1281_v29  ;;  %v2000_v56 = vadd.f32 %v1771_v39, %v1283_v53  ;;  %v1203_v29 = vld [vmem:[%s4644_s16 + $0x118] sm:$0xff]  ;;  %v2182_v53 = vld [vmem:[%s4644_s16 + $0x48] sm:$0xff] }
 0x1fa   : > { %v1660_v21 = vpop.f32.mrf.mxu1  ;;  %v1773_v1 = vpop.f32.mrf.mxu0 }
 0x1fb   : > { %2142 = vst [vmem:[%s4644_s16 + $0x388] sm:$0xff] %v1998_v7  ;;  %2144 = vst [vmem:[%s4644_s16 + $0x398] sm:$0xff] %v2000_v56  ;;  %v2006_v25 = vadd.f32 %v1660_v21, %v1289_v60  ;;  %v2008_v9 = vadd.f32 %v1773_v1, %v1291_v42  ;;  %v1185_v60 = vld [vmem:[%s4644_s16 + $0x88] sm:$0xff]  ;;  %v2183_v42 = vld [vmem:[%s4644_s16 + $0x50] sm:$0xff] }
 0x1fc   : > { %v1662_v32 = vpop.f32.mrf.mxu1  ;;  %v1775_v44 = vpop.f32.mrf.mxu0 }
 0x1fd   : > { %2150 = vst [vmem:[%s4644_s16 + $0x3c8] sm:$0xff] %v2006_v25  ;;  %2152 = vst [vmem:[%s4644_s16 + $0x3d8] sm:$0xff] %v2008_v9  ;;  %v2007_v40 = vadd.f32 %v1662_v32, %v1290_v3  ;;  %v2009_v59 = vadd.f32 %v1775_v44, %v1292_v11  ;;  %v1230_v32 = vld [vmem:[%s4644_s16 + $0x1f0] sm:$0xff] }
 0x1fe   : > { %v1666_v5 = vpop.f32.mrf.mxu1  ;;  %v1779_v22 = vpop.f32.mrf.mxu0  ;;  %v2191_v44 = vld [vmem:[%s4644_s16 + $0x90] sm:$0xff] }
 0x1ff   : > { %2151 = vst [vmem:[%s4644_s16 + $0x3d0] sm:$0xff] %v2007_v40  ;;  %2153 = vst [vmem:[%s4644_s16 + $0x3e0] sm:$0xff] %v2009_v59  ;;  %v2015_v45 = vadd.f32 %v1666_v5, %v1298_v62  ;;  %v2017_v23 = vadd.f32 %v1779_v22, %v1300_v51  ;;  %v1212_v51 = vld [vmem:[%s4644_s16 + $0x160] sm:$0xff] }
 0x200   : > { %v1668_v52 = vpop.f32.mrf.mxu1  ;;  %v1781_v27 = vpop.f32.mrf.mxu0 }
 0x201   : > { %2159 = vst [vmem:[%s4644_s16 + $0x410] sm:$0xff] %v2015_v45  ;;  %2161 = vst [vmem:[%s4644_s16 + $0x420] sm:$0xff] %v2017_v23  ;;  %v2016_v49 = vadd.f32 %v1668_v52, %v1299_v20  ;;  %v2018_v24 = vadd.f32 %v1781_v27, %v1301_v12  ;;  %v1239_v12 = vld [vmem:[%s4644_s16 + $0x238] sm:$0xff] }
 0x202   : > { %v1670_v54 = vpop.f32.mrf.mxu1  ;;  %v1783_v58 = vpop.f32.mrf.mxu0 }
 0x203   : > { %2160 = vst [vmem:[%s4644_s16 + $0x418] sm:$0xff] %v2016_v49  ;;  %2162 = vst [vmem:[%s4644_s16 + $0x428] sm:$0xff] %v2018_v24  ;;  %v2024_v4 = vadd.f32 %v1670_v54, %v1307_v28  ;;  %v2026_v16 = vadd.f32 %v1783_v58, %v1309_v34  ;;  %v2200_v49 = vld [vmem:[%s4644_s16 + $0xd8] sm:$0xff]  ;;  %v1221_v58 = vld [vmem:[%s4644_s16 + $0x1a8] sm:$0xff] }
 0x204   : > { %v1672_v33 = vpop.f32.mrf.mxu1  ;;  %v1785_v63 = vpop.f32.mrf.mxu0 }
 0x205   : > { %2168 = vst [vmem:[%s4644_s16 + $0x458] sm:$0xff] %v2024_v4  ;;  %2170 = vst [vmem:[%s4644_s16 + $0x468] sm:$0xff] %v2026_v16  ;;  %v2025_v13 = vadd.f32 %v1672_v33, %v1308_v26  ;;  %v2027_v47 = vadd.f32 %v1785_v63, %v1310_v57  ;;  %v2201_v16 = vld [vmem:[%s4644_s16 + $0xe0] sm:$0xff]  ;;  %v1266_v63 = vld [vmem:[%s4644_s16 + $0x310] sm:$0xff] }
 0x206   : > { %v3964_v0 = vpop.f32.mrf.mxu1  ;;  %v2375_v14 = vpop.f32.mrf.mxu0 }
 0x207   : > { %2169 = vst [vmem:[%s4644_s16 + $0x460] sm:$0xff] %v2025_v13  ;;  %2171 = vst [vmem:[%s4644_s16 + $0x470] sm:$0xff] %v2027_v47  ;;  %v1911_v19 = vadd.f32 %v3964_v0, %v1194_v55  ;;  %v2890_v10 = vadd.f32 %v2375_v14, %v2173_v8  ;;  %v2209_v47 = vld [vmem:[%s4644_s16 + $0x120] sm:$0xff] }
 0x208   : > { %v1822_v17 = vpop.f32.mrf.mxu1  ;;  %v2377_v6 = vpop.f32.mrf.mxu0 }
 0x209   : > { %2055 = vst.msk [vmem:[%s4644_s16 + $0xd0] sm:$0xff] %vm1031_vm2, %v1911_v19  ;;  %v3375_v36 = vadd.f32 %v5404_v41, %v2890_v10  ;;  %v1893_v38 = vadd.f32 %v1822_v17, %v1176_v46  ;;  %v2891_v37 = vadd.f32 %v2377_v6, %v2174_v2  ;;  %v1248_v19 = vld [vmem:[%s4644_s16 + $0x280] sm:$0xff]  ;;  %v2210_v46 = vld [vmem:[%s4644_s16 + $0x128] sm:$0xff] }
 0x20a   : > { %v3965_v30 = vpop.f32.mrf.mxu1  ;;  %v2379_v39 = vpop.f32.mrf.mxu0 }
 0x20b   : > { %3519 = vst [vmem:[%s4644_s16] sm:$0xff] %v3375_v36  ;;  %2037 = vst.msk [vmem:[%s4644_s16 + $0x40] sm:$0xff] %vm1031_vm2, %v1893_v38  ;;  %v3376_v7 = vadd.f32 %v5411_v35, %v2891_v37  ;;  %v1920_v56 = vadd.f32 %v3965_v30, %v1203_v29  ;;  %v2899_v18 = vadd.f32 %v2379_v39, %v2182_v53  ;;  %v1275_v38 = vld [vmem:[%s4644_s16 + $0x358] sm:$0xff]  ;;  %v2218_v29 = vld [vmem:[%s4644_s16 + $0x168] sm:$0xff] }
 0x20c   : > { %v1825_v21 = vpop.f32.mrf.mxu1  ;;  %v2381_v1 = vpop.f32.mrf.mxu0 }
 0x20d   : > { %3520 = vst [vmem:[%s4644_s16 + $0x8] sm:$0xff] %v3376_v7  ;;  %2064 = vst.msk [vmem:[%s4644_s16 + $0x118] sm:$0xff] %vm1031_vm2, %v1920_v56  ;;  %v3384_v25 = vadd.f32 %v5404_v41, %v2899_v18  ;;  %v1902_v9 = vadd.f32 %v1825_v21, %v1185_v60  ;;  %v2900_v3 = vadd.f32 %v2381_v1, %v2183_v42  ;;  %v1257_v56 = vld [vmem:[%s4644_s16 + $0x2c8] sm:$0xff]  ;;  %v2219_v60 = vld [vmem:[%s4644_s16 + $0x170] sm:$0xff] }
 0x20e   : > { %v3968_v11 = vpop.f32.mrf.mxu1  ;;  %v2385_v40 = vpop.f32.mrf.mxu0 }
 0x20f   : > { %3528 = vst [vmem:[%s4644_s16 + $0x48] sm:$0xff] %v3384_v25  ;;  %2046 = vst.msk [vmem:[%s4644_s16 + $0x88] sm:$0xff] %vm1031_vm2, %v1902_v9  ;;  %v3385_v59 = vadd.f32 %v5411_v35, %v2900_v3  ;;  %v1947_v62 = vadd.f32 %v3968_v11, %v1230_v32  ;;  %v2908_v5 = vadd.f32 %v2385_v40, %v2191_v44  ;;  %v1302_v9 = vld [vmem:[%s4644_s16 + $0x430] sm:$0xff] }
 0x210   : > { %v1838_v22 = vpop.f32.mrf.mxu1  ;;  %v2387_v45 = vpop.f32.mrf.mxu0  ;;  %v2227_v32 = vld [vmem:[%s4644_s16 + $0x1b0] sm:$0xff] }
 0x211   : > { %3529 = vst [vmem:[%s4644_s16 + $0x50] sm:$0xff] %v3385_v59  ;;  %2091 = vst.msk [vmem:[%s4644_s16 + $0x1f0] sm:$0xff] %vm1031_vm2, %v1947_v62  ;;  %v3393_v23 = vadd.f32 %v5404_v41, %v2908_v5  ;;  %v1929_v20 = vadd.f32 %v1838_v22, %v1212_v51  ;;  %v2909_v52 = vadd.f32 %v2387_v45, %v2192_v31  ;;  %v1284_v62 = vld [vmem:[%s4644_s16 + $0x3a0] sm:$0xff]  ;;  %v2228_v51 = vld [vmem:[%s4644_s16 + $0x1b8] sm:$0xff] }
 0x212   : > { %v3969_v27 = vpop.f32.mrf.mxu1  ;;  %v2389_v24 = vpop.f32.mrf.mxu0 }
 0x213   : > { %3537 = vst [vmem:[%s4644_s16 + $0x90] sm:$0xff] %v3393_v23  ;;  %2073 = vst.msk [vmem:[%s4644_s16 + $0x160] sm:$0xff] %vm1031_vm2, %v1929_v20  ;;  %v3394_v28 = vadd.f32 %v5411_v35, %v2909_v52  ;;  %v1956_v54 = vadd.f32 %v3969_v27, %v1239_v12  ;;  %v2917_v34 = vadd.f32 %v2389_v24, %v2200_v49  ;;  %v3340_v20 = vsub.s32 2, %v5376_v50  ;;  %v1311_v52 = vld [vmem:[%s4644_s16 + $0x478] sm:$0xff] }
 0x214   : > { %v1841_v4 = vpop.f32.mrf.mxu1  ;;  %v2391_v43 = vpop.f32.mrf.mxu0  ;;  %v2236_v27 = vld [vmem:[%s4644_s16 + $0x1f8] sm:$0xff] }
 0x215   : > { %3538 = vst [vmem:[%s4644_s16 + $0x98] sm:$0xff] %v3394_v28  ;;  %2100 = vst.msk [vmem:[%s4644_s16 + $0x238] sm:$0xff] %vm1031_vm2, %v1956_v54  ;;  %v3402_v26 = vadd.f32 %v5404_v41, %v2917_v34  ;;  %v1938_v33 = vadd.f32 %v1841_v4, %v1221_v58  ;;  %v2918_v57 = vadd.f32 %v2391_v43, %v2201_v16  ;;  %v3344_v34 = vsub.s32 3, %v5376_v50  ;;  %v1293_v58 = vld [vmem:[%s4644_s16 + $0x3e8] sm:$0xff]  ;;  %v2237_v16 = vld [vmem:[%s4644_s16 + $0x200] sm:$0xff] }
 0x216   : > { %v3972_v13 = vpop.f32.mrf.mxu1  ;;  %v2395_v55 = vpop.f32.mrf.mxu0 }
 0x217   : > { %3546 = vst [vmem:[%s4644_s16 + $0xd8] sm:$0xff] %v3402_v26  ;;  %2082 = vst.msk [vmem:[%s4644_s16 + $0x1a8] sm:$0xff] %vm1031_vm2, %v1938_v33  ;;  %v3403_v0 = vadd.f32 %v5411_v35, %v2918_v57  ;;  %v1983_v8 = vadd.f32 %v3972_v13, %v1266_v63  ;;  %v2926_v14 = vadd.f32 %v2395_v55, %v2209_v47  ;;  %v2245_v13 = vld [vmem:[%s4644_s16 + $0x240] sm:$0xff]  ;;  %v2175_v55 = vld [vmem:[%s4644_s16 + $0x10] sm:$0xff] }
 0x218   : > { %v1854_v10 = vpop.f32.mrf.mxu1  ;;  %v2397_v17 = vpop.f32.mrf.mxu0  ;;  %v5505_v63 = vrot.slane %v5389_v15, %v3340_v20 }
 0x219   : > { %3547 = vst [vmem:[%s4644_s16 + $0xe0] sm:$0xff] %v3403_v0  ;;  %2127 = vst.msk [vmem:[%s4644_s16 + $0x310] sm:$0xff] %vm1031_vm2, %v1983_v8  ;;  %v3411_v2 = vadd.f32 %v5404_v41, %v2926_v14  ;;  %v1965_v6 = vadd.f32 %v1854_v10, %v1248_v19  ;;  %v2927_v36 = vadd.f32 %v2397_v17, %v2210_v46  ;;  %v2246_v46 = vld [vmem:[%s4644_s16 + $0x248] sm:$0xff] }
 0x21a   : > { %v3973_v37 = vpop.f32.mrf.mxu1  ;;  %v2399_v30 = vpop.f32.mrf.mxu0  ;;  %v5514_v10 = vrot.slane %v5389_v15, %v3344_v34 }
 0x21b   : > { %3555 = vst [vmem:[%s4644_s16 + $0x120] sm:$0xff] %v3411_v2  ;;  %2109 = vst.msk [vmem:[%s4644_s16 + $0x280] sm:$0xff] %vm1031_vm2, %v1965_v6  ;;  %v3412_v53 = vadd.f32 %v5411_v35, %v2927_v36  ;;  %v1992_v39 = vadd.f32 %v3973_v37, %v1275_v38  ;;  %v2935_v7 = vadd.f32 %v2399_v30, %v2218_v29  ;;  %v2176_v2 = vld [vmem:[%s4644_s16 + $0x18] sm:$0xff]  ;;  %v2254_v30 = vld [vmem:[%s4644_s16 + $0x288] sm:$0xff] }
 0x21c   : > { %v1857_v18 = vpop.f32.mrf.mxu1  ;;  %v2401_v21 = vpop.f32.mrf.mxu0 }
 0x21d   : > { %3556 = vst [vmem:[%s4644_s16 + $0x128] sm:$0xff] %v3412_v53  ;;  %2136 = vst.msk [vmem:[%s4644_s16 + $0x358] sm:$0xff] %vm1031_vm2, %v1992_v39  ;;  %v3420_v42 = vadd.f32 %v5404_v41, %v2935_v7  ;;  %v1974_v1 = vadd.f32 %v1857_v18, %v1257_v56  ;;  %v2936_v25 = vadd.f32 %v2401_v21, %v2219_v60  ;;  %v2184_v39 = vld [vmem:[%s4644_s16 + $0x58] sm:$0xff] }
 0x21e   : > { %v3976_v3 = vpop.f32.mrf.mxu1  ;;  %v2405_v11 = vpop.f32.mrf.mxu0 }
 0x21f   : > { %3564 = vst [vmem:[%s4644_s16 + $0x168] sm:$0xff] %v3420_v42  ;;  %2118 = vst.msk [vmem:[%s4644_s16 + $0x2c8] sm:$0xff] %vm1031_vm2, %v1974_v1  ;;  %v3421_v44 = vadd.f32 %v5411_v35, %v2936_v25  ;;  %v2019_v40 = vadd.f32 %v3976_v3, %v1302_v9  ;;  %v2944_v59 = vadd.f32 %v2405_v11, %v2227_v32  ;;  %v2255_v42 = vld [vmem:[%s4644_s16 + $0x290] sm:$0xff]  ;;  %v2185_v25 = vld [vmem:[%s4644_s16 + $0x60] sm:$0xff] }
 0x220   : > { %v1870_v5 = vpop.f32.mrf.mxu1  ;;  %v2407_v22 = vpop.f32.mrf.mxu0 }
 0x221   : > { %3565 = vst [vmem:[%s4644_s16 + $0x170] sm:$0xff] %v3421_v44  ;;  %2163 = vst.msk [vmem:[%s4644_s16 + $0x430] sm:$0xff] %vm1031_vm2, %v2019_v40  ;;  %v3429_v31 = vadd.f32 %v5404_v41, %v2944_v59  ;;  %v2001_v45 = vadd.f32 %v1870_v5, %v1284_v62  ;;  %v2945_v23 = vadd.f32 %v2407_v22, %v2228_v51  ;;  %v2263_v40 = vld [vmem:[%s4644_s16 + $0x2d0] sm:$0xff]  ;;  %v2193_v62 = vld [vmem:[%s4644_s16 + $0xa0] sm:$0xff] }
 0x222   : > { %v3977_v12 = vpop.f32.mrf.mxu1  ;;  %v2409_v49 = vpop.f32.mrf.mxu0 }
 0x223   : > { %3573 = vst [vmem:[%s4644_s16 + $0x1b0] sm:$0xff] %v3429_v31  ;;  %2145 = vst.msk [vmem:[%s4644_s16 + $0x3a0] sm:$0xff] %vm1031_vm2, %v2001_v45  ;;  %v3430_v24 = vadd.f32 %v5411_v35, %v2945_v23  ;;  %v2028_v28 = vadd.f32 %v3977_v12, %v1311_v52  ;;  %v2953_v54 = vadd.f32 %v2409_v49, %v2236_v27  ;;  %v2264_v23 = vld [vmem:[%s4644_s16 + $0x2d8] sm:$0xff]  ;;  %v2194_v52 = vld [vmem:[%s4644_s16 + $0xa8] sm:$0xff] }
 0x224   : > { %v1873_v4 = vpop.f32.mrf.mxu1  ;;  %v2411_v43 = vpop.f32.mrf.mxu0 }
 0x225   : > { %3574 = vst [vmem:[%s4644_s16 + $0x1b8] sm:$0xff] %v3430_v24  ;;  %2172 = vst.msk [vmem:[%s4644_s16 + $0x478] sm:$0xff] %vm1031_vm2, %v2028_v28  ;;  %v3438_v26 = vadd.f32 %v5404_v41, %v2953_v54  ;;  %v2010_v33 = vadd.f32 %v1873_v4, %v1293_v58  ;;  %v2954_v57 = vadd.f32 %v2411_v43, %v2237_v16  ;;  %v2272_v54 = vld [vmem:[%s4644_s16 + $0x318] sm:$0xff]  ;;  %v2202_v58 = vld [vmem:[%s4644_s16 + $0xe8] sm:$0xff] }
 0x226   : > { %v2415_v47 = vpop.f32.mrf.mxu0  ;;  %v2488_v0 = vpop.f32.mrf.mxu1 }
 0x227   : > { %3582 = vst [vmem:[%s4644_s16 + $0x1f8] sm:$0xff] %v3438_v26  ;;  %2154 = vst.msk [vmem:[%s4644_s16 + $0x3e8] sm:$0xff] %vm1031_vm2, %v2010_v33  ;;  %v3439_v8 = vadd.f32 %v5411_v35, %v2954_v57  ;;  %v2962_v14 = vadd.f32 %v2415_v47, %v2245_v13  ;;  %v2892_v19 = vadd.f32 %v2488_v0, %v2175_v55  ;;  %v2273_v57 = vld [vmem:[%s4644_s16 + $0x320] sm:$0xff]  ;;  %v2203_v47 = vld [vmem:[%s4644_s16 + $0xf0] sm:$0xff] }
 0x228   : > { %v2417_v17 = vpop.f32.mrf.mxu0  ;;  %v2490_v6 = vpop.f32.mrf.mxu1 }
 0x229   : > { %3583 = vst [vmem:[%s4644_s16 + $0x200] sm:$0xff] %v3439_v8  ;;  %v3447_v36 = vadd.f32 %v5404_v41, %v2962_v14  ;;  %v3377_v38 = vadd.f32 %v5505_v63, %v2892_v19  ;;  %v2963_v37 = vadd.f32 %v2417_v17, %v2246_v46  ;;  %v2893_v29 = vadd.f32 %v2490_v6, %v2176_v2  ;;  %v2281_v46 = vld [vmem:[%s4644_s16 + $0x360] sm:$0xff]  ;;  %v2211_v2 = vld [vmem:[%s4644_s16 + $0x130] sm:$0xff] }
 0x22a   : > { %v2419_v53 = vpop.f32.mrf.mxu0  ;;  %v2492_v7 = vpop.f32.mrf.mxu1 }
 0x22b   : > { %3591 = vst [vmem:[%s4644_s16 + $0x240] sm:$0xff] %v3447_v36  ;;  %3521 = vst [vmem:[%s4644_s16 + $0x10] sm:$0xff] %v3377_v38  ;;  %v3448_v56 = vadd.f32 %v5411_v35, %v2963_v37  ;;  %v3378_v18 = vadd.f32 %v5514_v10, %v2893_v29  ;;  %v2971_v60 = vadd.f32 %v2419_v53, %v2254_v30  ;;  %v2282_v30 = vld [vmem:[%s4644_s16 + $0x368] sm:$0xff] }
 0x22c   : > { %v2901_v21 = vadd.f32 %v2492_v7, %v2184_v39  ;;  %v2421_v1 = vpop.f32.mrf.mxu0  ;;  %v2494_v9 = vpop.f32.mrf.mxu1  ;;  %v2212_v39 = vld [vmem:[%s4644_s16 + $0x138] sm:$0xff] }
 0x22d   : > { %3592 = vst [vmem:[%s4644_s16 + $0x248] sm:$0xff] %v3448_v56  ;;  %3522 = vst [vmem:[%s4644_s16 + $0x18] sm:$0xff] %v3378_v18  ;;  %v3456_v3 = vadd.f32 %v5404_v41, %v2971_v60  ;;  %v2972_v11 = vadd.f32 %v2421_v1, %v2255_v42  ;;  %v2902_v44 = vadd.f32 %v2494_v9, %v2185_v25  ;;  %v2290_v42 = vld [vmem:[%s4644_s16 + $0x3a8] sm:$0xff]  ;;  %v2220_v25 = vld [vmem:[%s4644_s16 + $0x178] sm:$0xff] }
 0x22e   : > { %v3386_v32 = vadd.f32 %v5505_v63, %v2901_v21  ;;  %v2425_v59 = vpop.f32.mrf.mxu0  ;;  %v2498_v5 = vpop.f32.mrf.mxu1 }
 0x22f   : > { %3600 = vst [vmem:[%s4644_s16 + $0x288] sm:$0xff] %v3456_v3  ;;  %v3457_v51 = vadd.f32 %v5411_v35, %v2972_v11  ;;  %v3387_v22 = vadd.f32 %v5514_v10, %v2902_v44  ;;  %v2980_v31 = vadd.f32 %v2425_v59, %v2263_v40  ;;  %v2910_v45 = vadd.f32 %v2498_v5, %v2193_v62  ;;  %v2291_v40 = vld [vmem:[%s4644_s16 + $0x3b0] sm:$0xff]  ;;  %v2221_v62 = vld [vmem:[%s4644_s16 + $0x180] sm:$0xff] }
 0x230   : > { %3530 = vst [vmem:[%s4644_s16 + $0x58] sm:$0xff] %v3386_v32  ;;  %v2427_v20 = vpop.f32.mrf.mxu0  ;;  %v2500_v12 = vpop.f32.mrf.mxu1 }
 0x231   : > { %3601 = vst [vmem:[%s4644_s16 + $0x290] sm:$0xff] %v3457_v51  ;;  %3531 = vst [vmem:[%s4644_s16 + $0x60] sm:$0xff] %v3387_v22  ;;  %v3465_v27 = vadd.f32 %v5404_v41, %v2980_v31  ;;  %v3395_v49 = vadd.f32 %v5505_v63, %v2910_v45  ;;  %v2981_v24 = vadd.f32 %v2427_v20, %v2264_v23  ;;  %v2299_v23 = vld [vmem:[%s4644_s16 + $0x3f0] sm:$0xff] }
 0x232   : > { %v2911_v28 = vadd.f32 %v2500_v12, %v2194_v52  ;;  %v2429_v34 = vpop.f32.mrf.mxu0  ;;  %v2502_v4 = vpop.f32.mrf.mxu1  ;;  %v2229_v52 = vld [vmem:[%s4644_s16 + $0x1c0] sm:$0xff] }
 0x233   : > { %3609 = vst [vmem:[%s4644_s16 + $0x2d0] sm:$0xff] %v3465_v27  ;;  %3539 = vst [vmem:[%s4644_s16 + $0xa0] sm:$0xff] %v3395_v49  ;;  %v3466_v16 = vadd.f32 %v5411_v35, %v2981_v24  ;;  %v2989_v26 = vadd.f32 %v2429_v34, %v2272_v54  ;;  %v2919_v33 = vadd.f32 %v2502_v4, %v2202_v58  ;;  %v2300_v54 = vld [vmem:[%s4644_s16 + $0x3f8] sm:$0xff]  ;;  %v2230_v58 = vld [vmem:[%s4644_s16 + $0x1c8] sm:$0xff] }
 0x234   : > { %v3396_v43 = vadd.f32 %v5514_v10, %v2911_v28  ;;  %v2431_v13 = vpop.f32.mrf.mxu0  ;;  %v2504_v55 = vpop.f32.mrf.mxu1 }
 0x235   : > { %3610 = vst [vmem:[%s4644_s16 + $0x2d8] sm:$0xff] %v3466_v16  ;;  %v3474_v0 = vadd.f32 %v5404_v41, %v2989_v26  ;;  %v3404_v8 = vadd.f32 %v5505_v63, %v2919_v33  ;;  %v2990_v14 = vadd.f32 %v2431_v13, %v2273_v57  ;;  %v2920_v19 = vadd.f32 %v2504_v55, %v2203_v47  ;;  %v2308_v13 = vld [vmem:[%s4644_s16 + $0x438] sm:$0xff]  ;;  %v2238_v55 = vld [vmem:[%s4644_s16 + $0x208] sm:$0xff] }
 0x236   : > { %3540 = vst [vmem:[%s4644_s16 + $0xa8] sm:$0xff] %v3396_v43  ;;  %v2435_v17 = vpop.f32.mrf.mxu0  ;;  %v2508_v6 = vpop.f32.mrf.mxu1  ;;  %v3348_v16 = vsub.s32 4, %v5376_v50 }
 0x237   : > { %3618 = vst [vmem:[%s4644_s16 + $0x318] sm:$0xff] %v3474_v0  ;;  %3548 = vst [vmem:[%s4644_s16 + $0xe8] sm:$0xff] %v3404_v8  ;;  %v3475_v36 = vadd.f32 %v5411_v35, %v2990_v14  ;;  %v3405_v38 = vadd.f32 %v5514_v10, %v2920_v19  ;;  %v2998_v37 = vadd.f32 %v2435_v17, %v2281_v46  ;;  %v3352_v8 = vsub.s32 5, %v5376_v50 }
 0x238   : > { %v2928_v29 = vadd.f32 %v2508_v6, %v2211_v2  ;;  %v2437_v53 = vpop.f32.mrf.mxu0  ;;  %v2510_v7 = vpop.f32.mrf.mxu1  ;;  %v2309_v2 = vld [vmem:[%s4644_s16 + $0x440] sm:$0xff] }
 0x239   : > { %3619 = vst [vmem:[%s4644_s16 + $0x320] sm:$0xff] %v3475_v36  ;;  %3549 = vst [vmem:[%s4644_s16 + $0xf0] sm:$0xff] %v3405_v38  ;;  %v3483_v56 = vadd.f32 %v5404_v41, %v2998_v37  ;;  %v2999_v60 = vadd.f32 %v2437_v53, %v2282_v30  ;;  %v2929_v21 = vadd.f32 %v2510_v7, %v2212_v39  ;;  %v2239_v36 = vld [vmem:[%s4644_s16 + $0x210] sm:$0xff] }
 0x23a   : > { %v3413_v18 = vadd.f32 %v5505_v63, %v2928_v29  ;;  %v2439_v1 = vpop.f32.mrf.mxu0  ;;  %v2512_v9 = vpop.f32.mrf.mxu1  ;;  %v5604_v37 = vrot.slane %v5389_v15, %v3348_v16  ;;  %v2247_v7 = vld [vmem:[%s4644_s16 + $0x250] sm:$0xff] }
 0x23b   : > { %3627 = vst [vmem:[%s4644_s16 + $0x360] sm:$0xff] %v3483_v56  ;;  %v3484_v3 = vadd.f32 %v5411_v35, %v2999_v60  ;;  %v3414_v32 = vadd.f32 %v5514_v10, %v2929_v21  ;;  %v3007_v11 = vadd.f32 %v2439_v1, %v2290_v42  ;;  %v2937_v44 = vadd.f32 %v2512_v9, %v2220_v25  ;;  %v2248_v9 = vld [vmem:[%s4644_s16 + $0x258] sm:$0xff]  ;;  %v2195_v16 = vld [vmem:[%s4644_s16 + $0xb0] sm:$0xff] }
 0x23c   : > { %3557 = vst [vmem:[%s4644_s16 + $0x130] sm:$0xff] %v3413_v18  ;;  %v2441_v59 = vpop.f32.mrf.mxu0  ;;  %v2514_v5 = vpop.f32.mrf.mxu1  ;;  %v2177_v18 = vld [vmem:[%s4644_s16 + $0x20] sm:$0xff]  ;;  %v5613_v21 = vrot.slane %v5389_v15, %v3352_v8 }
 0x23d   : > { %3628 = vst [vmem:[%s4644_s16 + $0x368] sm:$0xff] %v3484_v3  ;;  %3558 = vst [vmem:[%s4644_s16 + $0x138] sm:$0xff] %v3414_v32  ;;  %v3492_v51 = vadd.f32 %v5404_v41, %v3007_v11  ;;  %v3422_v22 = vadd.f32 %v5505_v63, %v2937_v44  ;;  %v3008_v31 = vadd.f32 %v2441_v59, %v2291_v40  ;;  %v2178_v32 = vld [vmem:[%s4644_s16 + $0x28] sm:$0xff] }
 0x23e   : > { %v2938_v45 = vadd.f32 %v2514_v5, %v2221_v62  ;;  %v2445_v20 = vpop.f32.mrf.mxu0  ;;  %v2518_v12 = vpop.f32.mrf.mxu1  ;;  %v2256_v62 = vld [vmem:[%s4644_s16 + $0x298] sm:$0xff] }
 0x23f   : > { %3636 = vst [vmem:[%s4644_s16 + $0x3a8] sm:$0xff] %v3492_v51  ;;  %3566 = vst [vmem:[%s4644_s16 + $0x178] sm:$0xff] %v3422_v22  ;;  %v3493_v27 = vadd.f32 %v5411_v35, %v3008_v31  ;;  %v3016_v24 = vadd.f32 %v2445_v20, %v2299_v23  ;;  %v2946_v28 = vadd.f32 %v2518_v12, %v2229_v52  ;;  %v2186_v51 = vld [vmem:[%s4644_s16 + $0x68] sm:$0xff]  ;;  %v2257_v52 = vld [vmem:[%s4644_s16 + $0x2a0] sm:$0xff] }
 0x240   : > { %v3423_v49 = vadd.f32 %v5514_v10, %v2938_v45  ;;  %v2447_v34 = vpop.f32.mrf.mxu0  ;;  %v2520_v4 = vpop.f32.mrf.mxu1 }
 0x241   : > { %3637 = vst [vmem:[%s4644_s16 + $0x3b0] sm:$0xff] %v3493_v27  ;;  %v3501_v43 = vadd.f32 %v5404_v41, %v3016_v24  ;;  %v3431_v26 = vadd.f32 %v5505_v63, %v2946_v28  ;;  %v3017_v33 = vadd.f32 %v2447_v34, %v2300_v54  ;;  %v2947_v57 = vadd.f32 %v2520_v4, %v2230_v58  ;;  %v2187_v27 = vld [vmem:[%s4644_s16 + $0x70] sm:$0xff]  ;;  %v2265_v58 = vld [vmem:[%s4644_s16 + $0x2e0] sm:$0xff] }
 0x242   : > { %3567 = vst [vmem:[%s4644_s16 + $0x180] sm:$0xff] %v3423_v49  ;;  %v2449_v47 = vpop.f32.mrf.mxu0  ;;  %v2522_v0 = vpop.f32.mrf.mxu1 }
 0x243   : > { %3645 = vst [vmem:[%s4644_s16 + $0x3f0] sm:$0xff] %v3501_v43  ;;  %3575 = vst [vmem:[%s4644_s16 + $0x1c0] sm:$0xff] %v3431_v26  ;;  %v3502_v14 = vadd.f32 %v5411_v35, %v3017_v33  ;;  %v3432_v19 = vadd.f32 %v5514_v10, %v2947_v57  ;;  %v3025_v46 = vadd.f32 %v2449_v47, %v2308_v13  ;;  %v2266_v47 = vld [vmem:[%s4644_s16 + $0x2e8] sm:$0xff] }
 0x244   : > { %v2955_v17 = vadd.f32 %v2522_v0, %v2238_v55  ;;  %v2451_v6 = vpop.f32.mrf.mxu0  ;;  %v2524_v38 = vpop.f32.mrf.mxu1  ;;  %v2196_v0 = vld [vmem:[%s4644_s16 + $0xb8] sm:$0xff] }
 0x245   : > { %3646 = vst [vmem:[%s4644_s16 + $0x3f8] sm:$0xff] %v3502_v14  ;;  %3576 = vst [vmem:[%s4644_s16 + $0x1c8] sm:$0xff] %v3432_v19  ;;  %v3510_v29 = vadd.f32 %v5404_v41, %v3025_v46  ;;  %v3026_v53 = vadd.f32 %v2451_v6, %v2309_v2  ;;  %v2956_v39 = vadd.f32 %v2524_v38, %v2239_v36  ;;  %v2274_v2 = vld [vmem:[%s4644_s16 + $0x328] sm:$0xff]  ;;  %v2204_v36 = vld [vmem:[%s4644_s16 + $0xf8] sm:$0xff] }
 0x246   : > { %v3440_v30 = vadd.f32 %v5505_v63, %v2955_v17  ;;  %v2528_v56 = vpop.f32.mrf.mxu1  ;;  %v2601_v60 = vpop.f32.mrf.mxu0 }
 0x247   : > { %3654 = vst [vmem:[%s4644_s16 + $0x438] sm:$0xff] %v3510_v29  ;;  %v3511_v42 = vadd.f32 %v5411_v35, %v3026_v53  ;;  %v3441_v41 = vadd.f32 %v5514_v10, %v2956_v39  ;;  %v2964_v1 = vadd.f32 %v2528_v56, %v2247_v7  ;;  %v2894_v25 = vadd.f32 %v2601_v60, %v2177_v18  ;;  %v2275_v7 = vld [vmem:[%s4644_s16 + $0x330] sm:$0xff]  ;;  %v2205_v18 = vld [vmem:[%s4644_s16 + $0x100] sm:$0xff] }
 0x248   : > { %3584 = vst [vmem:[%s4644_s16 + $0x208] sm:$0xff] %v3440_v30  ;;  %v2530_v3 = vpop.f32.mrf.mxu1  ;;  %v2603_v11 = vpop.f32.mrf.mxu0 }
 0x249   : > { %3655 = vst [vmem:[%s4644_s16 + $0x440] sm:$0xff] %v3511_v42  ;;  %3585 = vst [vmem:[%s4644_s16 + $0x210] sm:$0xff] %v3441_v41  ;;  %v3449_v44 = vadd.f32 %v5505_v63, %v2964_v1  ;;  %v3379_v40 = vadd.f32 %v5604_v37, %v2894_v25  ;;  %v2965_v35 = vadd.f32 %v2530_v3, %v2248_v9  ;;  %v2283_v9 = vld [vmem:[%s4644_s16 + $0x370] sm:$0xff] }
 0x24a   : > { %v2895_v59 = vadd.f32 %v2603_v11, %v2178_v32  ;;  %v2532_v5 = vpop.f32.mrf.mxu1  ;;  %v2605_v22 = vpop.f32.mrf.mxu0  ;;  %v2213_v32 = vld [vmem:[%s4644_s16 + $0x140] sm:$0xff] }
 0x24b   : > { %3593 = vst [vmem:[%s4644_s16 + $0x250] sm:$0xff] %v3449_v44  ;;  %3523 = vst [vmem:[%s4644_s16 + $0x20] sm:$0xff] %v3379_v40  ;;  %v3450_v31 = vadd.f32 %v5514_v10, %v2965_v35  ;;  %v2973_v23 = vadd.f32 %v2532_v5, %v2256_v62  ;;  %v2903_v20 = vadd.f32 %v2605_v22, %v2186_v51  ;;  %v2284_v62 = vld [vmem:[%s4644_s16 + $0x378] sm:$0xff]  ;;  %v2214_v51 = vld [vmem:[%s4644_s16 + $0x148] sm:$0xff] }
 0x24c   : > { %v3380_v45 = vadd.f32 %v5613_v21, %v2895_v59  ;;  %v2534_v12 = vpop.f32.mrf.mxu1  ;;  %v2607_v49 = vpop.f32.mrf.mxu0 }
 0x24d   : > { %3594 = vst [vmem:[%s4644_s16 + $0x258] sm:$0xff] %v3450_v31  ;;  %v3458_v24 = vadd.f32 %v5505_v63, %v2973_v23  ;;  %v3388_v28 = vadd.f32 %v5604_v37, %v2903_v20  ;;  %v2974_v54 = vadd.f32 %v2534_v12, %v2257_v52  ;;  %v2904_v34 = vadd.f32 %v2607_v49, %v2187_v27  ;;  %v2292_v52 = vld [vmem:[%s4644_s16 + $0x3b8] sm:$0xff]  ;;  %v2222_v27 = vld [vmem:[%s4644_s16 + $0x188] sm:$0xff] }
 0x24e   : > { %3524 = vst [vmem:[%s4644_s16 + $0x28] sm:$0xff] %v3380_v45  ;;  %v2538_v4 = vpop.f32.mrf.mxu1  ;;  %v2611_v43 = vpop.f32.mrf.mxu0 }
 0x24f   : > { %3602 = vst [vmem:[%s4644_s16 + $0x298] sm:$0xff] %v3458_v24  ;;  %3532 = vst [vmem:[%s4644_s16 + $0x68] sm:$0xff] %v3388_v28  ;;  %v3459_v26 = vadd.f32 %v5514_v10, %v2974_v54  ;;  %v3389_v33 = vadd.f32 %v5613_v21, %v2904_v34  ;;  %v2982_v57 = vadd.f32 %v2538_v4, %v2265_v58  ;;  %v2293_v58 = vld [vmem:[%s4644_s16 + $0x3c0] sm:$0xff] }
 0x250   : > { %v2912_v13 = vadd.f32 %v2611_v43, %v2195_v16  ;;  %v2540_v55 = vpop.f32.mrf.mxu1  ;;  %v2613_v8 = vpop.f32.mrf.mxu0  ;;  %v2223_v16 = vld [vmem:[%s4644_s16 + $0x190] sm:$0xff] }
 0x251   : > { %3603 = vst [vmem:[%s4644_s16 + $0x2a0] sm:$0xff] %v3459_v26  ;;  %3533 = vst [vmem:[%s4644_s16 + $0x70] sm:$0xff] %v3389_v33  ;;  %v3467_v14 = vadd.f32 %v5505_v63, %v2982_v57  ;;  %v2983_v46 = vadd.f32 %v2540_v55, %v2266_v47  ;;  %v2913_v17 = vadd.f32 %v2613_v8, %v2196_v0  ;;  %v2301_v47 = vld [vmem:[%s4644_s16 + $0x400] sm:$0xff]  ;;  %v2231_v0 = vld [vmem:[%s4644_s16 + $0x1d0] sm:$0xff] }
 0x252   : > { %v3397_v19 = vadd.f32 %v5604_v37, %v2912_v13  ;;  %v2542_v6 = vpop.f32.mrf.mxu1  ;;  %v2615_v38 = vpop.f32.mrf.mxu0 }
 0x253   : > { %3611 = vst [vmem:[%s4644_s16 + $0x2e0] sm:$0xff] %v3467_v14  ;;  %v3468_v29 = vadd.f32 %v5514_v10, %v2983_v46  ;;  %v3398_v30 = vadd.f32 %v5613_v21, %v2913_v17  ;;  %v2991_v53 = vadd.f32 %v2542_v6, %v2274_v2  ;;  %v2921_v39 = vadd.f32 %v2615_v38, %v2204_v36  ;;  %v2302_v2 = vld [vmem:[%s4644_s16 + $0x408] sm:$0xff]  ;;  %v2232_v36 = vld [vmem:[%s4644_s16 + $0x1d8] sm:$0xff] }
 0x254   : > { %3541 = vst [vmem:[%s4644_s16 + $0xb0] sm:$0xff] %v3397_v19  ;;  %v2544_v56 = vpop.f32.mrf.mxu1  ;;  %v2617_v60 = vpop.f32.mrf.mxu0 }
 0x255   : > { %3612 = vst [vmem:[%s4644_s16 + $0x2e8] sm:$0xff] %v3468_v29  ;;  %3542 = vst [vmem:[%s4644_s16 + $0xb8] sm:$0xff] %v3398_v30  ;;  %v3476_v42 = vadd.f32 %v5505_v63, %v2991_v53  ;;  %v3406_v41 = vadd.f32 %v5604_v37, %v2921_v39  ;;  %v2992_v1 = vadd.f32 %v2544_v56, %v2275_v7  ;;  %v3356_v29 = vsub.s32 6, %v5376_v50  ;;  %v2310_v56 = vld [vmem:[%s4644_s16 + $0x448] sm:$0xff] }
 0x256   : > { %v2922_v25 = vadd.f32 %v2617_v60, %v2205_v18  ;;  %v2548_v3 = vpop.f32.mrf.mxu1  ;;  %v2621_v11 = vpop.f32.mrf.mxu0  ;;  %v2240_v60 = vld [vmem:[%s4644_s16 + $0x218] sm:$0xff] }
 0x257   : > { %3620 = vst [vmem:[%s4644_s16 + $0x328] sm:$0xff] %v3476_v42  ;;  %3550 = vst [vmem:[%s4644_s16 + $0xf8] sm:$0xff] %v3406_v41  ;;  %v3477_v44 = vadd.f32 %v5514_v10, %v2992_v1  ;;  %v3000_v35 = vadd.f32 %v2548_v3, %v2283_v9  ;;  %v2930_v59 = vadd.f32 %v2621_v11, %v2213_v32  ;;  %v3360_v41 = vsub.s32 7, %v5376_v50  ;;  %v2311_v32 = vld [vmem:[%s4644_s16 + $0x450] sm:$0xff] }
 0x258   : > { %v3407_v40 = vadd.f32 %v5613_v21, %v2922_v25  ;;  %v2550_v5 = vpop.f32.mrf.mxu1  ;;  %v2623_v22 = vpop.f32.mrf.mxu0 }
 0x259   : > { %3621 = vst [vmem:[%s4644_s16 + $0x330] sm:$0xff] %v3477_v44  ;;  %v3485_v31 = vadd.f32 %v5505_v63, %v3000_v35  ;;  %v3415_v45 = vadd.f32 %v5604_v37, %v2930_v59  ;;  %v3001_v23 = vadd.f32 %v2550_v5, %v2284_v62  ;;  %v2931_v20 = vadd.f32 %v2623_v22, %v2214_v51  ;;  %v2241_v44 = vld [vmem:[%s4644_s16 + $0x220] sm:$0xff] }
 0x25a   : > { %3551 = vst [vmem:[%s4644_s16 + $0x100] sm:$0xff] %v3407_v40  ;;  %v2552_v12 = vpop.f32.mrf.mxu1  ;;  %v2625_v49 = vpop.f32.mrf.mxu0  ;;  %v5708_v35 = vrot.slane %v5389_v15, %v3356_v29  ;;  %v2249_v22 = vld [vmem:[%s4644_s16 + $0x260] sm:$0xff] }
 0x25b   : > { %3629 = vst [vmem:[%s4644_s16 + $0x370] sm:$0xff] %v3485_v31  ;;  %3559 = vst [vmem:[%s4644_s16 + $0x140] sm:$0xff] %v3415_v45  ;;  %v3486_v24 = vadd.f32 %v5514_v10, %v3001_v23  ;;  %v3416_v28 = vadd.f32 %v5613_v21, %v2931_v20  ;;  %v3009_v54 = vadd.f32 %v2552_v12, %v2292_v52  ;;  %v2179_v45 = vld [vmem:[%s4644_s16 + $0x30] sm:$0xff] }
 0x25c   : > { %v2939_v34 = vadd.f32 %v2625_v49, %v2222_v27  ;;  %v2554_v4 = vpop.f32.mrf.mxu1  ;;  %v2627_v43 = vpop.f32.mrf.mxu0  ;;  %v5717_v20 = vrot.slane %v5389_v15, %v3360_v41  ;;  %v2250_v49 = vld [vmem:[%s4644_s16 + $0x268] sm:$0xff] }
 0x25d   : > { %3630 = vst [vmem:[%s4644_s16 + $0x378] sm:$0xff] %v3486_v24  ;;  %3560 = vst [vmem:[%s4644_s16 + $0x148] sm:$0xff] %v3416_v28  ;;  %v3494_v26 = vadd.f32 %v5505_v63, %v3009_v54  ;;  %v3010_v57 = vadd.f32 %v2554_v4, %v2293_v58  ;;  %v2940_v13 = vadd.f32 %v2627_v43, %v2223_v16  ;;  %v2180_v28 = vld [vmem:[%s4644_s16 + $0x38] sm:$0xff]  ;;  %v2258_v4 = vld [vmem:[%s4644_s16 + $0x2a8] sm:$0xff] }
 0x25e   : > { %v3424_v33 = vadd.f32 %v5604_v37, %v2939_v34  ;;  %v2558_v55 = vpop.f32.mrf.mxu1  ;;  %v2631_v8 = vpop.f32.mrf.mxu0  ;;  %v2188_v43 = vld [vmem:[%s4644_s16 + $0x78] sm:$0xff] }
 0x25f   : > { %3638 = vst [vmem:[%s4644_s16 + $0x3b8] sm:$0xff] %v3494_v26  ;;  %v3495_v14 = vadd.f32 %v5514_v10, %v3010_v57  ;;  %v3425_v19 = vadd.f32 %v5613_v21, %v2940_v13  ;;  %v3018_v46 = vadd.f32 %v2558_v55, %v2301_v47  ;;  %v2948_v17 = vadd.f32 %v2631_v8, %v2231_v0  ;;  %v2259_v55 = vld [vmem:[%s4644_s16 + $0x2b0] sm:$0xff]  ;;  %v2189_v8 = vld [vmem:[%s4644_s16 + $0x80] sm:$0xff] }
 0x260   : > { %3568 = vst [vmem:[%s4644_s16 + $0x188] sm:$0xff] %v3424_v33  ;;  %v2560_v6 = vpop.f32.mrf.mxu1  ;;  %v2633_v38 = vpop.f32.mrf.mxu0 }
 0x261   : > { %3639 = vst [vmem:[%s4644_s16 + $0x3c0] sm:$0xff] %v3495_v14  ;;  %3569 = vst [vmem:[%s4644_s16 + $0x190] sm:$0xff] %v3425_v19  ;;  %v3503_v30 = vadd.f32 %v5505_v63, %v3018_v46  ;;  %v3433_v53 = vadd.f32 %v5604_v37, %v2948_v17  ;;  %v3019_v39 = vadd.f32 %v2560_v6, %v2302_v2  ;;  %v2267_v6 = vld [vmem:[%s4644_s16 + $0x2f0] sm:$0xff] }
 0x262   : > { %v2949_v7 = vadd.f32 %v2633_v38, %v2232_v36  ;;  %v2562_v18 = vpop.f32.mrf.mxu1  ;;  %v2635_v42 = vpop.f32.mrf.mxu0  ;;  %v2197_v38 = vld [vmem:[%s4644_s16 + $0xc0] sm:$0xff] }
 0x263   : > { %3647 = vst [vmem:[%s4644_s16 + $0x400] sm:$0xff] %v3503_v30  ;;  %3577 = vst [vmem:[%s4644_s16 + $0x1d0] sm:$0xff] %v3433_v53  ;;  %v3504_v1 = vadd.f32 %v5514_v10, %v3019_v39  ;;  %v3027_v9 = vadd.f32 %v2562_v18, %v2310_v56  ;;  %v2957_v3 = vadd.f32 %v2635_v42, %v2240_v60  ;;  %v2268_v56 = vld [vmem:[%s4644_s16 + $0x2f8] sm:$0xff]  ;;  %v2198_v60 = vld [vmem:[%s4644_s16 + $0xc8] sm:$0xff] }
 0x264   : > { %v3434_v25 = vadd.f32 %v5613_v21, %v2949_v7  ;;  %v2564_v11 = vpop.f32.mrf.mxu1  ;;  %v2637_v40 = vpop.f32.mrf.mxu0 }
 0x265   : > { %3648 = vst [vmem:[%s4644_s16 + $0x408] sm:$0xff] %v3504_v1  ;;  %v3512_v59 = vadd.f32 %v5505_v63, %v3027_v9  ;;  %v3442_v62 = vadd.f32 %v5604_v37, %v2957_v3  ;;  %v3028_v5 = vadd.f32 %v2564_v11, %v2311_v32  ;;  %v2958_v51 = vadd.f32 %v2637_v40, %v2241_v44  ;;  %v2276_v3 = vld [vmem:[%s4644_s16 + $0x338] sm:$0xff]  ;;  %v2206_v11 = vld [vmem:[%s4644_s16 + $0x108] sm:$0xff] }
 0x266   : > { %3578 = vst [vmem:[%s4644_s16 + $0x1d8] sm:$0xff] %v3434_v25  ;;  %v2641_v31 = vpop.f32.mrf.mxu0  ;;  %v2714_v23 = vpop.f32.mrf.mxu1 }
 0x267   : > { %3656 = vst [vmem:[%s4644_s16 + $0x448] sm:$0xff] %v3512_v59  ;;  %3586 = vst [vmem:[%s4644_s16 + $0x218] sm:$0xff] %v3442_v62  ;;  %v3513_v52 = vadd.f32 %v5514_v10, %v3028_v5  ;;  %v3443_v63 = vadd.f32 %v5613_v21, %v2958_v51  ;;  %v2966_v12 = vadd.f32 %v2641_v31, %v2249_v22  ;;  %v2277_v51 = vld [vmem:[%s4644_s16 + $0x340] sm:$0xff]  ;;  %v2207_v31 = vld [vmem:[%s4644_s16 + $0x110] sm:$0xff] }
 0x268   : > { %v2896_v27 = vadd.f32 %v2714_v23, %v2179_v45  ;;  %v2643_v24 = vpop.f32.mrf.mxu0  ;;  %v2716_v54 = vpop.f32.mrf.mxu1 }
 0x269   : > { %3657 = vst [vmem:[%s4644_s16 + $0x450] sm:$0xff] %v3513_v52  ;;  %3587 = vst [vmem:[%s4644_s16 + $0x220] sm:$0xff] %v3443_v63  ;;  %v3451_v15 = vadd.f32 %v5604_v37, %v2966_v12  ;;  %v2967_v10 = vadd.f32 %v2643_v24, %v2250_v49  ;;  %v2897_v58 = vadd.f32 %v2716_v54, %v2180_v28  ;;  %v2215_v24 = vld [vmem:[%s4644_s16 + $0x150] sm:$0xff] }
 0x26a   : > { %v3381_v34 = vadd.f32 %v5708_v35, %v2896_v27  ;;  %v2645_v16 = vpop.f32.mrf.mxu0  ;;  %v2718_v26 = vpop.f32.mrf.mxu1  ;;  %v2285_v27 = vld [vmem:[%s4644_s16 + $0x380] sm:$0xff] }
 0x26b   : > { %3595 = vst [vmem:[%s4644_s16 + $0x260] sm:$0xff] %v3451_v15  ;;  %v3452_v33 = vadd.f32 %v5613_v21, %v2967_v10  ;;  %v3382_v57 = vadd.f32 %v5717_v20, %v2897_v58  ;;  %v2975_v13 = vadd.f32 %v2645_v16, %v2258_v4  ;;  %v2905_v47 = vadd.f32 %v2718_v26, %v2188_v43  ;;  %v2286_v58 = vld [vmem:[%s4644_s16 + $0x388] sm:$0xff]  ;;  %v2216_v16 = vld [vmem:[%s4644_s16 + $0x158] sm:$0xff] }
 0x26c   : > { %3525 = vst [vmem:[%s4644_s16 + $0x30] sm:$0xff] %v3381_v34  ;;  %v2647_v0 = vpop.f32.mrf.mxu0  ;;  %v2720_v14 = vpop.f32.mrf.mxu1 }
 0x26d   : > { %3596 = vst [vmem:[%s4644_s16 + $0x268] sm:$0xff] %v3452_v33  ;;  %3526 = vst [vmem:[%s4644_s16 + $0x38] sm:$0xff] %v3382_v57  ;;  %v3460_v19 = vadd.f32 %v5604_v37, %v2975_v13  ;;  %v3390_v46 = vadd.f32 %v5708_v35, %v2905_v47  ;;  %v2976_v17 = vadd.f32 %v2647_v0, %v2259_v55  ;;  %v2294_v47 = vld [vmem:[%s4644_s16 + $0x3c8] sm:$0xff]  ;;  %v2224_v0 = vld [vmem:[%s4644_s16 + $0x198] sm:$0xff] }
 0x26e   : > { %v2906_v2 = vadd.f32 %v2720_v14, %v2189_v8  ;;  %v2651_v36 = vpop.f32.mrf.mxu0  ;;  %v2724_v29 = vpop.f32.mrf.mxu1 }
 0x26f   : > { %3604 = vst [vmem:[%s4644_s16 + $0x2a8] sm:$0xff] %v3460_v19  ;;  %3534 = vst [vmem:[%s4644_s16 + $0x78] sm:$0xff] %v3390_v46  ;;  %v3461_v30 = vadd.f32 %v5613_v21, %v2976_v17  ;;  %v2984_v39 = vadd.f32 %v2651_v36, %v2267_v6  ;;  %v2914_v7 = vadd.f32 %v2724_v29, %v2197_v38  ;;  %v2225_v36 = vld [vmem:[%s4644_s16 + $0x1a0] sm:$0xff] }
 0x270   : > { %v3391_v53 = vadd.f32 %v5717_v20, %v2906_v2  ;;  %v2653_v18 = vpop.f32.mrf.mxu0  ;;  %v2726_v42 = vpop.f32.mrf.mxu1  ;;  %v2295_v2 = vld [vmem:[%s4644_s16 + $0x3d0] sm:$0xff] }
 0x271   : > { %3605 = vst [vmem:[%s4644_s16 + $0x2b0] sm:$0xff] %v3461_v30  ;;  %v3469_v41 = vadd.f32 %v5604_v37, %v2984_v39  ;;  %v3399_v1 = vadd.f32 %v5708_v35, %v2914_v7  ;;  %v2985_v25 = vadd.f32 %v2653_v18, %v2268_v56  ;;  %v2915_v9 = vadd.f32 %v2726_v42, %v2198_v60  ;;  %v2303_v7 = vld [vmem:[%s4644_s16 + $0x410] sm:$0xff]  ;;  %v2233_v18 = vld [vmem:[%s4644_s16 + $0x1e0] sm:$0xff] }
 0x272   : > { %3535 = vst [vmem:[%s4644_s16 + $0x80] sm:$0xff] %v3391_v53  ;;  %v2655_v32 = vpop.f32.mrf.mxu0  ;;  %v2728_v44 = vpop.f32.mrf.mxu1 }
 0x273   : > { %3613 = vst [vmem:[%s4644_s16 + $0x2f0] sm:$0xff] %v3469_v41  ;;  %3543 = vst [vmem:[%s4644_s16 + $0xc0] sm:$0xff] %v3399_v1  ;;  %v3470_v40 = vadd.f32 %v5613_v21, %v2985_v25  ;;  %v3400_v59 = vadd.f32 %v5717_v20, %v2915_v9  ;;  %v2993_v62 = vadd.f32 %v2655_v32, %v2276_v3  ;;  %v2304_v9 = vld [vmem:[%s4644_s16 + $0x418] sm:$0xff]  ;;  %v2234_v32 = vld [vmem:[%s4644_s16 + $0x1e8] sm:$0xff] }
 0x274   : > { %v2923_v5 = vadd.f32 %v2728_v44, %v2206_v11  ;;  %v2657_v22 = vpop.f32.mrf.mxu0  ;;  %v2730_v45 = vpop.f32.mrf.mxu1 }
 0x275   : > { %3614 = vst [vmem:[%s4644_s16 + $0x2f8] sm:$0xff] %v3470_v40  ;;  %3544 = vst [vmem:[%s4644_s16 + $0xc8] sm:$0xff] %v3400_v59  ;;  %v3478_v23 = vadd.f32 %v5604_v37, %v2993_v62  ;;  %v2994_v63 = vadd.f32 %v2657_v22, %v2277_v51  ;;  %v2924_v12 = vadd.f32 %v2730_v45, %v2207_v31  ;;  %v2242_v22 = vld [vmem:[%s4644_s16 + $0x228] sm:$0xff] }
 0x276   : > { %v3408_v52 = vadd.f32 %v5708_v35, %v2923_v5  ;;  %v2661_v49 = vpop.f32.mrf.mxu0  ;;  %v2734_v28 = vpop.f32.mrf.mxu1  ;;  %v2312_v5 = vld [vmem:[%s4644_s16 + $0x458] sm:$0xff] }
 0x277   : > { %3622 = vst [vmem:[%s4644_s16 + $0x338] sm:$0xff] %v3478_v23  ;;  %v3479_v54 = vadd.f32 %v5613_v21, %v2994_v63  ;;  %v3409_v15 = vadd.f32 %v5717_v20, %v2924_v12  ;;  %v3002_v34 = vadd.f32 %v2661_v49, %v2285_v27  ;;  %v2932_v10 = vadd.f32 %v2734_v28, %v2215_v24  ;;  %v2313_v12 = vld [vmem:[%s4644_s16 + $0x460] sm:$0xff]  ;;  %v2243_v49 = vld [vmem:[%s4644_s16 + $0x230] sm:$0xff] }
 0x278   : > { %3552 = vst [vmem:[%s4644_s16 + $0x108] sm:$0xff] %v3408_v52  ;;  %v2663_v4 = vpop.f32.mrf.mxu0  ;;  %v2736_v43 = vpop.f32.mrf.mxu1 }
 0x279   : > { %3623 = vst [vmem:[%s4644_s16 + $0x340] sm:$0xff] %v3479_v54  ;;  %3553 = vst [vmem:[%s4644_s16 + $0x110] sm:$0xff] %v3409_v15  ;;  %v3487_v26 = vadd.f32 %v5604_v37, %v3002_v34  ;;  %v3417_v33 = vadd.f32 %v5708_v35, %v2932_v10  ;;  %v3003_v57 = vadd.f32 %v2663_v4, %v2286_v58  ;;  %v2251_v10 = vld [vmem:[%s4644_s16 + $0x270] sm:$0xff] }
 0x27a   : > { %v2933_v13 = vadd.f32 %v2736_v43, %v2216_v16  ;;  %v2665_v55 = vpop.f32.mrf.mxu0  ;;  %v2738_v8 = vpop.f32.mrf.mxu1  ;;  %v2199_v4 = vld [vmem:[%s4644_s16 + $0xd0] sm:$0xff] }
 0x27b   : > { %3631 = vst [vmem:[%s4644_s16 + $0x380] sm:$0xff] %v3487_v26  ;;  %3561 = vst [vmem:[%s4644_s16 + $0x150] sm:$0xff] %v3417_v33  ;;  %v3488_v14 = vadd.f32 %v5613_v21, %v3003_v57  ;;  %v3011_v46 = vadd.f32 %v2665_v55, %v2294_v47  ;;  %v2941_v17 = vadd.f32 %v2738_v8, %v2224_v0  ;;  %v3323_v43 = vld [vmem:[#allocation5 + $0x8] sm:$0x1]  ;;  %v2181_v55 = vld [vmem:[%s4644_s16 + $0x40] sm:$0xff] }
 0x27c   : > { %v3418_v19 = vadd.f32 %v5717_v20, %v2933_v13  ;;  %v2667_v6 = vpop.f32.mrf.mxu0  ;;  %v2740_v38 = vpop.f32.mrf.mxu1  ;;  %v2252_v13 = vld [vmem:[%s4644_s16 + $0x278] sm:$0xff] }
 0x27d   : > { %3632 = vst [vmem:[%s4644_s16 + $0x388] sm:$0xff] %v3488_v14  ;;  %v3496_v29 = vadd.f32 %v5604_v37, %v3011_v46  ;;  %v3426_v30 = vadd.f32 %v5708_v35, %v2941_v17  ;;  %v3012_v53 = vadd.f32 %v2667_v6, %v2295_v2  ;;  %v2942_v39 = vadd.f32 %v2740_v38, %v2225_v36  ;;  %v2260_v46 = vld [vmem:[%s4644_s16 + $0x2b8] sm:$0xff] }
 0x27e   : > { %3562 = vst [vmem:[%s4644_s16 + $0x158] sm:$0xff] %v3418_v19  ;;  %v2671_v56 = vpop.f32.mrf.mxu0  ;;  %v2744_v60 = vpop.f32.mrf.mxu1  ;;  %v2208_v2 = vld [vmem:[%s4644_s16 + $0x118] sm:$0xff] }
 0x27f   : > { %3640 = vst [vmem:[%s4644_s16 + $0x3c8] sm:$0xff] %v3496_v29  ;;  %3570 = vst [vmem:[%s4644_s16 + $0x198] sm:$0xff] %v3426_v30  ;;  %v3497_v42 = vadd.f32 %v5613_v21, %v3012_v53  ;;  %v3427_v41 = vadd.f32 %v5717_v20, %v2942_v39  ;;  %v3020_v1 = vadd.f32 %v2671_v56, %v2303_v7  ;;  %v2261_v30 = vld [vmem:[%s4644_s16 + $0x2c0] sm:$0xff]  ;;  %v2190_v53 = vld [vmem:[%s4644_s16 + $0x88] sm:$0xff] }
 0x280   : > { %v2950_v25 = vadd.f32 %v2744_v60, %v2233_v18  ;;  %v2673_v3 = vpop.f32.mrf.mxu0  ;;  %v2746_v11 = vpop.f32.mrf.mxu1 }
 0x281   : > { %3641 = vst [vmem:[%s4644_s16 + $0x3d0] sm:$0xff] %v3497_v42  ;;  %3571 = vst [vmem:[%s4644_s16 + $0x1a0] sm:$0xff] %v3427_v41  ;;  %v3505_v44 = vadd.f32 %v5604_v37, %v3020_v1  ;;  %v3021_v59 = vadd.f32 %v2673_v3, %v2304_v9  ;;  %v2951_v62 = vadd.f32 %v2746_v11, %v2234_v32  ;;  %v2269_v42 = vld [vmem:[%s4644_s16 + $0x300] sm:$0xff]  ;;  %v2235_v1 = vld [vmem:[%s4644_s16 + $0x1f0] sm:$0xff] }
 0x282   : > { %v3435_v40 = vadd.f32 %v5708_v35, %v2950_v25  ;;  %v2675_v51 = vpop.f32.mrf.mxu0  ;;  %v2748_v31 = vpop.f32.mrf.mxu1  ;;  %v2270_v32 = vld [vmem:[%s4644_s16 + $0x308] sm:$0xff] }
 0x283   : > { %3649 = vst [vmem:[%s4644_s16 + $0x410] sm:$0xff] %v3505_v44  ;;  %v3506_v45 = vadd.f32 %v5613_v21, %v3021_v59  ;;  %v3436_v23 = vadd.f32 %v5717_v20, %v2951_v62  ;;  %v3029_v52 = vadd.f32 %v2675_v51, %v2312_v5  ;;  %v2959_v63 = vadd.f32 %v2748_v31, %v2242_v22  ;;  %v2217_v44 = vld [vmem:[%s4644_s16 + $0x160] sm:$0xff]  ;;  %v2278_v31 = vld [vmem:[%s4644_s16 + $0x348] sm:$0xff] }
 0x284   : > { %3579 = vst [vmem:[%s4644_s16 + $0x1e0] sm:$0xff] %v3435_v40  ;;  %v2677_v27 = vpop.f32.mrf.mxu0  ;;  %v2750_v24 = vpop.f32.mrf.mxu1 }
 0x285   : > { %3650 = vst [vmem:[%s4644_s16 + $0x418] sm:$0xff] %v3506_v45  ;;  %3580 = vst [vmem:[%s4644_s16 + $0x1e8] sm:$0xff] %v3436_v23  ;;  %v3514_v28 = vadd.f32 %v5604_v37, %v3029_v52  ;;  %v3444_v54 = vadd.f32 %v5708_v35, %v2959_v63  ;;  %v3030_v15 = vadd.f32 %v2677_v27, %v2313_v12  ;;  %v2244_v23 = vld [vmem:[%s4644_s16 + $0x238] sm:$0xff] }
 0x286   : > { %v2960_v34 = vadd.f32 %v2750_v24, %v2243_v49  ;;  %v2754_v58 = vpop.f32.mrf.mxu1  ;;  %v3984_v16 = vpop.f32.mrf.mxu0 }
 0x287   : > { %3658 = vst [vmem:[%s4644_s16 + $0x458] sm:$0xff] %v3514_v28  ;;  %3588 = vst [vmem:[%s4644_s16 + $0x228] sm:$0xff] %v3444_v54  ;;  %v3515_v26 = vadd.f32 %v5613_v21, %v3030_v15  ;;  %v2968_v33 = vadd.f32 %v2754_v58, %v2251_v10  ;;  %v2916_v57 = vadd.f32 %v3984_v16, %v2199_v4  ;;  %v2279_v28 = vld [vmem:[%s4644_s16 + $0x350] sm:$0xff]  ;;  %v2226_v15 = vld [vmem:[%s4644_s16 + $0x1a8] sm:$0xff] }
 0x288   : > { %v3445_v37 = vadd.f32 %v5717_v20, %v2960_v34  ;;  %v2756_v47 = vpop.f32.mrf.mxu1  ;;  %v2827_v0 = vpop.f32.mrf.mxu0  ;;  %v3327_v21 = vmul.f32 %v3325_v48, %v3323_v43 }
 0x289   : > { %3659 = vst [vmem:[%s4644_s16 + $0x460] sm:$0xff] %v3515_v26  ;;  %v3453_v8 = vadd.f32 %v5708_v35, %v2968_v33  ;;  %3060 = vst.msk [vmem:[%s4644_s16 + $0xd0] sm:$0xff] %vm1031_vm2, %v2916_v57  ;;  %v2969_v14 = vadd.f32 %v2756_v47, %v2252_v13  ;;  %v2898_v19 = vadd.f32 %v2827_v0, %v2181_v55  ;;  %v2287_v26 = vld [vmem:[%s4644_s16 + $0x390] sm:$0xff] }
 0x28a   : > { %3589 = vst [vmem:[%s4644_s16 + $0x230] sm:$0xff] %v3445_v37  ;;  %v2758_v17 = vpop.f32.mrf.mxu1  ;;  %v3985_v6 = vpop.f32.mrf.mxu0  ;;  %v5838_v7 = vrot.slane %v3327_v21, %v3332_v61  ;;  %v2271_v33 = vld [vmem:[%s4644_s16 + $0x310] sm:$0xff]  ;;  %v2288_v21 = vld [vmem:[%s4644_s16 + $0x398] sm:$0xff] }
 0x28b   : > { %3597 = vst [vmem:[%s4644_s16 + $0x270] sm:$0xff] %v3453_v8  ;;  %v3454_v36 = vadd.f32 %v5717_v20, %v2969_v14  ;;  %3042 = vst.msk [vmem:[%s4644_s16 + $0x40] sm:$0xff] %vm1031_vm2, %v2898_v19  ;;  %v2977_v38 = vadd.f32 %v2758_v17, %v2260_v46  ;;  %v2925_v29 = vadd.f32 %v3985_v6, %v2208_v2  ;;  %v2253_v19 = vld [vmem:[%s4644_s16 + $0x280] sm:$0xff] }
 0x28c   : > { %v2760_v48 = vpop.f32.mrf.mxu1  ;;  %v2830_v39 = vpop.f32.mrf.mxu0 }
 0x28d   : > { %3598 = vst [vmem:[%s4644_s16 + $0x278] sm:$0xff] %v3454_v36  ;;  %v3462_v56 = vadd.f32 %v5708_v35, %v2977_v38  ;;  %3069 = vst.msk [vmem:[%s4644_s16 + $0x118] sm:$0xff] %vm1031_vm2, %v2925_v29  ;;  %v2978_v18 = vadd.f32 %v2760_v48, %v2261_v30  ;;  %v2907_v60 = vadd.f32 %v2830_v39, %v2190_v53  ;;  %v2296_v29 = vld [vmem:[%s4644_s16 + $0x3d8] sm:$0xff] }
 0x28e   : > { %v2764_v41 = vpop.f32.mrf.mxu1  ;;  %v3988_v25 = vpop.f32.mrf.mxu0  ;;  %v2280_v48 = vld [vmem:[%s4644_s16 + $0x358] sm:$0xff] }
 0x28f   : > { %3606 = vst [vmem:[%s4644_s16 + $0x2b8] sm:$0xff] %v3462_v56  ;;  %v3463_v50 = vadd.f32 %v5717_v20, %v2978_v18  ;;  %3051 = vst.msk [vmem:[%s4644_s16 + $0x88] sm:$0xff] %vm1031_vm2, %v2907_v60  ;;  %v2986_v61 = vadd.f32 %v2764_v41, %v2269_v42  ;;  %v2952_v9 = vadd.f32 %v3988_v25, %v2235_v1  ;;  %v2297_v41 = vld [vmem:[%s4644_s16 + $0x3e0] sm:$0xff]  ;;  %v2262_v25 = vld [vmem:[%s4644_s16 + $0x2c8] sm:$0xff] }
 0x290   : > { %v3204_v3 = vld [vmem:[%s4644_s16 + $0xd0] sm:$0xff]  ;;  %v2766_v11 = vpop.f32.mrf.mxu1  ;;  %v2843_v40 = vpop.f32.mrf.mxu0 }
 0x291   : > { %v3401_v59 = vadd.f32 %v5838_v7, %v3204_v3  ;;  %3607 = vst [vmem:[%s4644_s16 + $0x2c0] sm:$0xff] %v3463_v50  ;;  %v3471_v62 = vadd.f32 %v5708_v35, %v2986_v61  ;;  %3096 = vst.msk [vmem:[%s4644_s16 + $0x1f0] sm:$0xff] %vm1031_vm2, %v2952_v9  ;;  %v2987_v5 = vadd.f32 %v2766_v11, %v2270_v32 }
 0x292   : > { %v2934_v51 = vadd.f32 %v2843_v40, %v2217_v44  ;;  %v3186_v22 = vld [vmem:[%s4644_s16 + $0x40] sm:$0xff]  ;;  %v2768_v45 = vpop.f32.mrf.mxu1  ;;  %v3989_v52 = vpop.f32.mrf.mxu0 }
 0x293   : > { %3545 = vst.msk [vmem:[%s4644_s16 + $0xd0] sm:$0xff] %vm1031_vm2, %v3401_v59  ;;  %v3383_v63 = vadd.f32 %v5838_v7, %v3186_v22  ;;  %3615 = vst [vmem:[%s4644_s16 + $0x300] sm:$0xff] %v3471_v62  ;;  %v3472_v12 = vadd.f32 %v5717_v20, %v2987_v5  ;;  %v2995_v27 = vadd.f32 %v2768_v45, %v2278_v31  ;;  %v2305_v44 = vld [vmem:[%s4644_s16 + $0x420] sm:$0xff]  ;;  %v2307_v59 = vld [vmem:[%s4644_s16 + $0x430] sm:$0xff] }
 0x294   : > { %3078 = vst.msk [vmem:[%s4644_s16 + $0x160] sm:$0xff] %vm1031_vm2, %v2934_v51  ;;  %v2961_v49 = vadd.f32 %v3989_v52, %v2244_v23  ;;  %v3213_v24 = vld [vmem:[%s4644_s16 + $0x118] sm:$0xff]  ;;  %v2770_v54 = vpop.f32.mrf.mxu1  ;;  %v2846_v34 = vpop.f32.mrf.mxu0  ;;  %v2306_v23 = vld [vmem:[%s4644_s16 + $0x428] sm:$0xff] }
 0x295   : > { %3527 = vst.msk [vmem:[%s4644_s16 + $0x40] sm:$0xff] %vm1031_vm2, %v3383_v63  ;;  %v3410_v10 = vadd.f32 %v5838_v7, %v3213_v24  ;;  %3616 = vst [vmem:[%s4644_s16 + $0x308] sm:$0xff] %v3472_v12  ;;  %v3480_v58 = vadd.f32 %v5708_v35, %v2995_v27  ;;  %v2996_v4 = vadd.f32 %v2770_v54, %v2279_v28  ;;  %v2289_v63 = vld [vmem:[%s4644_s16 + $0x3a0] sm:$0xff] }
 0x296   : > { %3105 = vst.msk [vmem:[%s4644_s16 + $0x238] sm:$0xff] %vm1031_vm2, %v2961_v49  ;;  %v2943_v16 = vadd.f32 %v2846_v34, %v2226_v15  ;;  %v3195_v43 = vld [vmem:[%s4644_s16 + $0x88] sm:$0xff]  ;;  %v2774_v37 = vpop.f32.mrf.mxu1  ;;  %v3992_v57 = vpop.f32.mrf.mxu0 }
 0x297   : > { %3554 = vst.msk [vmem:[%s4644_s16 + $0x118] sm:$0xff] %vm1031_vm2, %v3410_v10  ;;  %v3392_v13 = vadd.f32 %v5838_v7, %v3195_v43  ;;  %3624 = vst [vmem:[%s4644_s16 + $0x348] sm:$0xff] %v3480_v58  ;;  %v3481_v47 = vadd.f32 %v5717_v20, %v2996_v4  ;;  %v3004_v55 = vadd.f32 %v2774_v37, %v2287_v26  ;;  %v2314_v15 = vld [vmem:[%s4644_s16 + $0x468] sm:$0xff]  ;;  %v2316_v10 = vld [vmem:[%s4644_s16 + $0x478] sm:$0xff] }
 0x298   : > { %3087 = vst.msk [vmem:[%s4644_s16 + $0x1a8] sm:$0xff] %vm1031_vm2, %v2943_v16  ;;  %v2988_v0 = vadd.f32 %v3992_v57, %v2271_v33  ;;  %v3240_v8 = vld [vmem:[%s4644_s16 + $0x1f0] sm:$0xff]  ;;  %v2776_v14 = vpop.f32.mrf.mxu1  ;;  %v2859_v46 = vpop.f32.mrf.mxu0 }
 0x299   : > { %3536 = vst.msk [vmem:[%s4644_s16 + $0x88] sm:$0xff] %vm1031_vm2, %v3392_v13  ;;  %v3437_v17 = vadd.f32 %v5838_v7, %v3240_v8  ;;  %3625 = vst [vmem:[%s4644_s16 + $0x350] sm:$0xff] %v3481_v47  ;;  %v3489_v2 = vadd.f32 %v5708_v35, %v3004_v55  ;;  %v3005_v6 = vadd.f32 %v2776_v14, %v2288_v21  ;;  %v2315_v33 = vld [vmem:[%s4644_s16 + $0x470] sm:$0xff]  ;;  %v2298_v13 = vld [vmem:[%s4644_s16 + $0x3e8] sm:$0xff] }
 0x29a   : > { %3132 = vst.msk [vmem:[%s4644_s16 + $0x310] sm:$0xff] %vm1031_vm2, %v2988_v0  ;;  %v2970_v36 = vadd.f32 %v2859_v46, %v2253_v19  ;;  %v2778_v30 = vpop.f32.mrf.mxu1  ;;  %v3993_v53 = vpop.f32.mrf.mxu0 }
 0x29b   : > { %v3222_v38 = vld [vmem:[%s4644_s16 + $0x160] sm:$0xff]  ;;  %3581 = vst.msk [vmem:[%s4644_s16 + $0x1f0] sm:$0xff] %vm1031_vm2, %v3437_v17  ;;  %3633 = vst [vmem:[%s4644_s16 + $0x390] sm:$0xff] %v3489_v2  ;;  %v3490_v56 = vadd.f32 %v5717_v20, %v3005_v6  ;;  %v3013_v18 = vadd.f32 %v2778_v30, %v2296_v29  ;;  %v2997_v60 = vadd.f32 %v3993_v53, %v2280_v48 }
 0x29c   : > { %v3419_v39 = vadd.f32 %v5838_v7, %v3222_v38  ;;  %3114 = vst.msk [vmem:[%s4644_s16 + $0x280] sm:$0xff] %vm1031_vm2, %v2970_v36  ;;  %v2780_v1 = vpop.f32.mrf.mxu1  ;;  %v2862_v50 = vpop.f32.mrf.mxu0 }
 0x29d   : > { %v3249_v42 = vld [vmem:[%s4644_s16 + $0x238] sm:$0xff]  ;;  %3634 = vst [vmem:[%s4644_s16 + $0x398] sm:$0xff] %v3490_v56  ;;  %v3498_v9 = vadd.f32 %v5708_v35, %v3013_v18  ;;  %3141 = vst.msk [vmem:[%s4644_s16 + $0x358] sm:$0xff] %vm1031_vm2, %v2997_v60  ;;  %v3014_v3 = vadd.f32 %v2780_v1, %v2297_v41  ;;  %v2979_v32 = vadd.f32 %v2862_v50, %v2262_v25 }
 0x29e   : > { %3563 = vst.msk [vmem:[%s4644_s16 + $0x160] sm:$0xff] %vm1031_vm2, %v3419_v39  ;;  %v3446_v61 = vadd.f32 %v5838_v7, %v3249_v42  ;;  %v2784_v40 = vpop.f32.mrf.mxu1  ;;  %v3996_v62 = vpop.f32.mrf.mxu0 }
 0x29f   : > { %v3231_v11 = vld [vmem:[%s4644_s16 + $0x1a8] sm:$0xff]  ;;  %3642 = vst [vmem:[%s4644_s16 + $0x3d8] sm:$0xff] %v3498_v9  ;;  %v3499_v51 = vadd.f32 %v5717_v20, %v3014_v3  ;;  %3123 = vst.msk [vmem:[%s4644_s16 + $0x2c8] sm:$0xff] %vm1031_vm2, %v2979_v32  ;;  %v3022_v22 = vadd.f32 %v2784_v40, %v2305_v44  ;;  %v3024_v31 = vadd.f32 %v3996_v62, %v2307_v59 }
 0x2a0   : > { %3590 = vst.msk [vmem:[%s4644_s16 + $0x238] sm:$0xff] %vm1031_vm2, %v3446_v61  ;;  %v3428_v5 = vadd.f32 %v5838_v7, %v3231_v11  ;;  %v2786_v52 = vpop.f32.mrf.mxu1  ;;  %v2875_v12 = vpop.f32.mrf.mxu0 }
 0x2a1   : > { %v3276_v45 = vld [vmem:[%s4644_s16 + $0x310] sm:$0xff]  ;;  %3643 = vst [vmem:[%s4644_s16 + $0x3e0] sm:$0xff] %v3499_v51  ;;  %v3507_v49 = vadd.f32 %v5708_v35, %v3022_v22  ;;  %3168 = vst.msk [vmem:[%s4644_s16 + $0x430] sm:$0xff] %vm1031_vm2, %v3024_v31  ;;  %v3023_v24 = vadd.f32 %v2786_v52, %v2306_v23  ;;  %v3006_v28 = vadd.f32 %v2875_v12, %v2289_v63 }
 0x2a2   : > { %3572 = vst.msk [vmem:[%s4644_s16 + $0x1a8] sm:$0xff] %vm1031_vm2, %v3428_v5  ;;  %v3473_v27 = vadd.f32 %v5838_v7, %v3276_v45  ;;  %v2788_v34 = vpop.f32.mrf.mxu1  ;;  %v3997_v58 = vpop.f32.mrf.mxu0 }
 0x2a3   : > { %v3258_v54 = vld [vmem:[%s4644_s16 + $0x280] sm:$0xff]  ;;  %3651 = vst [vmem:[%s4644_s16 + $0x420] sm:$0xff] %v3507_v49  ;;  %v3508_v16 = vadd.f32 %v5717_v20, %v3023_v24  ;;  %3150 = vst.msk [vmem:[%s4644_s16 + $0x3a0] sm:$0xff] %vm1031_vm2, %v3006_v28  ;;  %v3031_v43 = vadd.f32 %v2788_v34, %v2314_v15  ;;  %v3033_v26 = vadd.f32 %v3997_v58, %v2316_v10 }
 0x2a4   : > { %3617 = vst.msk [vmem:[%s4644_s16 + $0x310] sm:$0xff] %vm1031_vm2, %v3473_v27  ;;  %v3455_v4 = vadd.f32 %v5838_v7, %v3258_v54  ;;  %v3285_v37 = vld [vmem:[%s4644_s16 + $0x358] sm:$0xff]  ;;  %v2790_v57 = vpop.f32.mrf.mxu1  ;;  %v2878_v47 = vpop.f32.mrf.mxu0 }
 0x2a5   : > { %v3482_v55 = vadd.f32 %v5838_v7, %v3285_v37  ;;  %3652 = vst [vmem:[%s4644_s16 + $0x428] sm:$0xff] %v3508_v16  ;;  %v3516_v0 = vadd.f32 %v5708_v35, %v3031_v43  ;;  %3177 = vst.msk [vmem:[%s4644_s16 + $0x478] sm:$0xff] %vm1031_vm2, %v3033_v26  ;;  %v3032_v8 = vadd.f32 %v2790_v57, %v2315_v33 }
 0x2a6   : > { %3599 = vst.msk [vmem:[%s4644_s16 + $0x280] sm:$0xff] %vm1031_vm2, %v3455_v4  ;;  %v3015_v21 = vadd.f32 %v2878_v47, %v2298_v13  ;;  %v3267_v14 = vld [vmem:[%s4644_s16 + $0x2c8] sm:$0xff] }
 0x2a7   : > { %3626 = vst.msk [vmem:[%s4644_s16 + $0x358] sm:$0xff] %vm1031_vm2, %v3482_v55  ;;  %v3464_v19 = vadd.f32 %v5838_v7, %v3267_v14  ;;  %3660 = vst [vmem:[%s4644_s16 + $0x468] sm:$0xff] %v3516_v0  ;;  %v3517_v46 = vadd.f32 %v5717_v20, %v3032_v8 }
 0x2a8   : > { %3159 = vst.msk [vmem:[%s4644_s16 + $0x3e8] sm:$0xff] %vm1031_vm2, %v3015_v21  ;;  %v3312_v35 = vld [vmem:[%s4644_s16 + $0x430] sm:$0xff] }
 0x2a9   : > { %3608 = vst.msk [vmem:[%s4644_s16 + $0x2c8] sm:$0xff] %vm1031_vm2, %v3464_v19  ;;  %v3509_v17 = vadd.f32 %v5838_v7, %v3312_v35  ;;  %3661 = vst [vmem:[%s4644_s16 + $0x470] sm:$0xff] %v3517_v46 }
 0x2aa   : > { %v3294_v2 = vld [vmem:[%s4644_s16 + $0x3a0] sm:$0xff] }
 0x2ab   : > { %3653 = vst.msk [vmem:[%s4644_s16 + $0x430] sm:$0xff] %vm1031_vm2, %v3509_v17  ;;  %v3491_v6 = vadd.f32 %v5838_v7, %v3294_v2 }
 0x2ac   : > { %v3321_v36 = vld [vmem:[%s4644_s16 + $0x478] sm:$0xff] }
 0x2ad   : > { %3635 = vst.msk [vmem:[%s4644_s16 + $0x3a0] sm:$0xff] %vm1031_vm2, %v3491_v6  ;;  %v3518_v38 = vadd.f32 %v5838_v7, %v3321_v36 }
 0x2af   : > { %v3303_v29 = vld [vmem:[%s4644_s16 + $0x3e8] sm:$0xff]  ;;  %3662 = vst.msk [vmem:[%s4644_s16 + $0x478] sm:$0xff] %vm1031_vm2, %v3518_v38 }
 0x2b0   : > { %v3500_v20 = vadd.f32 %v5838_v7, %v3303_v29 }
 0x2b2   : > { %3644 = vst.msk [vmem:[%s4644_s16 + $0x3e8] sm:$0xff] %vm1031_vm2, %v3500_v20 }
 0x2b3 PF: > { %s17_s17 = sadd.s32 1, %s4127_s17  }
 0x2b4   : > { %p14_p3 = scmp.ge.s32.totalorder %s17_s17, 6  }
 0x2b6   :  { %16 = sbr.rel (!%p14_p3) target bundleno = 4 (0x4), region = 75 }
 0x2bb   :  { %3687 = vsyncpa [#allocation4], 1 }
 0x2bc   :  { %3689 = vsyncpa [#allocation4 + $0x1], 1 }
 0x2bd   :  { %3690 = vsyncpa [#allocation6], 1 }

</bundles_post_ra>
